<compile_context>
chip_gen: v5e
topology: v5e:2x2
jax: 0.10.0
libtpu: 0.0.40
codegen_flags: <defaults>
</compile_context>

<pallas_src>
import jax
import jax.numpy as jnp
from jax import lax
from jax.experimental import pallas as pl
from jax.experimental.pallas import tpu as pltpu

EPS = 1e-5


# --------------------------------------------------------------------------
# Fused kernel (one grid step == one image)
# --------------------------------------------------------------------------
def _make_fused_kernel(H, W, Cin, D, stride, projection):
    Ho, Wo = H // stride, W // stride
    M2 = Ho * Wo

    def kernel(*refs):
        if projection:
            (xin_ref, xs_ref, w1_ref, alpha_ref, w2_ref, bn2a_ref, bn2b_ref,
             sew1_ref, sew2_ref, wsc_ref, sca_ref, scb_ref,
             o_ref, pad_ref) = refs
        else:
            (xin_ref, xs_ref, w1_ref, alpha_ref, w2_ref, bn2a_ref, bn2b_ref,
             sew1_ref, sew2_ref,
             o_ref, pad_ref) = refs

        f32, bf16 = jnp.float32, jnp.bfloat16
        w1 = w1_ref[...]          # (9*Cin, D)  bf16, im2col-flattened HWIO
        alpha = alpha_ref[...]    # (1, D)      f32

        def conv1(patch_fn, M):
            # im2col: one (M, 9*Cin) x (9*Cin, D) matmul on the MXU, then PReLU.
            cols = jnp.concatenate(
                [patch_fn(dy, dx).reshape(M, Cin)
                 for dy in range(3) for dx in range(3)], axis=1)
            y = jnp.dot(cols, w1, preferred_element_type=f32)
            return jnp.where(y > 0, y, y * alpha)            # f32 (M, D)

        # Zero the padded y1 scratch every step (no cross-iteration state, so
        # the batch axis stays safely "parallel" across cores).
        pad_ref[...] = jnp.zeros_like(pad_ref)

        if stride == 1:
            # xin_ref: (H+2, W+2, Cin) -- BN1'd, zero-padded input (bf16).
            y1 = conv1(lambda dy, dx: xin_ref[dy:dy + H, dx:dx + W, :], H * W)
            pad_ref[1:H + 1, 1:W + 1, :] = y1.reshape(H, W, D)

            def tap2(dy, dx):
                return pad_ref[dy:dy + Ho, dx:dx + Wo, :]
        else:
            # xin_ref: (4, Ho+1, Wo+1, Cin) parity planes of the padded input:
            #   xin_ref[2*a + b, u, v, :] == xnpad[2*u + a, 2*v + b, :]
            for ph in range(2):
                for pw in range(2):
                    def patch(dy, dx, ph=ph, pw=pw):
                        e, f = ph + dy, pw + dx
                        return xin_ref[(e % 2) * 2 + (f % 2),
                                       e // 2:e // 2 + Ho,
                                       f // 2:f // 2 + Wo, :]
                    yb = conv1(patch, M2).reshape(Ho, Wo, D)
                    # y1 parity plane (ph, pw) lands in padded-parity plane
                    # (1-ph, 1-pw) at offset (ph, pw); untouched rows/cols stay
                    # zero = conv2's padding.
                    pad_ref[(1 - ph) * 2 + (1 - pw),
                            ph:ph + Ho, pw:pw + Wo, :] = yb

            def tap2(dy, dx):
                # strided tap of y1pad == unit-stride slice of a parity plane
                return pad_ref[(dy % 2) * 2 + (dx % 2),
                               dy // 2:dy // 2 + Ho,
                               dx // 2:dx // 2 + Wo, :]

        # conv2 (3x3, stride folded into the tap gather): one im2col matmul.
        cols2 = jnp.concatenate(
            [tap2(dy, dx).reshape(M2, D) for dy in range(3) for dx in range(3)],
            axis=1).astype(bf16)
        y2 = jnp.dot(cols2, w2_ref[...], preferred_element_type=f32)  # (M2, D)

        # BN2 (eval mode, folded scale/shift), f32 on the VPU.
        res = y2 * bn2a_ref[...] + bn2b_ref[...]

        # SE block: global average pool -> fc1 -> ReLU -> fc2 -> sigmoid -> scale.
        pooled = jnp.mean(res, axis=0, keepdims=True)                  # (1, D)
        h = jnp.dot(pooled.astype(bf16), sew1_ref[...],
                    preferred_element_type=f32)
        h = jnp.maximum(h, 0.0)
        z = jnp.dot(h.astype(bf16), sew2_ref[...],
                    preferred_element_type=f32)
        gate = 1.0 / (1.0 + jnp.exp(-z))                               # (1, D)
        res = res * gate

        # Shortcut branch + residual add.
        xs2 = xs_ref[...].reshape(M2, Cin)
        if projection:      # 1x1 conv (stride) + BN
            sc = jnp.dot(xs2.astype(bf16), wsc_ref[...],
                         preferred_element_type=f32)
            sc = sc * sca_ref[...] + scb_ref[...]
        else:               # MaxPool2d(1, stride) == strided subsample
            sc = xs2
        o_ref[...] = (res + sc).reshape(Ho, Wo, D)

    return kernel


# --------------------------------------------------------------------------
# Wrapper: layout prep + single pallas_call (grid over batch)
# --------------------------------------------------------------------------
def bottleneck_ir_se_forward(x_nchw, params, stride):
    assert stride in (1, 2)
    x = jnp.transpose(x_nchw, (0, 2, 3, 1)).astype(jnp.float32)   # -> NHWC
    N, H, W, Cin = x.shape
    assert H % stride == 0 and W % stride == 0
    D = params["w2_hwio"].shape[-1]
    Ho, Wo = H // stride, W // stride
    bf16 = jnp.bfloat16

    # BN1 (folded affine) + zero pad done once here, so the conv padding is
    # zero in BN-output space and the kernel reads an already-padded block.
    xn = x * params["bn1_a"] + params["bn1_b"]
    xpad = jnp.pad(xn, ((0, 0), (1, 1), (1, 1), (0, 0))).astype(bf16)
    if stride == 2:
        # Parity-decompose the padded input so the strided conv2 needs only
        # unit-stride slices inside the kernel.
        xin = (xpad.reshape(N, Ho + 1, 2, Wo + 1, 2, Cin)
                   .transpose(0, 2, 4, 1, 3, 5)
                   .reshape(N, 4, Ho + 1, Wo + 1, Cin))
        pad_scratch = pltpu.VMEM((4, Ho + 1, Wo + 1, D), jnp.float32)
    else:
        xin = xpad                                       # (N, H+2, W+2, Cin)
        pad_scratch = pltpu.VMEM((H + 2, W + 2, D), jnp.float32)

    xs = x[:, ::stride, ::stride, :]                     # shortcut input, f32

    projection = params["shortcut_w"] is not None
    # Kernel-ready weights (layout prep / bf16 cast; done once per call here,
    # would be done once at load time in a real deployment).
    consts = [params["w1_hwio"].reshape(9 * Cin, D).astype(bf16),
              params["prelu_alpha"],
              params["w2_hwio"].reshape(9 * D, D).astype(bf16),
              params["bn2_a"], params["bn2_b"],
              params["se_w1"].astype(bf16), params["se_w2"].astype(bf16)]
    if projection:
        consts += [params["shortcut_w"].astype(bf16),
                   params["sc_bn_a"], params["sc_bn_b"]]

    batched = [xin, xs]
    in_specs = []
    for a in batched:
        in_specs.append(pl.BlockSpec(
            (None,) + a.shape[1:],
            lambda n, nd=a.ndim: (n,) + (0,) * (nd - 1)))
    for c in consts:
        in_specs.append(pl.BlockSpec(
            c.shape, lambda n, nd=c.ndim: (0,) * nd))

    kernel = _make_fused_kernel(H, W, Cin, D, stride, projection)
    out = pl.pallas_call(
        kernel,
        out_shape=jax.ShapeDtypeStruct((N, Ho, Wo, D), jnp.float32),
        grid=(N,),
        in_specs=in_specs,
        out_specs=pl.BlockSpec((None, Ho, Wo, D), lambda n: (n, 0, 0, 0)),
        scratch_shapes=[pad_scratch],
        compiler_params=pltpu.CompilerParams(
            dimension_semantics=("parallel",)),
    )(*batched, *consts)
    return jnp.transpose(out, (0, 3, 1, 2))              # back to NCHW


# --------------------------------------------------------------------------
# Deterministic parameter init + pure-JAX reference
# --------------------------------------------------------------------------
def init_params(key, in_channel, depth, reduction=16):
    ks = jax.random.split(key, 8)

    def bn_ab(k, c):
        kg, kb, km, kv = jax.random.split(k, 4)
        gamma = 1.0 + 0.1 * jax.random.normal(kg, (c,), jnp.float32)
        beta = 0.1 * jax.random.normal(kb, (c,), jnp.float32)
        mean = 0.1 * jax.random.normal(km, (c,), jnp.float32)
        var = 0.5 + 0.5 * jax.random.uniform(kv, (c,), jnp.float32)
        a = gamma * lax.rsqrt(var + EPS)
        b = beta - mean * a
        return a.reshape(1, c), b.reshape(1, c)

    dr = max(1, depth // reduction)
    bn1_a, bn1_b = bn_ab(ks[0], in_channel)
    bn2_a, bn2_b = bn_ab(ks[1], depth)
    params = dict(
        bn1_a=bn1_a, bn1_b=bn1_b, bn2_a=bn2_a, bn2_b=bn2_b,
        w1_hwio=0.1 * jax.random.normal(ks[2], (3, 3, in_channel, depth), jnp.float32),
        w2_hwio=0.1 * jax.random.normal(ks[3], (3, 3, depth, depth), jnp.float32),
        prelu_alpha=jnp.full((1, depth), 0.25, jnp.float32),  # PyTorch PReLU default
        se_w1=(1.0 / float(depth) ** 0.5) *
              jax.random.normal(ks[4], (depth, dr), jnp.float32),
        se_w2=(1.0 / float(dr) ** 0.5) *
              jax.random.normal(ks[5], (dr, depth), jnp.float32),
        shortcut_w=None, sc_bn_a=None, sc_bn_b=None)
    if in_channel != depth:
        sc_a, sc_b = bn_ab(ks[6], depth)
        params.update(
            shortcut_w=0.1 * jax.random.normal(ks[7], (in_channel, depth), jnp.float32),
            sc_bn_a=sc_a, sc_bn_b=sc_b)
    return params


def _dot_bf16(a, b):
    return jnp.dot(a.astype(jnp.bfloat16), b.astype(jnp.bfloat16),
                   preferred_element_type=jnp.float32)


def reference_forward(x_nchw, params, stride):
    bf16 = jnp.bfloat16
    x = jnp.transpose(x_nchw, (0, 2, 3, 1)).astype(jnp.float32)
    dn = ("NHWC", "HWIO", "NHWC")
    xn = x * params["bn1_a"] + params["bn1_b"]
    y1 = lax.conv_general_dilated(
        xn.astype(bf16), params["w1_hwio"].astype(bf16), (1, 1),
        [(1, 1), (1, 1)], dimension_numbers=dn,
        preferred_element_type=jnp.float32)
    y1 = jnp.where(y1 > 0, y1, y1 * params["prelu_alpha"])
    y2 = lax.conv_general_dilated(
        y1.astype(bf16), params["w2_hwio"].astype(bf16), (stride, stride),
        [(1, 1), (1, 1)], dimension_numbers=dn,
        preferred_element_type=jnp.float32)
    res = y2 * params["bn2_a"] + params["bn2_b"]
    # SE block
    pooled = jnp.mean(res, axis=(1, 2))                        # (N, D)
    h = jnp.maximum(_dot_bf16(pooled, params["se_w1"]), 0.0)
    gate = 1.0 / (1.0 + jnp.exp(-_dot_bf16(h, params["se_w2"])))
    res = res * gate[:, None, None, :]
    # shortcut
    sc_in = x[:, ::stride, ::stride, :]
    if params["shortcut_w"] is None:
        sc = sc_in
    else:
        n, ho, wo, cin = sc_in.shape
        sc = _dot_bf16(sc_in.reshape(-1, cin),
                       params["shortcut_w"]).reshape(n, ho, wo, -1)
        sc = sc * params["sc_bn_a"] + params["sc_bn_b"]
    return jnp.transpose(res + sc, (0, 3, 1, 2))


# --------------------------------------------------------------------------
if __name__ == "__main__":
    key = jax.random.PRNGKey(0)
    configs = [
        dict(in_channel=16, depth=32, stride=2),   # projection shortcut (1x1 conv + BN)
        dict(in_channel=32, depth=32, stride=1),   # identity shortcut (MaxPool2d(1, s))
    ]
    N, H, W = 2, 16, 16
    all_ok = True
    for i, cfg in enumerate(configs):
        kp, kx = jax.random.split(jax.random.fold_in(key, i))
        params = init_params(kp, cfg["in_channel"], cfg["depth"])
        x = jax.random.normal(kx, (N, cfg["in_channel"], H, W), jnp.float32)  # NCHW
        out = jax.block_until_ready(
            bottleneck_ir_se_forward(x, params, cfg["stride"]))
        ref = jax.block_until_ready(reference_forward(x, params, cfg["stride"]))
        if out.shape != ref.shape or not bool(
                jnp.allclose(out, ref, atol=2e-2, rtol=2e-2)):
            all_ok = False
            print("MISMATCH for config", cfg,
                  "max_err=", float(jnp.max(jnp.abs(out - ref))))
    if not all_ok:
        raise SystemExit(1)
    print("KERNEL_OK")
</pallas_src>

<mosaic_0001>
module attributes {stable_mosaic.version = 11 : i64} {
  func.func @kernel(%arg0: i32, %arg1: memref<1x4x9x9x16xbf16, #tpu.memory_space<vmem>>, %arg2: memref<1x8x8x16xf32, #tpu.memory_space<vmem>>, %arg3: memref<144x32xbf16, #tpu.memory_space<vmem>>, %arg4: memref<1x32xf32, #tpu.memory_space<vmem>>, %arg5: memref<288x32xbf16, #tpu.memory_space<vmem>>, %arg6: memref<1x32xf32, #tpu.memory_space<vmem>>, %arg7: memref<1x32xf32, #tpu.memory_space<vmem>>, %arg8: memref<32x2xbf16, #tpu.memory_space<vmem>>, %arg9: memref<2x32xbf16, #tpu.memory_space<vmem>>, %arg10: memref<16x32xbf16, #tpu.memory_space<vmem>>, %arg11: memref<1x32xf32, #tpu.memory_space<vmem>>, %arg12: memref<1x32xf32, #tpu.memory_space<vmem>>, %arg13: memref<1x8x8x32xf32, #tpu.memory_space<vmem>>, %arg14: memref<4x9x9x32xf32, #tpu.memory_space<vmem>>) attributes {dimension_semantics = [#tpu.dimension_semantics<parallel>], iteration_bounds = array<i64: 2>, scalar_prefetch = 0 : i64, scratch_operands = 1 : i64, tpu.core_type = #tpu.core_type<tc>, window_params = [{transform_indices = @transform_0, window_bounds = array<i64: 1, 4, 9, 9, 16>}, {transform_indices = @transform_1, window_bounds = array<i64: 1, 8, 8, 16>}, {pipeline_mode = #tpu.pipeline_mode<synchronous>, transform_indices = @transform_2, window_bounds = array<i64: 144, 32>}, {pipeline_mode = #tpu.pipeline_mode<synchronous>, transform_indices = @transform_3, window_bounds = array<i64: 1, 32>}, {pipeline_mode = #tpu.pipeline_mode<synchronous>, transform_indices = @transform_4, window_bounds = array<i64: 288, 32>}, {pipeline_mode = #tpu.pipeline_mode<synchronous>, transform_indices = @transform_5, window_bounds = array<i64: 1, 32>}, {pipeline_mode = #tpu.pipeline_mode<synchronous>, transform_indices = @transform_6, window_bounds = array<i64: 1, 32>}, {pipeline_mode = #tpu.pipeline_mode<synchronous>, transform_indices = @transform_7, window_bounds = array<i64: 32, 2>}, {pipeline_mode = #tpu.pipeline_mode<synchronous>, transform_indices = @transform_8, window_bounds = array<i64: 2, 32>}, {pipeline_mode = #tpu.pipeline_mode<synchronous>, transform_indices = @transform_9, window_bounds = array<i64: 16, 32>}, {pipeline_mode = #tpu.pipeline_mode<synchronous>, transform_indices = @transform_10, window_bounds = array<i64: 1, 32>}, {pipeline_mode = #tpu.pipeline_mode<synchronous>, transform_indices = @transform_11, window_bounds = array<i64: 1, 32>}, {transform_indices = @transform_12, window_bounds = array<i64: 1, 8, 8, 32>}]} {
    %c0 = arith.constant 0 : index
    %c0_0 = arith.constant 0 : index
    %0 = vector.load %arg3[%c0, %c0_0] : memref<144x32xbf16, #tpu.memory_space<vmem>>, vector<144x32xbf16>
    %c0_1 = arith.constant 0 : index
    %c0_2 = arith.constant 0 : index
    %1 = vector.load %arg4[%c0_1, %c0_2] : memref<1x32xf32, #tpu.memory_space<vmem>>, vector<1x32xf32>
    %cst = arith.constant 0.000000e+00 : f32
    %2 = vector.broadcast %cst : f32 to vector<4x9x9x32xf32>
    %c0_3 = arith.constant 0 : index
    %c0_4 = arith.constant 0 : index
    %c0_5 = arith.constant 0 : index
    %c0_6 = arith.constant 0 : index
    %3 = vector.load %arg14[%c0_3, %c0_4, %c0_5, %c0_6] : memref<4x9x9x32xf32, #tpu.memory_space<vmem>>, vector<4x9x9x32xf32>
    tpu.vector_store %arg14[%c0_3, %c0_4, %c0_5, %c0_6], %2 {strides = array<i32>} : memref<4x9x9x32xf32, #tpu.memory_space<vmem>>, vector<4x9x9x32xf32>,
    %c0_7 = arith.constant 0 : index
    %c0_8 = arith.constant 0 : index
    %c0_9 = arith.constant 0 : index
    %c0_10 = arith.constant 0 : index
    %c0_11 = arith.constant 0 : index
    %4 = vector.load %arg1[%c0_7, %c0_8, %c0_9, %c0_10, %c0_11] : memref<1x4x9x9x16xbf16, #tpu.memory_space<vmem>>, vector<1x1x8x8x16xbf16>
    %5 = vector.shape_cast %4 : vector<1x1x8x8x16xbf16> to vector<8x8x16xbf16>
    %6 = vector.shape_cast %5 : vector<8x8x16xbf16> to vector<64x16xbf16>
    %c0_12 = arith.constant 0 : index
    %c1 = arith.constant 1 : index
    %c0_13 = arith.constant 0 : index
    %c0_14 = arith.constant 0 : index
    %c0_15 = arith.constant 0 : index
    %7 = vector.load %arg1[%c0_12, %c1, %c0_13, %c0_14, %c0_15] : memref<1x4x9x9x16xbf16, #tpu.memory_space<vmem>>, vector<1x1x8x8x16xbf16>
    %8 = vector.shape_cast %7 : vector<1x1x8x8x16xbf16> to vector<8x8x16xbf16>
    %9 = vector.shape_cast %8 : vector<8x8x16xbf16> to vector<64x16xbf16>
    %c0_16 = arith.constant 0 : index
    %c0_17 = arith.constant 0 : index
    %c0_18 = arith.constant 0 : index
    %c1_19 = arith.constant 1 : index
    %c0_20 = arith.constant 0 : index
    %10 = vector.load %arg1[%c0_16, %c0_17, %c0_18, %c1_19, %c0_20] : memref<1x4x9x9x16xbf16, #tpu.memory_space<vmem>>, vector<1x1x8x8x16xbf16>
    %11 = vector.shape_cast %10 : vector<1x1x8x8x16xbf16> to vector<8x8x16xbf16>
    %12 = vector.shape_cast %11 : vector<8x8x16xbf16> to vector<64x16xbf16>
    %c0_21 = arith.constant 0 : index
    %c2 = arith.constant 2 : index
    %c0_22 = arith.constant 0 : index
    %c0_23 = arith.constant 0 : index
    %c0_24 = arith.constant 0 : index
    %13 = vector.load %arg1[%c0_21, %c2, %c0_22, %c0_23, %c0_24] : memref<1x4x9x9x16xbf16, #tpu.memory_space<vmem>>, vector<1x1x8x8x16xbf16>
    %14 = vector.shape_cast %13 : vector<1x1x8x8x16xbf16> to vector<8x8x16xbf16>
    %15 = vector.shape_cast %14 : vector<8x8x16xbf16> to vector<64x16xbf16>
    %c0_25 = arith.constant 0 : index
    %c3 = arith.constant 3 : index
    %c0_26 = arith.constant 0 : index
    %c0_27 = arith.constant 0 : index
    %c0_28 = arith.constant 0 : index
    %16 = vector.load %arg1[%c0_25, %c3, %c0_26, %c0_27, %c0_28] : memref<1x4x9x9x16xbf16, #tpu.memory_space<vmem>>, vector<1x1x8x8x16xbf16>
    %17 = vector.shape_cast %16 : vector<1x1x8x8x16xbf16> to vector<8x8x16xbf16>
    %18 = vector.shape_cast %17 : vector<8x8x16xbf16> to vector<64x16xbf16>
    %c0_29 = arith.constant 0 : index
    %c2_30 = arith.constant 2 : index
    %c0_31 = arith.constant 0 : index
    %c1_32 = arith.constant 1 : index
    %c0_33 = arith.constant 0 : index
    %19 = vector.load %arg1[%c0_29, %c2_30, %c0_31, %c1_32, %c0_33] : memref<1x4x9x9x16xbf16, #tpu.memory_space<vmem>>, vector<1x1x8x8x16xbf16>
    %20 = vector.shape_cast %19 : vector<1x1x8x8x16xbf16> to vector<8x8x16xbf16>
    %21 = vector.shape_cast %20 : vector<8x8x16xbf16> to vector<64x16xbf16>
    %c0_34 = arith.constant 0 : index
    %c0_35 = arith.constant 0 : index
    %c1_36 = arith.constant 1 : index
    %c0_37 = arith.constant 0 : index
    %c0_38 = arith.constant 0 : index
    %22 = vector.load %arg1[%c0_34, %c0_35, %c1_36, %c0_37, %c0_38] : memref<1x4x9x9x16xbf16, #tpu.memory_space<vmem>>, vector<1x1x8x8x16xbf16>
    %23 = vector.shape_cast %22 : vector<1x1x8x8x16xbf16> to vector<8x8x16xbf16>
    %24 = vector.shape_cast %23 : vector<8x8x16xbf16> to vector<64x16xbf16>
    %c0_39 = arith.constant 0 : index
    %c1_40 = arith.constant 1 : index
    %c1_41 = arith.constant 1 : index
    %c0_42 = arith.constant 0 : index
    %c0_43 = arith.constant 0 : index
    %25 = vector.load %arg1[%c0_39, %c1_40, %c1_41, %c0_42, %c0_43] : memref<1x4x9x9x16xbf16, #tpu.memory_space<vmem>>, vector<1x1x8x8x16xbf16>
    %26 = vector.shape_cast %25 : vector<1x1x8x8x16xbf16> to vector<8x8x16xbf16>
    %27 = vector.shape_cast %26 : vector<8x8x16xbf16> to vector<64x16xbf16>
    %c0_44 = arith.constant 0 : index
    %c0_45 = arith.constant 0 : index
    %c1_46 = arith.constant 1 : index
    %c1_47 = arith.constant 1 : index
    %c0_48 = arith.constant 0 : index
    %28 = vector.load %arg1[%c0_44, %c0_45, %c1_46, %c1_47, %c0_48] : memref<1x4x9x9x16xbf16, #tpu.memory_space<vmem>>, vector<1x1x8x8x16xbf16>
    %29 = vector.shape_cast %28 : vector<1x1x8x8x16xbf16> to vector<8x8x16xbf16>
    %30 = vector.shape_cast %29 : vector<8x8x16xbf16> to vector<64x16xbf16>
    %31 = tpu.concatenate %6, %9, %12, %15, %18, %21, %24, %27, %30 in 1 : vector<64x16xbf16>, vector<64x16xbf16>, vector<64x16xbf16>, vector<64x16xbf16>, vector<64x16xbf16>, vector<64x16xbf16>, vector<64x16xbf16>, vector<64x16xbf16>, vector<64x16xbf16> -> vector<64x144xbf16>
    %cst_49 = arith.constant dense<0.000000e+00> : vector<64x32xf32>
    %32 = tpu.matmul %31, %0, %cst_49 {dimension_numbers = #tpu.dot_dimension_numbers<[1], [0], [0], [1], [0, 0, 1, 1], [], []>} : vector<64x144xbf16>, vector<144x32xbf16>, vector<64x32xf32> -> vector<64x32xf32>
    %cst_50 = arith.constant 0.000000e+00 : f32
    %33 = vector.broadcast %cst_50 : f32 to vector<64x32xf32>
    %34 = arith.cmpf ogt, %32, %33 : vector<64x32xf32>
    %35 = vector.broadcast %1 : vector<1x32xf32> to vector<64x32xf32>
    %36 = arith.mulf %32, %35 : vector<64x32xf32>
    %37 = arith.select %34, %32, %36 : vector<64x32xi1>, vector<64x32xf32>
    %38 = vector.shape_cast %37 : vector<64x32xf32> to vector<8x8x32xf32>
    %c3_51 = arith.constant 3 : index
    %c0_52 = arith.constant 0 : index
    %c0_53 = arith.constant 0 : index
    %c0_54 = arith.constant 0 : index
    %39 = vector.load %arg14[%c3_51, %c0_52, %c0_53, %c0_54] : memref<4x9x9x32xf32, #tpu.memory_space<vmem>>, vector<1x8x8x32xf32>
    %40 = vector.shape_cast %39 : vector<1x8x8x32xf32> to vector<8x8x32xf32>
    %41 = vector.shape_cast %38 : vector<8x8x32xf32> to vector<1x8x8x32xf32>
    tpu.vector_store %arg14[%c3_51, %c0_52, %c0_53, %c0_54], %41 {strides = array<i32>} : memref<4x9x9x32xf32, #tpu.memory_space<vmem>>, vector<1x8x8x32xf32>,
    %c0_55 = arith.constant 0 : index
    %c1_56 = arith.constant 1 : index
    %c0_57 = arith.constant 0 : index
    %c0_58 = arith.constant 0 : index
    %c0_59 = arith.constant 0 : index
    %42 = vector.load %arg1[%c0_55, %c1_56, %c0_57, %c0_58, %c0_59] : memref<1x4x9x9x16xbf16, #tpu.memory_space<vmem>>, vector<1x1x8x8x16xbf16>
    %43 = vector.shape_cast %42 : vector<1x1x8x8x16xbf16> to vector<8x8x16xbf16>
    %44 = vector.shape_cast %43 : vector<8x8x16xbf16> to vector<64x16xbf16>
    %c0_60 = arith.constant 0 : index
    %c0_61 = arith.constant 0 : index
    %c0_62 = arith.constant 0 : index
    %c1_63 = arith.constant 1 : index
    %c0_64 = arith.constant 0 : index
    %45 = vector.load %arg1[%c0_60, %c0_61, %c0_62, %c1_63, %c0_64] : memref<1x4x9x9x16xbf16, #tpu.memory_space<vmem>>, vector<1x1x8x8x16xbf16>
    %46 = vector.shape_cast %45 : vector<1x1x8x8x16xbf16> to vector<8x8x16xbf16>
    %47 = vector.shape_cast %46 : vector<8x8x16xbf16> to vector<64x16xbf16>
    %c0_65 = arith.constant 0 : index
    %c1_66 = arith.constant 1 : index
    %c0_67 = arith.constant 0 : index
    %c1_68 = arith.constant 1 : index
    %c0_69 = arith.constant 0 : index
    %48 = vector.load %arg1[%c0_65, %c1_66, %c0_67, %c1_68, %c0_69] : memref<1x4x9x9x16xbf16, #tpu.memory_space<vmem>>, vector<1x1x8x8x16xbf16>
    %49 = vector.shape_cast %48 : vector<1x1x8x8x16xbf16> to vector<8x8x16xbf16>
    %50 = vector.shape_cast %49 : vector<8x8x16xbf16> to vector<64x16xbf16>
    %c0_70 = arith.constant 0 : index
    %c3_71 = arith.constant 3 : index
    %c0_72 = arith.constant 0 : index
    %c0_73 = arith.constant 0 : index
    %c0_74 = arith.constant 0 : index
    %51 = vector.load %arg1[%c0_70, %c3_71, %c0_72, %c0_73, %c0_74] : memref<1x4x9x9x16xbf16, #tpu.memory_space<vmem>>, vector<1x1x8x8x16xbf16>
    %52 = vector.shape_cast %51 : vector<1x1x8x8x16xbf16> to vector<8x8x16xbf16>
    %53 = vector.shape_cast %52 : vector<8x8x16xbf16> to vector<64x16xbf16>
    %c0_75 = arith.constant 0 : index
    %c2_76 = arith.constant 2 : index
    %c0_77 = arith.constant 0 : index
    %c1_78 = arith.constant 1 : index
    %c0_79 = arith.constant 0 : index
    %54 = vector.load %arg1[%c0_75, %c2_76, %c0_77, %c1_78, %c0_79] : memref<1x4x9x9x16xbf16, #tpu.memory_space<vmem>>, vector<1x1x8x8x16xbf16>
    %55 = vector.shape_cast %54 : vector<1x1x8x8x16xbf16> to vector<8x8x16xbf16>
    %56 = vector.shape_cast %55 : vector<8x8x16xbf16> to vector<64x16xbf16>
    %c0_80 = arith.constant 0 : index
    %c3_81 = arith.constant 3 : index
    %c0_82 = arith.constant 0 : index
    %c1_83 = arith.constant 1 : index
    %c0_84 = arith.constant 0 : index
    %57 = vector.load %arg1[%c0_80, %c3_81, %c0_82, %c1_83, %c0_84] : memref<1x4x9x9x16xbf16, #tpu.memory_space<vmem>>, vector<1x1x8x8x16xbf16>
    %58 = vector.shape_cast %57 : vector<1x1x8x8x16xbf16> to vector<8x8x16xbf16>
    %59 = vector.shape_cast %58 : vector<8x8x16xbf16> to vector<64x16xbf16>
    %c0_85 = arith.constant 0 : index
    %c1_86 = arith.constant 1 : index
    %c1_87 = arith.constant 1 : index
    %c0_88 = arith.constant 0 : index
    %c0_89 = arith.constant 0 : index
    %60 = vector.load %arg1[%c0_85, %c1_86, %c1_87, %c0_88, %c0_89] : memref<1x4x9x9x16xbf16, #tpu.memory_space<vmem>>, vector<1x1x8x8x16xbf16>
    %61 = vector.shape_cast %60 : vector<1x1x8x8x16xbf16> to vector<8x8x16xbf16>
    %62 = vector.shape_cast %61 : vector<8x8x16xbf16> to vector<64x16xbf16>
    %c0_90 = arith.constant 0 : index
    %c0_91 = arith.constant 0 : index
    %c1_92 = arith.constant 1 : index
    %c1_93 = arith.constant 1 : index
    %c0_94 = arith.constant 0 : index
    %63 = vector.load %arg1[%c0_90, %c0_91, %c1_92, %c1_93, %c0_94] : memref<1x4x9x9x16xbf16, #tpu.memory_space<vmem>>, vector<1x1x8x8x16xbf16>
    %64 = vector.shape_cast %63 : vector<1x1x8x8x16xbf16> to vector<8x8x16xbf16>
    %65 = vector.shape_cast %64 : vector<8x8x16xbf16> to vector<64x16xbf16>
    %c0_95 = arith.constant 0 : index
    %c1_96 = arith.constant 1 : index
    %c1_97 = arith.constant 1 : index
    %c1_98 = arith.constant 1 : index
    %c0_99 = arith.constant 0 : index
    %66 = vector.load %arg1[%c0_95, %c1_96, %c1_97, %c1_98, %c0_99] : memref<1x4x9x9x16xbf16, #tpu.memory_space<vmem>>, vector<1x1x8x8x16xbf16>
    %67 = vector.shape_cast %66 : vector<1x1x8x8x16xbf16> to vector<8x8x16xbf16>
    %68 = vector.shape_cast %67 : vector<8x8x16xbf16> to vector<64x16xbf16>
    %69 = tpu.concatenate %44, %47, %50, %53, %56, %59, %62, %65, %68 in 1 : vector<64x16xbf16>, vector<64x16xbf16>, vector<64x16xbf16>, vector<64x16xbf16>, vector<64x16xbf16>, vector<64x16xbf16>, vector<64x16xbf16>, vector<64x16xbf16>, vector<64x16xbf16> -> vector<64x144xbf16>
    %cst_100 = arith.constant dense<0.000000e+00> : vector<64x32xf32>
    %70 = tpu.matmul %69, %0, %cst_100 {dimension_numbers = #tpu.dot_dimension_numbers<[1], [0], [0], [1], [0, 0, 1, 1], [], []>} : vector<64x144xbf16>, vector<144x32xbf16>, vector<64x32xf32> -> vector<64x32xf32>
    %cst_101 = arith.constant 0.000000e+00 : f32
    %71 = vector.broadcast %cst_101 : f32 to vector<64x32xf32>
    %72 = arith.cmpf ogt, %70, %71 : vector<64x32xf32>
    %73 = vector.broadcast %1 : vector<1x32xf32> to vector<64x32xf32>
    %74 = arith.mulf %70, %73 : vector<64x32xf32>
    %75 = arith.select %72, %70, %74 : vector<64x32xi1>, vector<64x32xf32>
    %76 = vector.shape_cast %75 : vector<64x32xf32> to vector<8x8x32xf32>
    %c2_102 = arith.constant 2 : index
    %c0_103 = arith.constant 0 : index
    %c1_104 = arith.constant 1 : index
    %c0_105 = arith.constant 0 : index
    %77 = vector.load %arg14[%c2_102, %c0_103, %c1_104, %c0_105] : memref<4x9x9x32xf32, #tpu.memory_space<vmem>>, vector<1x8x8x32xf32>
    %78 = vector.shape_cast %77 : vector<1x8x8x32xf32> to vector<8x8x32xf32>
    %79 = vector.shape_cast %76 : vector<8x8x32xf32> to vector<1x8x8x32xf32>
    tpu.vector_store %arg14[%c2_102, %c0_103, %c1_104, %c0_105], %79 {strides = array<i32>} : memref<4x9x9x32xf32, #tpu.memory_space<vmem>>, vector<1x8x8x32xf32>,
    %c0_106 = arith.constant 0 : index
    %c2_107 = arith.constant 2 : index
    %c0_108 = arith.constant 0 : index
    %c0_109 = arith.constant 0 : index
    %c0_110 = arith.constant 0 : index
    %80 = vector.load %arg1[%c0_106, %c2_107, %c0_108, %c0_109, %c0_110] : memref<1x4x9x9x16xbf16, #tpu.memory_space<vmem>>, vector<1x1x8x8x16xbf16>
    %81 = vector.shape_cast %80 : vector<1x1x8x8x16xbf16> to vector<8x8x16xbf16>
    %82 = vector.shape_cast %81 : vector<8x8x16xbf16> to vector<64x16xbf16>
    %c0_111 = arith.constant 0 : index
    %c3_112 = arith.constant 3 : index
    %c0_113 = arith.constant 0 : index
    %c0_114 = arith.constant 0 : index
    %c0_115 = arith.constant 0 : index
    %83 = vector.load %arg1[%c0_111, %c3_112, %c0_113, %c0_114, %c0_115] : memref<1x4x9x9x16xbf16, #tpu.memory_space<vmem>>, vector<1x1x8x8x16xbf16>
    %84 = vector.shape_cast %83 : vector<1x1x8x8x16xbf16> to vector<8x8x16xbf16>
    %85 = vector.shape_cast %84 : vector<8x8x16xbf16> to vector<64x16xbf16>
    %c0_116 = arith.constant 0 : index
    %c2_117 = arith.constant 2 : index
    %c0_118 = arith.constant 0 : index
    %c1_119 = arith.constant 1 : index
    %c0_120 = arith.constant 0 : index
    %86 = vector.load %arg1[%c0_116, %c2_117, %c0_118, %c1_119, %c0_120] : memref<1x4x9x9x16xbf16, #tpu.memory_space<vmem>>, vector<1x1x8x8x16xbf16>
    %87 = vector.shape_cast %86 : vector<1x1x8x8x16xbf16> to vector<8x8x16xbf16>
    %88 = vector.shape_cast %87 : vector<8x8x16xbf16> to vector<64x16xbf16>
    %c0_121 = arith.constant 0 : index
    %c0_122 = arith.constant 0 : index
    %c1_123 = arith.constant 1 : index
    %c0_124 = arith.constant 0 : index
    %c0_125 = arith.constant 0 : index
    %89 = vector.load %arg1[%c0_121, %c0_122, %c1_123, %c0_124, %c0_125] : memref<1x4x9x9x16xbf16, #tpu.memory_space<vmem>>, vector<1x1x8x8x16xbf16>
    %90 = vector.shape_cast %89 : vector<1x1x8x8x16xbf16> to vector<8x8x16xbf16>
    %91 = vector.shape_cast %90 : vector<8x8x16xbf16> to vector<64x16xbf16>
    %c0_126 = arith.constant 0 : index
    %c1_127 = arith.constant 1 : index
    %c1_128 = arith.constant 1 : index
    %c0_129 = arith.constant 0 : index
    %c0_130 = arith.constant 0 : index
    %92 = vector.load %arg1[%c0_126, %c1_127, %c1_128, %c0_129, %c0_130] : memref<1x4x9x9x16xbf16, #tpu.memory_space<vmem>>, vector<1x1x8x8x16xbf16>
    %93 = vector.shape_cast %92 : vector<1x1x8x8x16xbf16> to vector<8x8x16xbf16>
    %94 = vector.shape_cast %93 : vector<8x8x16xbf16> to vector<64x16xbf16>
    %c0_131 = arith.constant 0 : index
    %c0_132 = arith.constant 0 : index
    %c1_133 = arith.constant 1 : index
    %c1_134 = arith.constant 1 : index
    %c0_135 = arith.constant 0 : index
    %95 = vector.load %arg1[%c0_131, %c0_132, %c1_133, %c1_134, %c0_135] : memref<1x4x9x9x16xbf16, #tpu.memory_space<vmem>>, vector<1x1x8x8x16xbf16>
    %96 = vector.shape_cast %95 : vector<1x1x8x8x16xbf16> to vector<8x8x16xbf16>
    %97 = vector.shape_cast %96 : vector<8x8x16xbf16> to vector<64x16xbf16>
    %c0_136 = arith.constant 0 : index
    %c2_137 = arith.constant 2 : index
    %c1_138 = arith.constant 1 : index
    %c0_139 = arith.constant 0 : index
    %c0_140 = arith.constant 0 : index
    %98 = vector.load %arg1[%c0_136, %c2_137, %c1_138, %c0_139, %c0_140] : memref<1x4x9x9x16xbf16, #tpu.memory_space<vmem>>, vector<1x1x8x8x16xbf16>
    %99 = vector.shape_cast %98 : vector<1x1x8x8x16xbf16> to vector<8x8x16xbf16>
    %100 = vector.shape_cast %99 : vector<8x8x16xbf16> to vector<64x16xbf16>
    %c0_141 = arith.constant 0 : index
    %c3_142 = arith.constant 3 : index
    %c1_143 = arith.constant 1 : index
    %c0_144 = arith.constant 0 : index
    %c0_145 = arith.constant 0 : index
    %101 = vector.load %arg1[%c0_141, %c3_142, %c1_143, %c0_144, %c0_145] : memref<1x4x9x9x16xbf16, #tpu.memory_space<vmem>>, vector<1x1x8x8x16xbf16>
    %102 = vector.shape_cast %101 : vector<1x1x8x8x16xbf16> to vector<8x8x16xbf16>
    %103 = vector.shape_cast %102 : vector<8x8x16xbf16> to vector<64x16xbf16>
    %c0_146 = arith.constant 0 : index
    %c2_147 = arith.constant 2 : index
    %c1_148 = arith.constant 1 : index
    %c1_149 = arith.constant 1 : index
    %c0_150 = arith.constant 0 : index
    %104 = vector.load %arg1[%c0_146, %c2_147, %c1_148, %c1_149, %c0_150] : memref<1x4x9x9x16xbf16, #tpu.memory_space<vmem>>, vector<1x1x8x8x16xbf16>
    %105 = vector.shape_cast %104 : vector<1x1x8x8x16xbf16> to vector<8x8x16xbf16>
    %106 = vector.shape_cast %105 : vector<8x8x16xbf16> to vector<64x16xbf16>
    %107 = tpu.concatenate %82, %85, %88, %91, %94, %97, %100, %103, %106 in 1 : vector<64x16xbf16>, vector<64x16xbf16>, vector<64x16xbf16>, vector<64x16xbf16>, vector<64x16xbf16>, vector<64x16xbf16>, vector<64x16xbf16>, vector<64x16xbf16>, vector<64x16xbf16> -> vector<64x144xbf16>
    %cst_151 = arith.constant dense<0.000000e+00> : vector<64x32xf32>
    %108 = tpu.matmul %107, %0, %cst_151 {dimension_numbers = #tpu.dot_dimension_numbers<[1], [0], [0], [1], [0, 0, 1, 1], [], []>} : vector<64x144xbf16>, vector<144x32xbf16>, vector<64x32xf32> -> vector<64x32xf32>
    %cst_152 = arith.constant 0.000000e+00 : f32
    %109 = vector.broadcast %cst_152 : f32 to vector<64x32xf32>
    %110 = arith.cmpf ogt, %108, %109 : vector<64x32xf32>
    %111 = vector.broadcast %1 : vector<1x32xf32> to vector<64x32xf32>
    %112 = arith.mulf %108, %111 : vector<64x32xf32>
    %113 = arith.select %110, %108, %112 : vector<64x32xi1>, vector<64x32xf32>
    %114 = vector.shape_cast %113 : vector<64x32xf32> to vector<8x8x32xf32>
    %c1_153 = arith.constant 1 : index
    %c1_154 = arith.constant 1 : index
    %c0_155 = arith.constant 0 : index
    %c0_156 = arith.constant 0 : index
    %115 = vector.load %arg14[%c1_153, %c1_154, %c0_155, %c0_156] : memref<4x9x9x32xf32, #tpu.memory_space<vmem>>, vector<1x8x8x32xf32>
    %116 = vector.shape_cast %115 : vector<1x8x8x32xf32> to vector<8x8x32xf32>
    %117 = vector.shape_cast %114 : vector<8x8x32xf32> to vector<1x8x8x32xf32>
    tpu.vector_store %arg14[%c1_153, %c1_154, %c0_155, %c0_156], %117 {strides = array<i32>} : memref<4x9x9x32xf32, #tpu.memory_space<vmem>>, vector<1x8x8x32xf32>,
    %c0_157 = arith.constant 0 : index
    %c3_158 = arith.constant 3 : index
    %c0_159 = arith.constant 0 : index
    %c0_160 = arith.constant 0 : index
    %c0_161 = arith.constant 0 : index
    %118 = vector.load %arg1[%c0_157, %c3_158, %c0_159, %c0_160, %c0_161] : memref<1x4x9x9x16xbf16, #tpu.memory_space<vmem>>, vector<1x1x8x8x16xbf16>
    %119 = vector.shape_cast %118 : vector<1x1x8x8x16xbf16> to vector<8x8x16xbf16>
    %120 = vector.shape_cast %119 : vector<8x8x16xbf16> to vector<64x16xbf16>
    %c0_162 = arith.constant 0 : index
    %c2_163 = arith.constant 2 : index
    %c0_164 = arith.constant 0 : index
    %c1_165 = arith.constant 1 : index
    %c0_166 = arith.constant 0 : index
    %121 = vector.load %arg1[%c0_162, %c2_163, %c0_164, %c1_165, %c0_166] : memref<1x4x9x9x16xbf16, #tpu.memory_space<vmem>>, vector<1x1x8x8x16xbf16>
    %122 = vector.shape_cast %121 : vector<1x1x8x8x16xbf16> to vector<8x8x16xbf16>
    %123 = vector.shape_cast %122 : vector<8x8x16xbf16> to vector<64x16xbf16>
    %c0_167 = arith.constant 0 : index
    %c3_168 = arith.constant 3 : index
    %c0_169 = arith.constant 0 : index
    %c1_170 = arith.constant 1 : index
    %c0_171 = arith.constant 0 : index
    %124 = vector.load %arg1[%c0_167, %c3_168, %c0_169, %c1_170, %c0_171] : memref<1x4x9x9x16xbf16, #tpu.memory_space<vmem>>, vector<1x1x8x8x16xbf16>
    %125 = vector.shape_cast %124 : vector<1x1x8x8x16xbf16> to vector<8x8x16xbf16>
    %126 = vector.shape_cast %125 : vector<8x8x16xbf16> to vector<64x16xbf16>
    %c0_172 = arith.constant 0 : index
    %c1_173 = arith.constant 1 : index
    %c1_174 = arith.constant 1 : index
    %c0_175 = arith.constant 0 : index
    %c0_176 = arith.constant 0 : index
    %127 = vector.load %arg1[%c0_172, %c1_173, %c1_174, %c0_175, %c0_176] : memref<1x4x9x9x16xbf16, #tpu.memory_space<vmem>>, vector<1x1x8x8x16xbf16>
    %128 = vector.shape_cast %127 : vector<1x1x8x8x16xbf16> to vector<8x8x16xbf16>
    %129 = vector.shape_cast %128 : vector<8x8x16xbf16> to vector<64x16xbf16>
    %c0_177 = arith.constant 0 : index
    %c0_178 = arith.constant 0 : index
    %c1_179 = arith.constant 1 : index
    %c1_180 = arith.constant 1 : index
    %c0_181 = arith.constant 0 : index
    %130 = vector.load %arg1[%c0_177, %c0_178, %c1_179, %c1_180, %c0_181] : memref<1x4x9x9x16xbf16, #tpu.memory_space<vmem>>, vector<1x1x8x8x16xbf16>
    %131 = vector.shape_cast %130 : vector<1x1x8x8x16xbf16> to vector<8x8x16xbf16>
    %132 = vector.shape_cast %131 : vector<8x8x16xbf16> to vector<64x16xbf16>
    %c0_182 = arith.constant 0 : index
    %c1_183 = arith.constant 1 : index
    %c1_184 = arith.constant 1 : index
    %c1_185 = arith.constant 1 : index
    %c0_186 = arith.constant 0 : index
    %133 = vector.load %arg1[%c0_182, %c1_183, %c1_184, %c1_185, %c0_186] : memref<1x4x9x9x16xbf16, #tpu.memory_space<vmem>>, vector<1x1x8x8x16xbf16>
    %134 = vector.shape_cast %133 : vector<1x1x8x8x16xbf16> to vector<8x8x16xbf16>
    %135 = vector.shape_cast %134 : vector<8x8x16xbf16> to vector<64x16xbf16>
    %c0_187 = arith.constant 0 : index
    %c3_188 = arith.constant 3 : index
    %c1_189 = arith.constant 1 : index
    %c0_190 = arith.constant 0 : index
    %c0_191 = arith.constant 0 : index
    %136 = vector.load %arg1[%c0_187, %c3_188, %c1_189, %c0_190, %c0_191] : memref<1x4x9x9x16xbf16, #tpu.memory_space<vmem>>, vector<1x1x8x8x16xbf16>
    %137 = vector.shape_cast %136 : vector<1x1x8x8x16xbf16> to vector<8x8x16xbf16>
    %138 = vector.shape_cast %137 : vector<8x8x16xbf16> to vector<64x16xbf16>
    %c0_192 = arith.constant 0 : index
    %c2_193 = arith.constant 2 : index
    %c1_194 = arith.constant 1 : index
    %c1_195 = arith.constant 1 : index
    %c0_196 = arith.constant 0 : index
    %139 = vector.load %arg1[%c0_192, %c2_193, %c1_194, %c1_195, %c0_196] : memref<1x4x9x9x16xbf16, #tpu.memory_space<vmem>>, vector<1x1x8x8x16xbf16>
    %140 = vector.shape_cast %139 : vector<1x1x8x8x16xbf16> to vector<8x8x16xbf16>
    %141 = vector.shape_cast %140 : vector<8x8x16xbf16> to vector<64x16xbf16>
    %c0_197 = arith.constant 0 : index
    %c3_198 = arith.constant 3 : index
    %c1_199 = arith.constant 1 : index
    %c1_200 = arith.constant 1 : index
    %c0_201 = arith.constant 0 : index
    %142 = vector.load %arg1[%c0_197, %c3_198, %c1_199, %c1_200, %c0_201] : memref<1x4x9x9x16xbf16, #tpu.memory_space<vmem>>, vector<1x1x8x8x16xbf16>
    %143 = vector.shape_cast %142 : vector<1x1x8x8x16xbf16> to vector<8x8x16xbf16>
    %144 = vector.shape_cast %143 : vector<8x8x16xbf16> to vector<64x16xbf16>
    %145 = tpu.concatenate %120, %123, %126, %129, %132, %135, %138, %141, %144 in 1 : vector<64x16xbf16>, vector<64x16xbf16>, vector<64x16xbf16>, vector<64x16xbf16>, vector<64x16xbf16>, vector<64x16xbf16>, vector<64x16xbf16>, vector<64x16xbf16>, vector<64x16xbf16> -> vector<64x144xbf16>
    %cst_202 = arith.constant dense<0.000000e+00> : vector<64x32xf32>
    %146 = tpu.matmul %145, %0, %cst_202 {dimension_numbers = #tpu.dot_dimension_numbers<[1], [0], [0], [1], [0, 0, 1, 1], [], []>} : vector<64x144xbf16>, vector<144x32xbf16>, vector<64x32xf32> -> vector<64x32xf32>
    %cst_203 = arith.constant 0.000000e+00 : f32
    %147 = vector.broadcast %cst_203 : f32 to vector<64x32xf32>
    %148 = arith.cmpf ogt, %146, %147 : vector<64x32xf32>
    %149 = vector.broadcast %1 : vector<1x32xf32> to vector<64x32xf32>
    %150 = arith.mulf %146, %149 : vector<64x32xf32>
    %151 = arith.select %148, %146, %150 : vector<64x32xi1>, vector<64x32xf32>
    %152 = vector.shape_cast %151 : vector<64x32xf32> to vector<8x8x32xf32>
    %c0_204 = arith.constant 0 : index
    %c1_205 = arith.constant 1 : index
    %c1_206 = arith.constant 1 : index
    %c0_207 = arith.constant 0 : index
    %153 = vector.load %arg14[%c0_204, %c1_205, %c1_206, %c0_207] : memref<4x9x9x32xf32, #tpu.memory_space<vmem>>, vector<1x8x8x32xf32>
    %154 = vector.shape_cast %153 : vector<1x8x8x32xf32> to vector<8x8x32xf32>
    %155 = vector.shape_cast %152 : vector<8x8x32xf32> to vector<1x8x8x32xf32>
    tpu.vector_store %arg14[%c0_204, %c1_205, %c1_206, %c0_207], %155 {strides = array<i32>} : memref<4x9x9x32xf32, #tpu.memory_space<vmem>>, vector<1x8x8x32xf32>,
    %c0_208 = arith.constant 0 : index
    %c0_209 = arith.constant 0 : index
    %c0_210 = arith.constant 0 : index
    %c0_211 = arith.constant 0 : index
    %156 = vector.load %arg14[%c0_208, %c0_209, %c0_210, %c0_211] : memref<4x9x9x32xf32, #tpu.memory_space<vmem>>, vector<1x8x8x32xf32>
    %157 = vector.shape_cast %156 : vector<1x8x8x32xf32> to vector<8x8x32xf32>
    %158 = vector.shape_cast %157 : vector<8x8x32xf32> to vector<64x32xf32>
    %c1_212 = arith.constant 1 : index
    %c0_213 = arith.constant 0 : index
    %c0_214 = arith.constant 0 : index
    %c0_215 = arith.constant 0 : index
    %159 = vector.load %arg14[%c1_212, %c0_213, %c0_214, %c0_215] : memref<4x9x9x32xf32, #tpu.memory_space<vmem>>, vector<1x8x8x32xf32>
    %160 = vector.shape_cast %159 : vector<1x8x8x32xf32> to vector<8x8x32xf32>
    %161 = vector.shape_cast %160 : vector<8x8x32xf32> to vector<64x32xf32>
    %c0_216 = arith.constant 0 : index
    %c0_217 = arith.constant 0 : index
    %c1_218 = arith.constant 1 : index
    %c0_219 = arith.constant 0 : index
    %162 = vector.load %arg14[%c0_216, %c0_217, %c1_218, %c0_219] : memref<4x9x9x32xf32, #tpu.memory_space<vmem>>, vector<1x8x8x32xf32>
    %163 = vector.shape_cast %162 : vector<1x8x8x32xf32> to vector<8x8x32xf32>
    %164 = vector.shape_cast %163 : vector<8x8x32xf32> to vector<64x32xf32>
    %c2_220 = arith.constant 2 : index
    %c0_221 = arith.constant 0 : index
    %c0_222 = arith.constant 0 : index
    %c0_223 = arith.constant 0 : index
    %165 = vector.load %arg14[%c2_220, %c0_221, %c0_222, %c0_223] : memref<4x9x9x32xf32, #tpu.memory_space<vmem>>, vector<1x8x8x32xf32>
    %166 = vector.shape_cast %165 : vector<1x8x8x32xf32> to vector<8x8x32xf32>
    %167 = vector.shape_cast %166 : vector<8x8x32xf32> to vector<64x32xf32>
    %c3_224 = arith.constant 3 : index
    %c0_225 = arith.constant 0 : index
    %c0_226 = arith.constant 0 : index
    %c0_227 = arith.constant 0 : index
    %168 = vector.load %arg14[%c3_224, %c0_225, %c0_226, %c0_227] : memref<4x9x9x32xf32, #tpu.memory_space<vmem>>, vector<1x8x8x32xf32>
    %169 = vector.shape_cast %168 : vector<1x8x8x32xf32> to vector<8x8x32xf32>
    %170 = vector.shape_cast %169 : vector<8x8x32xf32> to vector<64x32xf32>
    %c2_228 = arith.constant 2 : index
    %c0_229 = arith.constant 0 : index
    %c1_230 = arith.constant 1 : index
    %c0_231 = arith.constant 0 : index
    %171 = vector.load %arg14[%c2_228, %c0_229, %c1_230, %c0_231] : memref<4x9x9x32xf32, #tpu.memory_space<vmem>>, vector<1x8x8x32xf32>
    %172 = vector.shape_cast %171 : vector<1x8x8x32xf32> to vector<8x8x32xf32>
    %173 = vector.shape_cast %172 : vector<8x8x32xf32> to vector<64x32xf32>
    %c0_232 = arith.constant 0 : index
    %c1_233 = arith.constant 1 : index
    %c0_234 = arith.constant 0 : index
    %c0_235 = arith.constant 0 : index
    %174 = vector.load %arg14[%c0_232, %c1_233, %c0_234, %c0_235] : memref<4x9x9x32xf32, #tpu.memory_space<vmem>>, vector<1x8x8x32xf32>
    %175 = vector.shape_cast %174 : vector<1x8x8x32xf32> to vector<8x8x32xf32>
    %176 = vector.shape_cast %175 : vector<8x8x32xf32> to vector<64x32xf32>
    %c1_236 = arith.constant 1 : index
    %c1_237 = arith.constant 1 : index
    %c0_238 = arith.constant 0 : index
    %c0_239 = arith.constant 0 : index
    %177 = vector.load %arg14[%c1_236, %c1_237, %c0_238, %c0_239] : memref<4x9x9x32xf32, #tpu.memory_space<vmem>>, vector<1x8x8x32xf32>
    %178 = vector.shape_cast %177 : vector<1x8x8x32xf32> to vector<8x8x32xf32>
    %179 = vector.shape_cast %178 : vector<8x8x32xf32> to vector<64x32xf32>
    %c0_240 = arith.constant 0 : index
    %c1_241 = arith.constant 1 : index
    %c1_242 = arith.constant 1 : index
    %c0_243 = arith.constant 0 : index
    %180 = vector.load %arg14[%c0_240, %c1_241, %c1_242, %c0_243] : memref<4x9x9x32xf32, #tpu.memory_space<vmem>>, vector<1x8x8x32xf32>
    %181 = vector.shape_cast %180 : vector<1x8x8x32xf32> to vector<8x8x32xf32>
    %182 = vector.shape_cast %181 : vector<8x8x32xf32> to vector<64x32xf32>
    %183 = tpu.concatenate %158, %161, %164, %167, %170, %173, %176, %179, %182 in 1 : vector<64x32xf32>, vector<64x32xf32>, vector<64x32xf32>, vector<64x32xf32>, vector<64x32xf32>, vector<64x32xf32>, vector<64x32xf32>, vector<64x32xf32>, vector<64x32xf32> -> vector<64x288xf32>
    %184 = arith.truncf %183 : vector<64x288xf32> to vector<64x288xbf16>
    %c0_244 = arith.constant 0 : index
    %c0_245 = arith.constant 0 : index
    %185 = vector.load %arg5[%c0_244, %c0_245] : memref<288x32xbf16, #tpu.memory_space<vmem>>, vector<288x32xbf16>
    %cst_246 = arith.constant dense<0.000000e+00> : vector<64x32xf32>
    %186 = tpu.matmul %184, %185, %cst_246 {dimension_numbers = #tpu.dot_dimension_numbers<[1], [0], [0], [1], [0, 0, 1, 1], [], []>} : vector<64x288xbf16>, vector<288x32xbf16>, vector<64x32xf32> -> vector<64x32xf32>
    %c0_247 = arith.constant 0 : index
    %c0_248 = arith.constant 0 : index
    %187 = vector.load %arg6[%c0_247, %c0_248] : memref<1x32xf32, #tpu.memory_space<vmem>>, vector<1x32xf32>
    %188 = vector.broadcast %187 : vector<1x32xf32> to vector<64x32xf32>
    %189 = arith.mulf %186, %188 : vector<64x32xf32>
    %c0_249 = arith.constant 0 : index
    %c0_250 = arith.constant 0 : index
    %190 = vector.load %arg7[%c0_249, %c0_250] : memref<1x32xf32, #tpu.memory_space<vmem>>, vector<1x32xf32>
    %191 = vector.broadcast %190 : vector<1x32xf32> to vector<64x32xf32>
    %192 = arith.addf %189, %191 : vector<64x32xf32>
    %cst_251 = arith.constant dense<0.000000e+00> : vector<32xf32>
    %193 = vector.multi_reduction <add>, %192, %cst_251 [0] : vector<64x32xf32> to vector<32xf32>
    %194 = vector.shape_cast %193 : vector<32xf32> to vector<1x32xf32>
    %cst_252 = arith.constant 6.400000e+01 : f32
    %195 = vector.broadcast %cst_252 : f32 to vector<1x32xf32>
    %196 = arith.divf %194, %195 : vector<1x32xf32>
    %197 = arith.truncf %196 : vector<1x32xf32> to vector<1x32xbf16>
    %c0_253 = arith.constant 0 : index
    %c0_254 = arith.constant 0 : index
    %198 = vector.load %arg8[%c0_253, %c0_254] : memref<32x2xbf16, #tpu.memory_space<vmem>>, vector<32x2xbf16>
    %cst_255 = arith.constant dense<0.000000e+00> : vector<1x2xf32>
    %199 = tpu.matmul %197, %198, %cst_255 {dimension_numbers = #tpu.dot_dimension_numbers<[1], [0], [0], [1], [0, 0, 1, 1], [], []>} : vector<1x32xbf16>, vector<32x2xbf16>, vector<1x2xf32> -> vector<1x2xf32>
    %cst_256 = arith.constant 0.000000e+00 : f32
    %200 = vector.broadcast %cst_256 : f32 to vector<1x2xf32>
    %201 = arith.maximumf %199, %200 : vector<1x2xf32>
    %202 = arith.truncf %201 : vector<1x2xf32> to vector<1x2xbf16>
    %c0_257 = arith.constant 0 : index
    %c0_258 = arith.constant 0 : index
    %203 = vector.load %arg9[%c0_257, %c0_258] : memref<2x32xbf16, #tpu.memory_space<vmem>>, vector<2x32xbf16>
    %cst_259 = arith.constant dense<0.000000e+00> : vector<1x32xf32>
    %204 = tpu.matmul %202, %203, %cst_259 {dimension_numbers = #tpu.dot_dimension_numbers<[1], [0], [0], [1], [0, 0, 1, 1], [], []>} : vector<1x2xbf16>, vector<2x32xbf16>, vector<1x32xf32> -> vector<1x32xf32>
    %cst_260 = arith.constant 0.000000e+00 : f32
    %205 = vector.broadcast %cst_260 : f32 to vector<1x32xf32>
    %206 = arith.subf %205, %204 : vector<1x32xf32>
    %207 = math.exp %206 : vector<1x32xf32>
    %cst_261 = arith.constant 1.000000e+00 : f32
    %208 = vector.broadcast %cst_261 : f32 to vector<1x32xf32>
    %209 = arith.addf %208, %207 : vector<1x32xf32>
    %cst_262 = arith.constant 1.000000e+00 : f32
    %210 = vector.broadcast %cst_262 : f32 to vector<1x32xf32>
    %211 = arith.divf %210, %209 : vector<1x32xf32>
    %212 = vector.broadcast %211 : vector<1x32xf32> to vector<64x32xf32>
    %213 = arith.mulf %192, %212 : vector<64x32xf32>
    %c0_263 = arith.constant 0 : index
    %c0_264 = arith.constant 0 : index
    %c0_265 = arith.constant 0 : index
    %c0_266 = arith.constant 0 : index
    %214 = vector.load %arg2[%c0_263, %c0_264, %c0_265, %c0_266] : memref<1x8x8x16xf32, #tpu.memory_space<vmem>>, vector<1x8x8x16xf32>
    %215 = vector.shape_cast %214 : vector<1x8x8x16xf32> to vector<8x8x16xf32>
    %216 = vector.shape_cast %215 : vector<8x8x16xf32> to vector<64x16xf32>
    %217 = arith.truncf %216 : vector<64x16xf32> to vector<64x16xbf16>
    %c0_267 = arith.constant 0 : index
    %c0_268 = arith.constant 0 : index
    %218 = vector.load %arg10[%c0_267, %c0_268] : memref<16x32xbf16, #tpu.memory_space<vmem>>, vector<16x32xbf16>
    %cst_269 = arith.constant dense<0.000000e+00> : vector<64x32xf32>
    %219 = tpu.matmul %217, %218, %cst_269 {dimension_numbers = #tpu.dot_dimension_numbers<[1], [0], [0], [1], [0, 0, 1, 1], [], []>} : vector<64x16xbf16>, vector<16x32xbf16>, vector<64x32xf32> -> vector<64x32xf32>
    %c0_270 = arith.constant 0 : index
    %c0_271 = arith.constant 0 : index
    %220 = vector.load %arg11[%c0_270, %c0_271] : memref<1x32xf32, #tpu.memory_space<vmem>>, vector<1x32xf32>
    %221 = vector.broadcast %220 : vector<1x32xf32> to vector<64x32xf32>
    %222 = arith.mulf %219, %221 : vector<64x32xf32>
    %c0_272 = arith.constant 0 : index
    %c0_273 = arith.constant 0 : index
    %223 = vector.load %arg12[%c0_272, %c0_273] : memref<1x32xf32, #tpu.memory_space<vmem>>, vector<1x32xf32>
    %224 = vector.broadcast %223 : vector<1x32xf32> to vector<64x32xf32>
    %225 = arith.addf %222, %224 : vector<64x32xf32>
    %226 = arith.addf %213, %225 : vector<64x32xf32>
    %227 = vector.shape_cast %226 : vector<64x32xf32> to vector<8x8x32xf32>
    %c0_274 = arith.constant 0 : index
    %c0_275 = arith.constant 0 : index
    %c0_276 = arith.constant 0 : index
    %c0_277 = arith.constant 0 : index
    %228 = vector.load %arg13[%c0_274, %c0_275, %c0_276, %c0_277] : memref<1x8x8x32xf32, #tpu.memory_space<vmem>>, vector<1x8x8x32xf32>
    %229 = vector.shape_cast %228 : vector<1x8x8x32xf32> to vector<8x8x32xf32>
    %230 = vector.shape_cast %227 : vector<8x8x32xf32> to vector<1x8x8x32xf32>
    tpu.vector_store %arg13[%c0_274, %c0_275, %c0_276, %c0_277], %230 {strides = array<i32>} : memref<1x8x8x32xf32, #tpu.memory_space<vmem>>, vector<1x8x8x32xf32>,
    return
  }
  func.func @transform_0(%arg0: i32) -> (i32, i32, i32, i32, i32) {
    %c0_i32 = arith.constant 0 : i32
    %c0_i32_0 = arith.constant 0 : i32
    %c0_i32_1 = arith.constant 0 : i32
    %c0_i32_2 = arith.constant 0 : i32
    %c0_i32_3 = arith.constant 0 : i32
    return %arg0, %c0_i32, %c0_i32_0, %c0_i32_1, %c0_i32_2 : i32, i32, i32, i32, i32
  }
  func.func @transform_1(%arg0: i32) -> (i32, i32, i32, i32) {
    %c0_i32 = arith.constant 0 : i32
    %c0_i32_0 = arith.constant 0 : i32
    %c0_i32_1 = arith.constant 0 : i32
    %c0_i32_2 = arith.constant 0 : i32
    return %arg0, %c0_i32, %c0_i32_0, %c0_i32_1 : i32, i32, i32, i32
  }
  func.func @transform_2(%arg0: i32) -> (i32, i32) {
    %c0_i32 = arith.constant 0 : i32
    %c0_i32_0 = arith.constant 0 : i32
    %c0_i32_1 = arith.constant 0 : i32
    return %c0_i32, %c0_i32_0 : i32, i32
  }
  func.func @transform_3(%arg0: i32) -> (i32, i32) {
    %c0_i32 = arith.constant 0 : i32
    %c0_i32_0 = arith.constant 0 : i32
    %c0_i32_1 = arith.constant 0 : i32
    return %c0_i32, %c0_i32_0 : i32, i32
  }
  func.func @transform_4(%arg0: i32) -> (i32, i32) {
    %c0_i32 = arith.constant 0 : i32
    %c0_i32_0 = arith.constant 0 : i32
    %c0_i32_1 = arith.constant 0 : i32
    return %c0_i32, %c0_i32_0 : i32, i32
  }
  func.func @transform_5(%arg0: i32) -> (i32, i32) {
    %c0_i32 = arith.constant 0 : i32
    %c0_i32_0 = arith.constant 0 : i32
    %c0_i32_1 = arith.constant 0 : i32
    return %c0_i32, %c0_i32_0 : i32, i32
  }
  func.func @transform_6(%arg0: i32) -> (i32, i32) {
    %c0_i32 = arith.constant 0 : i32
    %c0_i32_0 = arith.constant 0 : i32
    %c0_i32_1 = arith.constant 0 : i32
    return %c0_i32, %c0_i32_0 : i32, i32
  }
  func.func @transform_7(%arg0: i32) -> (i32, i32) {
    %c0_i32 = arith.constant 0 : i32
    %c0_i32_0 = arith.constant 0 : i32
    %c0_i32_1 = arith.constant 0 : i32
    return %c0_i32, %c0_i32_0 : i32, i32
  }
  func.func @transform_8(%arg0: i32) -> (i32, i32) {
    %c0_i32 = arith.constant 0 : i32
    %c0_i32_0 = arith.constant 0 : i32
    %c0_i32_1 = arith.constant 0 : i32
    return %c0_i32, %c0_i32_0 : i32, i32
  }
  func.func @transform_9(%arg0: i32) -> (i32, i32) {
    %c0_i32 = arith.constant 0 : i32
    %c0_i32_0 = arith.constant 0 : i32
    %c0_i32_1 = arith.constant 0 : i32
    return %c0_i32, %c0_i32_0 : i32, i32
  }
  func.func @transform_10(%arg0: i32) -> (i32, i32) {
    %c0_i32 = arith.constant 0 : i32
    %c0_i32_0 = arith.constant 0 : i32
    %c0_i32_1 = arith.constant 0 : i32
    return %c0_i32, %c0_i32_0 : i32, i32
  }
  func.func @transform_11(%arg0: i32) -> (i32, i32) {
    %c0_i32 = arith.constant 0 : i32
    %c0_i32_0 = arith.constant 0 : i32
    %c0_i32_1 = arith.constant 0 : i32
    return %c0_i32, %c0_i32_0 : i32, i32
  }
  func.func @transform_12(%arg0: i32) -> (i32, i32, i32, i32) {
    %c0_i32 = arith.constant 0 : i32
    %c0_i32_0 = arith.constant 0 : i32
    %c0_i32_1 = arith.constant 0 : i32
    %c0_i32_2 = arith.constant 0 : i32
    return %arg0, %c0_i32, %c0_i32_0, %c0_i32_1 : i32, i32, i32, i32
  }
}

</mosaic_0001>

<bundles_post_ra>
// kernel: tpu_custom_call.1
= control target key start
LH: loop header
LB: loop body
LE: loop exit
PB: predicated region body
PF: predicated region fallthrough
CT: control target
= control target key end

     0   :  { %s8580_s0 = inlined_call_operand.vmem [shape: bf16[2,4,9,9,16], index: 0, kind: input, shape index: {}]   ;;  %s8581_s1 = inlined_call_operand.vmem [shape: f32[2,8,8,16], index: 1, kind: input, shape index: {}]   ;;  %s8582_s2 = inlined_call_operand.vmem [shape: bf16[144,32], index: 2, kind: input, shape index: {}]   ;;  %s8583_s3 = inlined_call_operand.vmem [shape: f32[1,32], index: 3, kind: input, shape index: {}]   ;;  %s8584_s4 = inlined_call_operand.vmem [shape: bf16[288,32], index: 4, kind: input, shape index: {}]   ;;  %s8585_s5 = inlined_call_operand.vmem [shape: f32[1,32], index: 5, kind: input, shape index: {}]   ;;  %s8586_s6 = inlined_call_operand.vmem [shape: f32[1,32], index: 6, kind: input, shape index: {}]   ;;  %s8587_s7 = inlined_call_operand.vmem [shape: bf16[32,2], index: 7, kind: input, shape index: {}]   ;;  %s8588_s8 = inlined_call_operand.vmem [shape: bf16[2,32], index: 8, kind: input, shape index: {}]   ;;  %s8589_s9 = inlined_call_operand.vmem [shape: bf16[16,32], index: 9, kind: input, shape index: {}]   ;;  %s8590_s10 = inlined_call_operand.vmem [shape: f32[1,32], index: 10, kind: input, shape index: {}]   ;;  %s8591_s11 = inlined_call_operand.vmem [shape: f32[1,32], index: 11, kind: input, shape index: {}]   ;;  %s8592_s12 = inlined_call_operand.hbm [shape: f32[2,8,8,32], index: 12, kind: output, shape index: {}]  }
   0x1   :  { %8607 = sst [smem:[#allocation6_spill]] %s8580_s0 }
   0x2   :  { %8608 = sst [smem:[#allocation7_spill]] %s8582_s2 }
   0x3   :  { %8609 = sst [smem:[#allocation8_spill]] %s8583_s3 }
   0x4   :  { %17 = vsyncpa [#allocation4], 0 }
   0x5   :  { %19 = vsyncpa [#allocation4 + $0x1], 0  ;;  %s6500_s21 = smov 0   ;;  %s6502_s22 = smov 0  }
   0x6   :  { %s6504_s23 = smov 0   ;;  %s6506_s24 = smov 0  }
   0x7 LB: > { %s6521_s25 = sadd.s32 4294967295, %s6422_s24   ;;  %s5316_s26 = sadd.s32 4294967294, %s6422_s24   ;;  %s6422_s24 = sphi %s6506_s24, %s8627_s24   ;;  %s6418_s23 = sphi %s6504_s23, %s8626_s23   ;;  %s6414_s22 = sphi %s6502_s22, %s8625_s22   ;;  %s6410_s21 = sphi %s6500_s21, %s8624_s21  }
   0x8   : > { %s6525_s27 = sadd.s32 1, %s6422_s24   ;;  %s294_s28 = sadd.s32 1, %s6418_s23 }
   0x9   : > { %s291_s29 = ssub.s32 %s6422_s24, %s6525_s27  ;;  %p304_p0 = scmp.ne.s32.totalorder %s6418_s23, %s6414_s22 }
   0xa   : > { %p292_p1 = scmp.eq.s32.totalorder %s291_s29, 0  ;;  %p305_p2 = scmp.eq.s32.totalorder %s6521_s25, 1 }
   0xb   : > { %p310_p3 = scmp.ne.s32.totalorder %s6414_s22, %s6410_s21  ;;  %p311_p4 = scmp.eq.s32.totalorder %s5316_s26, 1 }
   0xc   : > { %s6536_s30 = scalar_select %p292_p1, %s6418_s23, %s294_s28  }
   0xd   : > { %p6538_p5 = por %p305_p2, %p304_p0  ;;  %p6542_p6 = por %p311_p4, %p310_p3 }
   0xe   : > { %p5319_p7 = scmp.ge.s32.totalorder %s6422_s24, 1  ;;  %p375_p8 = scmp.lt.s32.totalorder %s6422_s24, 3 }
  0x10   : > { %p376_p9 = pnand %p5319_p7, %p375_p8 }
  0x11   : > { %p422_p10 = scmp.lt.s32.totalorder (!%p376_p9), %s6521_s25, 1  ;;  %s8612_s0 = sld [smem:[#allocation6_spill]] (!%p376_p9) }
  0x12   : > { %379 = sbr.rel (%p376_p9) target bundleno = 1307 (0x51b), region = 68  ;;  %s8593_s20 = smov (!%p376_p9), 48  }
  0x13   : > { %s8597_s26 = smov (!%p376_p9), 16   ;;  %s8601_s28 = smov (!%p376_p9), 64  }
  0x14   : > { %s8605_s29 = smov (!%p376_p9), 96   ;;  %s8595_s17 = smov (!%p376_p9), 32  }
  0x15   : > { %s8603_s18 = smov (!%p376_p9), 80   ;;  %s8615_s2 = sld [smem:[#allocation7_spill]] (!%p376_p9) }
  0x16   : > { %s8623_s3 = sld [smem:[#allocation8_spill]] (!%p376_p9) }
  0x17   : > { %s6550_s15 = scalar_select %p422_p10, %s6521_s25, 1  ;;  %vm551_vm0 = vsmask.f32 3328  ;;  %vm552_vm1 = vsmask.f32 7440  ;;  %vm1154_vm3 = vcmask 130048  }
  0x18   : > { %vm6589_vm2 = vmor %vm551_vm0, %vm552_vm1  ;;  %vm452_vm4 = vcmask 261120   ;;  %vm1175_vm5 = vcmask 392192   ;;  %vm1184_vm6 = vcmask 523264   ;;  %vm1193_vm7 = vcmask 654336  }
  0x19   : > { %s6179_s16 = smul.u32 288, %s6550_s15  ;;  %vm1202_vm8 = vcmask 785408   ;;  %vm1211_vm9 = vcmask 916480   ;;  %vm454_vm14 = vcmask 253952  }
  0x1b   : > { %s6556_s19 = scalar_lea.vmem %s8612_s0, %s6179_s16  ;;  %s8599_s16 = smov 112  }
  0x1c   : > { %v5414_v0 = vld [vmem:[%s6556_s19 + $0x90] sm:$0xf]  ;;  %v6085_v1 = vld [vmem:[%s6556_s19 + $0x94] sm:$0xf0]  ;;  %v5398_v2 = vld [vmem:[%s6556_s19 + $0x48] sm:$0xf] }
  0x1d   : > { %v5415_v3 = vor.u32 %v6085_v1, %v5414_v0  ;;  %v6081_v4 = vld [vmem:[%s6556_s19 + $0x4c] sm:$0xf0]  ;;  %v5430_v6 = vld [vmem:[%s6556_s19 + $0xd8] sm:$0xf]  ;;  %v6089_v7 = vld [vmem:[%s6556_s19 + $0xdc] sm:$0xf0] }
  0x1e   : > { %v5399_v5 = vor.u32 %v6081_v4, %v5398_v2  ;;  %v5462_v8 = vld [vmem:[%s6556_s19 + $0x50] sm:$0xf]  ;;  %v6097_v9 = vld [vmem:[%s6556_s19 + $0x54] sm:$0xf0]  ;;  %v526_v10 = vld [vmem:[%s6556_s19] sm:$0xf]  ;;  %v5431_v23 = vor.u32 %v6089_v7, %v5430_v6 }
  0x1f   : > { %1030 = vrot.lane.b32.xlu1 %v5415_v3, %s8593_s20  ;;  %v527_v11 = vld [vmem:[%s6556_s19 + $0x8] sm:$0xf]  ;;  %v543_v12 = vld [vmem:[%s6556_s19 + $0x4] sm:$0x1]  ;;  %v544_v13 = vld [vmem:[%s6556_s19 + $0xc] sm:$0x1]  ;;  %v5463_v34 = vor.u32 %v6097_v9, %v5462_v8 }
  0x20   : > { %982 = vrot.lane.b32.xlu0 %v5399_v5, %s8597_s26  ;;  %v555_v14 = vshrl.u32 %v526_v10, 16  ;;  %v558_v15 = vshll.u32 %v526_v10, 16  ;;  %v6573_v16 = vld [vmem:[%s6556_s19 + $0x58] sm:$0xf]  ;;  %v6576_v17 = vld [vmem:[%s6556_s19 + $0x5c] sm:$0xf0] }
  0x21   : > { %v564_v18 = vshll.u32 %v543_v12, 16  ;;  %v569_v19 = vshrl.u32 %v527_v11, 16  ;;  %v572_v20 = vshll.u32 %v527_v11, 16  ;;  %v578_v21 = vshll.u32 %v544_v13, 16  ;;  %v6579_v22 = vld [vmem:[%s6556_s19 + $0xe8] sm:$0xf] }
  0x22   : > { %v557_v24 = vrot.slane %v555_v14, 4  ;;  %v560_v25 = vrot.slane %v558_v15, 5  ;;  %v6582_v26 = vld [vmem:[%s6556_s19 + $0xec] sm:$0xf0]  ;;  %v6585_v27 = vld [vmem:[%s6556_s19 + $0xa0] sm:$0xf]  ;;  %v5403_v44 = vor.u32 %v6576_v17, %v6573_v16 }
  0x23   : > { %v566_v29 = vrot.slane %v564_v18, 5  ;;  %v571_v30 = vrot.slane %v569_v19, 4  ;;  %v574_v31 = vrot.slane %v572_v20, 5  ;;  %v580_v32 = vrot.slane %v578_v21, 5  ;;  %v6594_v33 = vld [vmem:[%s6556_s19 + $0xa4] sm:$0xf0] }
  0x24   : > { %v561_v35 = vor.u32 %v560_v25, %v557_v24  ;;  %v5446_v36 = vld [vmem:[%s6556_s19 + $0x8] sm:$0xf]  ;;  %v6093_v37 = vld [vmem:[%s6556_s19 + $0xc] sm:$0xf0]  ;;  %v6599_v38 = vld [vmem:[%s6556_s19 + $0x60] sm:$0xf]  ;;  %v5435_v46 = vor.u32 %v6582_v26, %v6579_v22  ;;  %v5419_v50 = vor.u32 %v6594_v33, %v6585_v27 }
  0x25   : > { %v575_v39 = vor.u32 %v574_v31, %v571_v30  ;;  %v5447_v40 = vor.u32 %v6093_v37, %v5446_v36  ;;  %v6602_v41 = vld [vmem:[%s6556_s19 + $0x64] sm:$0xf0]  ;;  %v6605_v42 = vld [vmem:[%s6556_s19 + $0x18] sm:$0xf]  ;;  %v6608_v43 = vld [vmem:[%s6556_s19 + $0x1c] sm:$0xf0] }
  0x26   : > { %v562_v45 = vrot.slane %v561_v35, 4  ;;  %v5332_v47 = vld [vmem:[%s6556_s19 + $0x90] sm:$0xf]  ;;  %v5333_v48 = vld [vmem:[%s6556_s19 + $0x98] sm:$0xf]  ;;  %v5467_v51 = vor.u32 %v6602_v41, %v6599_v38  ;;  %v5451_v3 = vor.u32 %v6608_v43, %v6605_v42  ;;  %s8620_s0 = smov 16  }
  0x27   : > { %1058 = vrot.lane.b32.xlu1 %v5431_v23, %s8601_s28  ;;  %v576_v49 = vrot.slane %v575_v39, 4  ;;  %1106 = vrot.lane.b32.xlu2 %v5447_v40, %s8605_s29  ;;  %v5348_v52 = vld [vmem:[%s6556_s19 + $0x94] sm:$0x1]  ;;  %v5349_v53 = vld [vmem:[%s6556_s19 + $0x9c] sm:$0x1]  ;;  %v693_v54 = vshrl.u32 %v5332_v47, 16 }
  0x28   : > { %1134 = vrot.lane.b32.xlu0 %v5463_v34, %s8599_s16  ;;  %v567_v55 = vsel %vm6589_vm2, %v562_v45, %v566_v29  ;;  %v696_v56 = vshll.u32 %v5332_v47, 16  ;;  %v702_v57 = vshll.u32 %v5348_v52, 16  ;;  %v707_v58 = vshrl.u32 %v5333_v48, 16  ;;  %v6628_v59 = vld [vmem:[%s6556_s19 + $0xf8] sm:$0xf] }
  0x29   : > { %v581_v60 = vsel %vm6589_vm2, %v576_v49, %v580_v32  ;;  %v990_v61 = vunpack.c.l.b16 %v567_v55  ;;  %v695_v62 = vrot.slane %v693_v54, 4  ;;  %v710_v63 = vshll.u32 %v5333_v48, 16  ;;  %v6633_v0 = vld [vmem:[%s6556_s19 + $0xfc] sm:$0xf0]  ;;  %v5520_v1 = vld [vmem:[%s6556_s19 + $0x68] sm:$0xf] }
  0x2a   : > { %v991_v2 = vunpack.c.l.b16 %v581_v60  ;;  %v698_v4 = vrot.slane %v696_v56, 5  ;;  %v709_v5 = vrot.slane %v707_v58, 4  ;;  %v5521_v6 = vld [vmem:[%s6556_s19 + $0x70] sm:$0xf]  ;;  %v704_v7 = vrot.slane %v702_v57, 5 }
  0x2b   : > { %v712_v8 = vrot.slane %v710_v63, 5  ;;  %v716_v9 = vshll.u32 %v5349_v53, 16  ;;  %v5623_v10 = vor.u32 %v6633_v0, %v6628_v59  ;;  %v5528_v11 = vld [vmem:[%s6556_s19 + $0x6c] sm:$0x1]  ;;  %v5529_v14 = vld [vmem:[%s6556_s19 + $0x74] sm:$0x1] }
  0x2c   : > { %v998_v12 = vpack.c.b16 %v991_v2, %v990_v61  ;;  %v699_v13 = vor.u32 %v698_v4, %v695_v62  ;;  %v1585_v15 = vshrl.u32 %v5520_v1, 16  ;;  %v1588_v16 = vshll.u32 %v5520_v1, 16  ;;  %v528_v21 = vld [vmem:[%s6556_s19 + $0x10] sm:$0xf]  ;;  %v529_v39 = vld [vmem:[%s6556_s19 + $0x18] sm:$0xf] }
  0x2d   : > { %v713_v17 = vor.u32 %v712_v8, %v709_v5  ;;  %v718_v18 = vrot.slane %v716_v9, 5  ;;  %v1594_v19 = vshll.u32 %v5528_v11, 16  ;;  %v1599_v20 = vshrl.u32 %v5521_v6, 16  ;;  %v545_v40 = vld [vmem:[%s6556_s19 + $0x14] sm:$0x1] }
  0x2e   : > { %v700_v23 = vrot.slane %v699_v13, 4  ;;  %v1587_v24 = vrot.slane %v1585_v15, 4  ;;  %v1590_v25 = vrot.slane %v1588_v16, 5  ;;  %v1602_v29 = vshll.u32 %v5521_v6, 16  ;;  %v546_v49 = vld [vmem:[%s6556_s19 + $0x1c] sm:$0x1] }
  0x2f   : > { %984 = vrot.lane.b32.xlu1 %v5403_v44, %s8597_s26  ;;  %v714_v30 = vrot.slane %v713_v17, 4  ;;  %v1596_v31 = vrot.slane %v1594_v19, 5  ;;  %v1601_v32 = vrot.slane %v1599_v20, 4  ;;  %v1608_v34 = vshll.u32 %v5529_v14, 16  ;;  %v6654_v57 = vld [vmem:[%s6556_s19 + $0x70] sm:$0xf] }
  0x30   : > { %1002 = vrot.lane.b32.xlu0 %v998_v12, %s8595_s17  ;;  %v705_v35 = vsel %vm6589_vm2, %v700_v23, %v704_v7  ;;  %v1591_v36 = vor.u32 %v1590_v25, %v1587_v24  ;;  %v1604_v37 = vrot.slane %v1602_v29, 5  ;;  %v583_v45 = vshrl.u32 %v528_v21, 16  ;;  %v6657_v63 = vld [vmem:[%s6556_s19 + $0x74] sm:$0xf0]  ;;  %v5537_v12 = vld [vmem:[%s6556_s19 + $0x100] sm:$0xf] }
  0x31   : > { %v719_v44 = vsel %vm6589_vm2, %v714_v30, %v718_v18  ;;  %v1066_v47 = vunpack.c.l.b16 %v705_v35  ;;  %v1610_v48 = vrot.slane %v1608_v34, 5  ;;  %v586_v52 = vshll.u32 %v528_v21, 16  ;;  %v5536_v6 = vld [vmem:[%s6556_s19 + $0xf8] sm:$0xf]  ;;  %v5560_v13 = vld [vmem:[%s6556_s19 + $0xfc] sm:$0x1] }
  0x32   : > { %v1067_v53 = vunpack.c.l.b16 %v719_v44  ;;  %v1592_v54 = vrot.slane %v1591_v36, 4  ;;  %v1605_v55 = vor.u32 %v1604_v37, %v1601_v32  ;;  %v585_v56 = vrot.slane %v583_v45, 4  ;;  %v5561_v20 = vld [vmem:[%s6556_s19 + $0x104] sm:$0x1]  ;;  %v5335_v34 = vld [vmem:[%s6556_s19 + $0xa8] sm:$0xf] }
  0x33   : > { %v588_v58 = vrot.slane %v586_v52, 5  ;;  %v592_v60 = vshll.u32 %v545_v40, 16  ;;  %v597_v61 = vshrl.u32 %v529_v39, 16  ;;  %v600_v62 = vshll.u32 %v529_v39, 16  ;;  %v5350_v35 = vld [vmem:[%s6556_s19 + $0xa4] sm:$0x1] }
  0x34   : > { %v1074_v1 = vpack.c.b16 %v1067_v53, %v1066_v47  ;;  %v1597_v2 = vsel %vm6589_vm2, %v1592_v54, %v1596_v31  ;;  %v1606_v4 = vrot.slane %v1605_v55, 4  ;;  %v606_v5 = vshll.u32 %v546_v49, 16  ;;  %v5334_v31 = vld [vmem:[%s6556_s19 + $0xa0] sm:$0xf]  ;;  %v1401_v59 = vld [vmem:[%s6556_s19 + $0x24] sm:$0x1] }
  0x35   : > { %v6662_v7 = vunpack.c.l.b16 %v1597_v2  ;;  %v589_v8 = vor.u32 %v588_v58, %v585_v56  ;;  %v594_v9 = vrot.slane %v592_v60, 5  ;;  %v599_v11 = vrot.slane %v597_v61, 4  ;;  %v5351_v56 = vld [vmem:[%s6556_s19 + $0xac] sm:$0x1]  ;;  %v530_v58 = vld [vmem:[%s6556_s19 + $0x20] sm:$0xf] }
  0x36   : > { %1078 = vrot.lane.b32.xlu2 %v1074_v1, %s8603_s18  ;;  %v1611_v14 = vsel %vm6589_vm2, %v1606_v4, %v1610_v48  ;;  %v602_v15 = vrot.slane %v600_v62, 5  ;;  %v608_v16 = vrot.slane %v606_v5, 5  ;;  %v5639_v17 = vor.u32 %v6657_v63, %v6654_v57  ;;  %v547_v2 = vld [vmem:[%s6556_s19 + $0x24] sm:$0x1] }
  0x37   : > { %1060 = vrot.lane.b32.xlu1 %v5435_v46, %s8601_s28  ;;  %v6675_v18 = vunpack.c.l.b16 %v1611_v14  ;;  %v590_v19 = vrot.slane %v589_v8, 4  ;;  %v1841_v21 = vshrl.u32 %v5536_v6, 16  ;;  %v1844_v23 = vshll.u32 %v5536_v6, 16 }
  0x38   : > { %1032 = vrot.lane.b32.xlu0 %v5419_v50, %s8593_s20  ;;  %v603_v24 = vor.u32 %v602_v15, %v599_v11  ;;  %v1850_v25 = vshll.u32 %v5560_v13, 16  ;;  %v1855_v29 = vshrl.u32 %v5537_v12, 16  ;;  %v1858_v30 = vshll.u32 %v5537_v12, 16  ;;  %v531_v13 = vld [vmem:[%s6556_s19 + $0x28] sm:$0xf] }
  0x39   : > { %v2202_v22 = vpack.c.b16 %v6675_v18, %v6662_v7  ;;  %v595_v26 = vsel %vm6589_vm2, %v590_v19, %v594_v9  ;;  %v1843_v46 = vrot.slane %v1841_v21, 4  ;;  %v1846_v32 = vrot.slane %v1844_v23, 5 }
  0x3a   : > { %v604_v36 = vrot.slane %v603_v24, 4  ;;  %v992_v37 = vunpack.c.l.b16 %v595_v26  ;;  %v1852_v27 = vrot.slane %v1850_v25, 5  ;;  %v1857_v33 = vrot.slane %v1855_v29, 4  ;;  %v5580_v25 = vld [vmem:[%s6556_s19 + $0x28] sm:$0xf] }
  0x3b   : > { %v1847_v50 = vor.u32 %v1846_v32, %v1843_v46  ;;  %v1860_v39 = vrot.slane %v1858_v30, 5  ;;  %v1864_v40 = vshll.u32 %v5561_v20, 16  ;;  %v721_v45 = vshrl.u32 %v5334_v31, 16  ;;  %v5581_v46 = vld [vmem:[%s6556_s19 + $0x2c] sm:$0x1] }
  0x3c   : > { %v609_v44 = vsel %vm6589_vm2, %v604_v36, %v608_v16  ;;  %v724_v47 = vshll.u32 %v5334_v31, 16  ;;  %v730_v48 = vshll.u32 %v5350_v35, 16  ;;  %v735_v49 = vshrl.u32 %v5335_v34, 16  ;;  %v5582_v32 = vld [vmem:[%s6556_s19 + $0x30] sm:$0xf] }
  0x3d   : > { %v993_v52 = vunpack.c.l.b16 %v609_v44  ;;  %v1848_v53 = vrot.slane %v1847_v50, 4  ;;  %v1861_v54 = vor.u32 %v1860_v39, %v1857_v33  ;;  %v1866_v55 = vrot.slane %v1864_v40, 5  ;;  %v5583_v44 = vld [vmem:[%s6556_s19 + $0x34] sm:$0x1] }
  0x3e   : > { %v723_v60 = vrot.slane %v721_v45, 4  ;;  %v726_v61 = vrot.slane %v724_v47, 5  ;;  %v732_v62 = vrot.slane %v730_v48, 5  ;;  %v737_v1 = vrot.slane %v735_v49, 4 }
  0x3f   : > { %1136 = vrot.lane.b32.xlu1 %v5467_v51, %s8599_s16  ;;  %v999_v4 = vpack.c.b16 %v993_v52, %v992_v37  ;;  %v1853_v5 = vsel %vm6589_vm2, %v1848_v53, %v1852_v27  ;;  %v1862_v6 = vrot.slane %v1861_v54, 4  ;;  %v738_v8 = vshll.u32 %v5335_v34, 16  ;;  %v548_v51 = vld [vmem:[%s6556_s19 + $0x2c] sm:$0x1] }
  0x40   : > { %1108 = vrot.lane.b32.xlu0 %v5451_v3, %s8605_s29  ;;  %v6704_v9 = vunpack.c.l.b16 %v1853_v5  ;;  %v727_v11 = vor.u32 %v726_v61, %v723_v60  ;;  %v744_v12 = vshll.u32 %v5351_v56, 16  ;;  %v611_v14 = vshrl.u32 %v530_v58, 16  ;;  %v1402_v60 = vld [vmem:[%s6556_s19 + $0x28] sm:$0xf] }
  0x41   : > { %1004 = vrot.lane.b32.xlu2 %v999_v4, %s8595_s17  ;;  %v1867_v38 = vsel %vm6589_vm2, %v1862_v6, %v1866_v55  ;;  %v740_v41 = vrot.slane %v738_v8, 5  ;;  %v614_v15 = vshll.u32 %v530_v58, 16  ;;  %v620_v16 = vshll.u32 %v547_v2, 16  ;;  %v1400_v55 = vld [vmem:[%s6556_s19 + $0x20] sm:$0xf] }
  0x42   : > { %v6711_v42 = vunpack.c.l.b16 %v1867_v38  ;;  %v728_v43 = vrot.slane %v727_v11, 4  ;;  %v746_v3 = vrot.slane %v744_v12, 5  ;;  %v613_v19 = vrot.slane %v611_v14, 4  ;;  %v1403_v8 = vld [vmem:[%s6556_s19 + $0x2c] sm:$0x1] }
  0x43   : > { %v741_v20 = vor.u32 %v740_v41, %v737_v1  ;;  %v616_v21 = vrot.slane %v614_v15, 5  ;;  %v622_v23 = vrot.slane %v620_v16, 5  ;;  %v625_v24 = vshrl.u32 %v531_v13, 16  ;;  %v5516_v41 = vld [vmem:[%s6556_s19 + $0x48] sm:$0xf] }
  0x44   : > { %v2270_v29 = vpack.c.b16 %v6711_v42, %v6704_v9  ;;  %v733_v30 = vsel %vm6589_vm2, %v728_v43, %v732_v62  ;;  %v628_v31 = vshll.u32 %v531_v13, 16  ;;  %v634_v26 = vshll.u32 %v548_v51, 16  ;;  %v5517_v51 = vld [vmem:[%s6556_s19 + $0x50] sm:$0xf] }
  0x45   : > { %v742_v34 = vrot.slane %v741_v20, 4  ;;  %v1068_v35 = vunpack.c.l.b16 %v733_v30  ;;  %v617_v36 = vor.u32 %v616_v21, %v613_v19  ;;  %v627_v37 = vrot.slane %v625_v24, 4  ;;  %v5525_v30 = vld [vmem:[%s6556_s19 + $0x54] sm:$0x1] }
  0x46   : > { %v630_v27 = vrot.slane %v628_v31, 5  ;;  %v636_v33 = vrot.slane %v634_v26, 5  ;;  %v1977_v50 = vshrl.u32 %v5580_v25, 16  ;;  %v1980_v39 = vshll.u32 %v5580_v25, 16 }
  0x47   : > { %2236 = vrot.lane.b32.xlu1 %v5623_v10, %s8593_s20  ;;  %v747_v40 = vsel %vm6589_vm2, %v742_v34, %v746_v3  ;;  %v618_v45 = vrot.slane %v617_v36, 4  ;;  %v1986_v47 = vshll.u32 %v5581_v46, 16  ;;  %v1991_v48 = vshrl.u32 %v5582_v32, 16  ;;  %v5524_v3 = vld [vmem:[%s6556_s19 + $0x4c] sm:$0x1] }
  0x48   : > { %2208 = vrot.lane.b32.xlu0 %v2202_v22, %s8595_s17  ;;  %v1069_v49 = vunpack.c.l.b16 %v747_v40  ;;  %v631_v52 = vor.u32 %v630_v27, %v627_v37  ;;  %v1979_v53 = vrot.slane %v1977_v50, 4  ;;  %v1982_v54 = vrot.slane %v1980_v39, 5  ;;  %v6760_v37 = vld [vmem:[%s6556_s19 + $0xb4] sm:$0xf0]  ;;  %v5548_v40 = vld [vmem:[%s6556_s19 + $0xb0] sm:$0xf] }
  0x49   : > { %v623_v0 = vsel %vm6589_vm2, %v618_v45, %v622_v23  ;;  %v1988_v10 = vrot.slane %v1986_v47, 5  ;;  %v1993_v56 = vrot.slane %v1991_v48, 4  ;;  %v1994_v58 = vshll.u32 %v5582_v32, 16  ;;  %v6757_v32 = vld [vmem:[%s6556_s19 + $0xb0] sm:$0xf] }
  0x4a   : > { %v1075_v61 = vpack.c.b16 %v1069_v49, %v1068_v35  ;;  %v632_v62 = vrot.slane %v631_v52, 4  ;;  %v6736_v1 = vunpack.c.l.b16 %v623_v0  ;;  %v1983_v7 = vor.u32 %v1982_v54, %v1979_v53  ;;  %v5549_v49 = vld [vmem:[%s6556_s19 + $0xb4] sm:$0x1]  ;;  %v5550_v52 = vld [vmem:[%s6556_s19 + $0xb8] sm:$0xf] }
  0x4b   : > { %v1996_v18 = vrot.slane %v1994_v58, 5  ;;  %v2000_v22 = vshll.u32 %v5583_v44, 16  ;;  %v1465_v2 = vshrl.u32 %v1400_v55, 16  ;;  %v1468_v4 = vshll.u32 %v1400_v55, 16 }
  0x4c   : > { %1080 = vrot.lane.b32.xlu2 %v1075_v61, %s8603_s18  ;;  %v637_v5 = vsel %vm6589_vm2, %v632_v62, %v636_v33  ;;  %v1984_v6 = vrot.slane %v1983_v7, 4  ;;  %v1474_v9 = vshll.u32 %v1401_v59, 16  ;;  %v1479_v11 = vshrl.u32 %v1402_v60, 16  ;;  %v5551_v62 = vld [vmem:[%s6556_s19 + $0xbc] sm:$0x1] }
  0x4d   : > { %v995_v12 = vunpack.c.l.b16 %v637_v5  ;;  %v1997_v13 = vor.u32 %v1996_v18, %v1993_v56  ;;  %v2002_v14 = vrot.slane %v2000_v22, 5  ;;  %v1467_v38 = vrot.slane %v1465_v2, 4  ;;  %v5336_v5 = vld [vmem:[%s6556_s19 + $0xb0] sm:$0xf] }
  0x4e   : > { %v1989_v15 = vsel %vm6589_vm2, %v1984_v6, %v1988_v10  ;;  %v1470_v16 = vrot.slane %v1468_v4, 5  ;;  %v1476_v42 = vrot.slane %v1474_v9, 5  ;;  %v1481_v43 = vrot.slane %v1479_v11, 4  ;;  %v5337_v6 = vld [vmem:[%s6556_s19 + $0xb8] sm:$0xf] }
  0x4f   : > { %2304 = vrot.lane.b32.xlu1 %v5639_v17, %s8605_s29  ;;  %v1000_v19 = vpack.c.b16 %v995_v12, %v6736_v1  ;;  %v1998_v20 = vrot.slane %v1997_v13, 4  ;;  %v2312_v21 = vunpack.c.l.b16 %v1989_v15  ;;  %v1482_v23 = vshll.u32 %v1402_v60, 16  ;;  %v5352_v13 = vld [vmem:[%s6556_s19 + $0xb4] sm:$0x1] }
  0x50   : > { %2276 = vrot.lane.b32.xlu0 %v2270_v29, %s8603_s18  ;;  %v1471_v24 = vor.u32 %v1470_v16, %v1467_v38  ;;  %v1488_v25 = vshll.u32 %v1403_v8, 16  ;;  %v1529_v31 = vshrl.u32 %v5516_v41, 16  ;;  %v1532_v26 = vshll.u32 %v5516_v41, 16 }
  0x51   : > { %v2003_v46 = vsel %vm6589_vm2, %v1998_v20, %v2002_v14  ;;  %v1484_v57 = vrot.slane %v1482_v23, 5  ;;  %v1538_v63 = vshll.u32 %v5524_v3, 16  ;;  %v1543_v17 = vshrl.u32 %v5517_v51, 16 }
  0x52   : > { %v2313_v34 = vunpack.c.l.b16 %v2003_v46  ;;  %v1472_v35 = vrot.slane %v1471_v24, 4  ;;  %v1490_v36 = vrot.slane %v1488_v25, 5  ;;  %v1531_v29 = vrot.slane %v1529_v31, 4  ;;  %v6105_v25 = vld [vmem:[%s6556_s19 + $0xdc] sm:$0xf0] }
  0x53   : > { %v1485_v27 = vor.u32 %v1484_v57, %v1481_v43  ;;  %v1534_v33 = vrot.slane %v1532_v26, 5  ;;  %v1540_v50 = vrot.slane %v1538_v63, 5  ;;  %v1545_v39 = vrot.slane %v1543_v17, 4  ;;  %v6788_v57 = vld [vmem:[%s6556_s19 + $0x68] sm:$0xf] }
  0x54   : > { %v2318_v45 = vpack.c.b16 %v2313_v34, %v2312_v21  ;;  %v1477_v44 = vsel %vm6589_vm2, %v1472_v35, %v1476_v42  ;;  %v1546_v47 = vshll.u32 %v5517_v51, 16  ;;  %v1552_v48 = vshll.u32 %v5525_v30, 16  ;;  %v5353_v42 = vld [vmem:[%s6556_s19 + $0xbc] sm:$0x1]  ;;  %v6791_v63 = vld [vmem:[%s6556_s19 + $0x6c] sm:$0xf0] }
  0x55   : > { %v1486_v53 = vrot.slane %v1485_v27, 4  ;;  %v2176_v54 = vunpack.c.l.b16 %v1477_v44  ;;  %v1535_v55 = vor.u32 %v1534_v33, %v1531_v29  ;;  %v5423_v59 = vor.u32 %v6760_v37, %v6757_v32 }
  0x56   : > { %v1548_v0 = vrot.slane %v1546_v47, 5  ;;  %v1554_v10 = vrot.slane %v1552_v48, 5  ;;  %v1721_v56 = vshrl.u32 %v5548_v40, 16  ;;  %v1724_v58 = vshll.u32 %v5548_v40, 16  ;;  %v5533_v47 = vld [vmem:[%s6556_s19 + $0xe0] sm:$0xf] }
  0x57   : > { %1006 = vrot.lane.b32.xlu1 %v1000_v19, %s8595_s17  ;;  %v1491_v60 = vsel %vm6589_vm2, %v1486_v53, %v1490_v36  ;;  %v1536_v61 = vrot.slane %v1535_v55, 4  ;;  %v1730_v1 = vshll.u32 %v5549_v49, 16  ;;  %v1735_v7 = vshrl.u32 %v5550_v52, 16  ;;  %v6781_v19 = vld [vmem:[%s6556_s19 + $0xd8] sm:$0xf] }
  0x58   : > { %2324 = vrot.lane.b32.xlu0 %v2318_v45, %s8599_s16  ;;  %v2177_v18 = vunpack.c.l.b16 %v1491_v60  ;;  %v1549_v22 = vor.u32 %v1548_v0, %v1545_v39  ;;  %v1723_v2 = vrot.slane %v1721_v56, 4  ;;  %v1726_v4 = vrot.slane %v1724_v58, 5  ;;  %v5532_v36 = vld [vmem:[%s6556_s19 + $0xd8] sm:$0xf]  ;;  %v1392_v55 = vld [vmem:[%s6556_s19] sm:$0xf] }
  0x59   : > { %v1541_v8 = vsel %vm6589_vm2, %v1536_v61, %v1540_v50  ;;  %v1732_v9 = vrot.slane %v1730_v1, 5  ;;  %v1737_v11 = vrot.slane %v1735_v7, 4  ;;  %v1738_v12 = vshll.u32 %v5550_v52, 16  ;;  %v5556_v50 = vld [vmem:[%s6556_s19 + $0xdc] sm:$0x1] }
  0x5a   : > { %v2182_v14 = vpack.c.b16 %v2177_v18, %v2176_v54  ;;  %v1550_v38 = vrot.slane %v1549_v22, 4  ;;  %v2192_v41 = vunpack.c.l.b16 %v1541_v8  ;;  %v1727_v51 = vor.u32 %v1726_v4, %v1723_v2  ;;  %v5557_v52 = vld [vmem:[%s6556_s19 + $0xe4] sm:$0x1]  ;;  %v6808_v58 = vld [vmem:[%s6556_s19 + $0x28] sm:$0xf] }
  0x5b   : > { %v1740_v15 = vrot.slane %v1738_v12, 5  ;;  %v1744_v16 = vshll.u32 %v5551_v62, 16  ;;  %v749_v43 = vshrl.u32 %v5336_v5, 16  ;;  %v752_v3 = vshll.u32 %v5336_v5, 16  ;;  %v6811_v7 = vld [vmem:[%s6556_s19 + $0x2c] sm:$0xf0] }
  0x5c   : > { %2188 = vrot.lane.b32.xlu2 %v2182_v14, %s8597_s26  ;;  %v1555_v20 = vsel %vm6589_vm2, %v1550_v38, %v1554_v10  ;;  %v1728_v21 = vrot.slane %v1727_v51, 4  ;;  %v758_v23 = vshll.u32 %v5352_v13, 16  ;;  %v763_v24 = vshrl.u32 %v5337_v6, 16  ;;  %v1393_v5 = vld [vmem:[%s6556_s19 + $0x4] sm:$0x1] }
  0x5d   : > { %v2193_v30 = vunpack.c.l.b16 %v1555_v20  ;;  %v1741_v31 = vor.u32 %v1740_v15, %v1737_v11  ;;  %v1746_v26 = vrot.slane %v1744_v16, 5  ;;  %v751_v46 = vrot.slane %v749_v43, 4  ;;  %v1394_v38 = vld [vmem:[%s6556_s19 + $0x8] sm:$0xf]  ;;  %v1395_v20 = vld [vmem:[%s6556_s19 + $0xc] sm:$0x1] }
  0x5e   : > { %v1733_v17 = vsel %vm6589_vm2, %v1728_v21, %v1732_v9  ;;  %v754_v32 = vrot.slane %v752_v3, 5  ;;  %v760_v34 = vrot.slane %v758_v23, 5  ;;  %v765_v35 = vrot.slane %v763_v24, 4  ;;  %v5572_v23 = vld [vmem:[%s6556_s19 + $0x8] sm:$0xf] }
  0x5f   : > { %v2200_v29 = vpack.c.b16 %v2193_v30, %v2192_v41  ;;  %v1742_v37 = vrot.slane %v1741_v31, 4  ;;  %v2244_v27 = vunpack.c.l.b16 %v1733_v17  ;;  %v766_v33 = vshll.u32 %v5337_v6, 16 }
  0x60   : > { %1034 = vrot.lane.b32.xlu0 %v5423_v59, %s8593_s20  ;;  %v755_v39 = vor.u32 %v754_v32, %v751_v46  ;;  %v772_v40 = vshll.u32 %v5353_v42, 16  ;;  %v5615_v45 = vor.u32 %v6105_v25, %v6781_v19  ;;  %v5407_v44 = vor.u32 %v6791_v63, %v6788_v57  ;;  %v6858_v63 = vld [vmem:[%s6556_s19 + $0x108] sm:$0xf] }
  0x61   : > { %2204 = vrot.lane.b32.xlu1 %v2200_v29, %s8595_s17  ;;  %v1747_v48 = vsel %vm6589_vm2, %v1742_v37, %v1746_v26  ;;  %v768_v49 = vrot.slane %v766_v33, 5  ;;  %v1785_v53 = vshrl.u32 %v5532_v36, 16  ;;  %v1788_v54 = vshll.u32 %v5532_v36, 16  ;;  %v5573_v26 = vld [vmem:[%s6556_s19 + $0xc] sm:$0x1]  ;;  %s8617_s17 = smov 48  }
  0x62   : > { %v2245_v59 = vunpack.c.l.b16 %v1747_v48  ;;  %v756_v0 = vrot.slane %v755_v39, 4  ;;  %v774_v10 = vrot.slane %v772_v40, 5  ;;  %v1794_v56 = vshll.u32 %v5556_v50, 16  ;;  %v6837_v48 = vld [vmem:[%s6556_s19 + $0x54] sm:$0xf0] }
  0x63   : > { %v769_v60 = vor.u32 %v768_v49, %v765_v35  ;;  %v1787_v61 = vrot.slane %v1785_v53, 4  ;;  %v1790_v62 = vrot.slane %v1788_v54, 5  ;;  %v1799_v1 = vshrl.u32 %v5533_v47, 16  ;;  %v5574_v35 = vld [vmem:[%s6556_s19 + $0x10] sm:$0xf] }
  0x64   : > { %v2250_v18 = vpack.c.b16 %v2245_v59, %v2244_v27  ;;  %v761_v22 = vsel %vm6589_vm2, %v756_v0, %v760_v34  ;;  %v1796_v2 = vrot.slane %v1794_v56, 5  ;;  %v1802_v4 = vshll.u32 %v5533_v47, 16  ;;  %v5575_v27 = vld [vmem:[%s6556_s19 + $0x14] sm:$0x1]  ;;  %v6834_v47 = vld [vmem:[%s6556_s19 + $0x50] sm:$0xf] }
  0x65   : > { %v770_v6 = vrot.slane %v769_v60, 4  ;;  %v1070_v8 = vunpack.c.l.b16 %v761_v22  ;;  %v1791_v9 = vor.u32 %v1790_v62, %v1787_v61  ;;  %v1801_v11 = vrot.slane %v1799_v1, 4  ;;  %v5522_v59 = vld [vmem:[%s6556_s19 + $0x78] sm:$0xf]  ;;  %v6848_v60 = vld [vmem:[%s6556_s19 + $0xfc] sm:$0xf0] }
  0x66   : > { %2256 = vrot.lane.b32.xlu2 %v2250_v18, %s8601_s28  ;;  %v1804_v12 = vrot.slane %v1802_v4, 5  ;;  %v1808_v13 = vshll.u32 %v5557_v52, 16  ;;  %v5455_v14 = vor.u32 %v6811_v7, %v6808_v58  ;;  %v1409_v41 = vshrl.u32 %v1392_v55, 16  ;;  %v6853_v61 = vld [vmem:[%s8615_s2 + $0x38] sm:$0xff] }
  0x67   : > { %v775_v51 = vsel %vm6589_vm2, %v770_v6, %v774_v10  ;;  %v1792_v15 = vrot.slane %v1791_v9, 4  ;;  %v1412_v16 = vshll.u32 %v1392_v55, 16  ;;  %v1418_v42 = vshll.u32 %v1393_v5, 16  ;;  %v6840_v55 = vld [vmem:[%s6556_s19 + $0xf8] sm:$0xf]  ;;  %1290 = vmatpush.bf16.msra.mxu0 %v6853_v61  ;;  %v6869_v6 = vld [vmem:[%s8615_s2 + $0x30] sm:$0xff]  ;;  %6171 = vmatpush.bf16.msra.mxu2 %v6853_v61 }
  0x68   : > { %v1071_v43 = vunpack.c.l.b16 %v775_v51  ;;  %2232 = vrot.lane.b32.xlu0 %v5615_v45, %s8593_s20  ;;  %v1805_v3 = vor.u32 %v1804_v12, %v1801_v11  ;;  %v1810_v19 = vrot.slane %v1808_v13, 5  ;;  %v1411_v21 = vrot.slane %v1409_v41, 4  ;;  %v5530_v5 = vld [vmem:[%s6556_s19 + $0x7c] sm:$0x1]  ;;  %v5523_v13 = vld [vmem:[%s6556_s19 + $0x80] sm:$0xf] }
  0x69   : > { %v1797_v24 = vsel %vm6589_vm2, %v1792_v15, %v1796_v2  ;;  %v1414_v25 = vrot.slane %v1412_v16, 5  ;;  %v1420_v30 = vrot.slane %v1418_v42, 5  ;;  %v1423_v31 = vshrl.u32 %v1394_v38, 16  ;;  %v5531_v42 = vld [vmem:[%s6556_s19 + $0x84] sm:$0x1] }
  0x6a   : > { %v1076_v46 = vpack.c.b16 %v1071_v43, %v1070_v8  ;;  %v1806_v17 = vrot.slane %v1805_v3, 4  ;;  %v2260_v32 = vunpack.c.l.b16 %v1797_v24  ;;  %v1426_v34 = vshll.u32 %v1394_v38, 16  ;;  %v5540_v24 = vld [vmem:[%s6556_s19 + $0x90] sm:$0xf] }
  0x6b   : > { %v1415_v36 = vor.u32 %v1414_v25, %v1411_v21  ;;  %v1425_v29 = vrot.slane %v1423_v31, 4  ;;  %v1432_v37 = vshll.u32 %v1395_v20, 16  ;;  %v1921_v33 = vshrl.u32 %v5572_v23, 16  ;;  %1291 = vmatpush.bf16.msra.mxu0 %v6869_v6  ;;  %6172 = vmatpush.bf16.msra.mxu2 %v6869_v6 }
  0x6c   : > { %1082 = vrot.lane.b32.xlu1 %v1076_v46, %s8603_s18  ;;  %v1811_v50 = vsel %vm6589_vm2, %v1806_v17, %v1810_v19  ;;  %v1428_v39 = vrot.slane %v1426_v34, 5  ;;  %v1924_v40 = vshll.u32 %v5572_v23, 16  ;;  %v1930_v45 = vshll.u32 %v5573_v26, 16  ;;  %v5541_v46 = vld [vmem:[%s6556_s19 + $0x94] sm:$0x1] }
  0x6d   : > { %v2261_v49 = vunpack.c.l.b16 %v1811_v50  ;;  %v1416_v52 = vrot.slane %v1415_v36, 4  ;;  %v1434_v53 = vrot.slane %v1432_v37, 5  ;;  %v1923_v54 = vrot.slane %v1921_v33, 4  ;;  %v5542_v36 = vld [vmem:[%s6556_s19 + $0x98] sm:$0xf] }
  0x6e   : > { %986 = vrot.lane.b32.xlu2 %v5407_v44, %s8597_s26  ;;  %v1429_v0 = vor.u32 %v1428_v39, %v1425_v29  ;;  %v1926_v10 = vrot.slane %v1924_v40, 5  ;;  %v1932_v56 = vrot.slane %v1930_v45, 5  ;;  %v1935_v58 = vshrl.u32 %v5574_v35, 16  ;;  %v6861_v44 = vld [vmem:[%s6556_s19 + $0x10c] sm:$0xf0] }
  0x6f   : > { %v2268_v62 = vpack.c.b16 %v2261_v49, %v2260_v32  ;;  %v1421_v1 = vsel %vm6589_vm2, %v1416_v52, %v1420_v30  ;;  %v1938_v7 = vshll.u32 %v5574_v35, 16  ;;  %v1944_v57 = vshll.u32 %v5575_v27, 16  ;;  %v5543_v45 = vld [vmem:[%s6556_s19 + $0x9c] sm:$0x1] }
  0x70   : > { %1110 = vrot.lane.b32.xlu0 %v5455_v14, %s8605_s29  ;;  %v1430_v18 = vrot.slane %v1429_v0, 4  ;;  %v2172_v22 = vunpack.c.l.b16 %v1421_v1  ;;  %v1927_v2 = vor.u32 %v1926_v10, %v1923_v54  ;;  %v1937_v4 = vrot.slane %v1935_v58, 4 }
  0x71   : > { %v1940_v8 = vrot.slane %v1938_v7, 5  ;;  %v1946_v9 = vrot.slane %v1944_v57, 5  ;;  %v5631_v11 = vor.u32 %v6837_v48, %v6834_v47  ;;  %v5439_v12 = vor.u32 %v6848_v60, %v6840_v55  ;;  %v6896_v48 = vld [vmem:[%s6556_s19 + $0x80] sm:$0xf] }
  0x72   : > { %v1435_v14 = vsel %vm6589_vm2, %v1430_v18, %v1434_v53  ;;  %v1928_v38 = vrot.slane %v1927_v2, 4  ;;  %v5627_v41 = vor.u32 %v6861_v44, %v6858_v63  ;;  %v1613_v51 = vshrl.u32 %v5522_v59, 16  ;;  %v5562_v2 = vld [vmem:[%s6556_s19 + $0x10c] sm:$0x1]  ;;  %v5585_v63 = vld [vmem:[%s6556_s19 + $0x3c] sm:$0x1] }
  0x73   : > { %v2173_v15 = vunpack.c.l.b16 %v1435_v14  ;;  %v1941_v16 = vor.u32 %v1940_v8, %v1937_v4  ;;  %v1616_v43 = vshll.u32 %v5522_v59, 16  ;;  %v1622_v3 = vshll.u32 %v5530_v5, 16  ;;  %v6899_v59 = vld [vmem:[%s6556_s19 + $0x84] sm:$0xf0]  ;;  %v5586_v44 = vld [vmem:[%s6556_s19 + $0x40] sm:$0xf] }
  0x74   : > { %2272 = vrot.lane.b32.xlu1 %v2268_v62, %s8603_s18  ;;  %v1933_v19 = vsel %vm6589_vm2, %v1928_v38, %v1932_v56  ;;  %v1615_v20 = vrot.slane %v1613_v51, 4  ;;  %v1627_v21 = vshrl.u32 %v5523_v13, 16  ;;  %v1630_v23 = vshll.u32 %v5523_v13, 16  ;;  %v5538_v62 = vld [vmem:[%s6556_s19 + $0x108] sm:$0xf]  ;;  %s8622_s18 = smov 96  }
  0x75   : > { %v2180_v25 = vpack.c.b16 %v2173_v15, %v2172_v22  ;;  %v1942_v30 = vrot.slane %v1941_v16, 4  ;;  %v2308_v31 = vunpack.c.l.b16 %v1933_v19  ;;  %v1618_v26 = vrot.slane %v1616_v43, 5  ;;  %v5539_v22 = vld [vmem:[%s6556_s19 + $0x110] sm:$0xf]  ;;  %v6915_v13 = vld [vmem:[%s8615_s2 + $0x28] sm:$0xff] }
  0x76   : > { %v1624_v17 = vrot.slane %v1622_v3, 5  ;;  %v1629_v32 = vrot.slane %v1627_v21, 4  ;;  %v1632_v34 = vrot.slane %v1630_v23, 5  ;;  %v1636_v35 = vshll.u32 %v5531_v42, 16  ;;  %v6918_v16 = vld [vmem:[%s6556_s19 + $0x70] sm:$0xf]  ;;  %1292 = vmatpush.bf16.msra.mxu0 %v6915_v13  ;;  %6173 = vmatpush.bf16.msra.mxu2 %v6915_v13 }
  0x77   : > { %2184 = vrot.lane.b32.xlu2 %v2180_v25, %s8597_s26  ;;  %v1947_v29 = vsel %vm6589_vm2, %v1942_v30, %v1946_v9  ;;  %v1619_v37 = vor.u32 %v1618_v26, %v1615_v20  ;;  %v1665_v27 = vshrl.u32 %v5540_v24, 16  ;;  %v1668_v33 = vshll.u32 %v5540_v24, 16  ;;  %v6921_v20 = vld [vmem:[%s6556_s19 + $0x74] sm:$0xf0]  ;;  %v6927_v21 = vld [vmem:[%s8615_s2 + $0x20] sm:$0xff]  ;;  %s8616_s26 = smov 32  }
  0x78   : > { %v2309_v50 = vunpack.c.l.b16 %v1947_v29  ;;  %2300 = vrot.lane.b32.xlu0 %v5631_v11, %s8605_s29  ;;  %v1633_v39 = vor.u32 %v1632_v34, %v1629_v32  ;;  %v1638_v40 = vrot.slane %v1636_v35, 5  ;;  %v1674_v47 = vshll.u32 %v5541_v46, 16  ;;  %v5563_v11 = vld [vmem:[%s6556_s19 + $0x114] sm:$0x1] }
  0x79   : > { %v1620_v49 = vrot.slane %v1619_v37, 4  ;;  %v1667_v52 = vrot.slane %v1665_v27, 4  ;;  %v1670_v53 = vrot.slane %v1668_v33, 5  ;;  %v1679_v54 = vshrl.u32 %v5542_v36, 16  ;;  %v549_v34 = vld [vmem:[%s6556_s19 + $0x34] sm:$0x1] }
  0x7a   : > { %v2316_v0 = vpack.c.b16 %v2309_v50, %v2308_v31  ;;  %v1634_v10 = vrot.slane %v1633_v39, 4  ;;  %v1676_v56 = vrot.slane %v1674_v47, 5  ;;  %v1682_v58 = vshll.u32 %v5542_v36, 16  ;;  %v532_v31 = vld [vmem:[%s6556_s19 + $0x30] sm:$0xf]  ;;  %1293 = vmatpush.bf16.msra.mxu0 %v6927_v21  ;;  %6174 = vmatpush.bf16.msra.mxu2 %v6927_v21 }
  0x7b   : > { %v1625_v1 = vsel %vm6589_vm2, %v1620_v49, %v1624_v17  ;;  %v1671_v7 = vor.u32 %v1670_v53, %v1667_v52  ;;  %v1681_v57 = vrot.slane %v1679_v54, 4  ;;  %v1688_v18 = vshll.u32 %v5543_v45, 16  ;;  %v550_v45 = vld [vmem:[%s6556_s19 + $0x3c] sm:$0x1] }
  0x7c   : > { %2320 = vrot.lane.b32.xlu1 %v2316_v0, %s8599_s16  ;;  %v1639_v4 = vsel %vm6589_vm2, %v1634_v10, %v1638_v40  ;;  %v2198_v5 = vunpack.c.l.b16 %v1625_v1  ;;  %v1684_v8 = vrot.slane %v1682_v58, 5  ;;  %v5643_v9 = vor.u32 %v6899_v59, %v6896_v48  ;;  %v5584_v0 = vld [vmem:[%s6556_s19 + $0x38] sm:$0xf]  ;;  %s8619_s16 = smov 112  }
  0x7d   : > { %v2199_v14 = vunpack.c.l.b16 %v1639_v4  ;;  %v1672_v38 = vrot.slane %v1671_v7, 4  ;;  %v1690_v51 = vrot.slane %v1688_v18, 5  ;;  %v1869_v15 = vshrl.u32 %v5538_v62, 16 }
  0x7e   : > { %v1685_v42 = vor.u32 %v1684_v8, %v1681_v57  ;;  %v1872_v43 = vshll.u32 %v5538_v62, 16  ;;  %v1878_v3 = vshll.u32 %v5562_v2, 16  ;;  %v1883_v19 = vshrl.u32 %v5539_v22, 16 }
  0x7f   : > { %1062 = vrot.lane.b32.xlu2 %v5439_v12, %s8601_s28  ;;  %v2203_v23 = vpack.c.b16 %v2199_v14, %v2198_v5  ;;  %v1677_v24 = vsel %vm6589_vm2, %v1672_v38, %v1676_v56  ;;  %v1871_v25 = vrot.slane %v1869_v15, 4  ;;  %v1886_v30 = vshll.u32 %v5539_v22, 16  ;;  %v533_v12 = vld [vmem:[%s6556_s19 + $0x38] sm:$0xf] }
  0x80   : > { %v1686_v26 = vrot.slane %v1685_v42, 4  ;;  %v2240_v46 = vunpack.c.l.b16 %v1677_v24  ;;  %v1874_v17 = vrot.slane %v1872_v43, 5  ;;  %v1880_v32 = vrot.slane %v1878_v3, 5  ;;  %v6962_v5 = vld [vmem:[%s8615_s2 + $0x18] sm:$0xff]  ;;  %v5587_v42 = vld [vmem:[%s6556_s19 + $0x44] sm:$0x1] }
  0x81   : > { %2210 = vrot.lane.b32.xlu0 %v2203_v23, %s8616_s26  ;;  %v1885_v35 = vrot.slane %v1883_v19, 4  ;;  %v1888_v36 = vrot.slane %v1886_v30, 5  ;;  %v1892_v55 = vshll.u32 %v5563_v11, 16  ;;  %v5471_v60 = vor.u32 %v6921_v20, %v6918_v16  ;;  %1294 = vmatpush.bf16.msra.mxu0 %v6962_v5  ;;  %v6970_v23 = vld [vmem:[%s8615_s2 + $0x10] sm:$0xff] }
  0x82   : > { %v1691_v29 = vsel %vm6589_vm2, %v1686_v26, %v1690_v51  ;;  %v1875_v37 = vor.u32 %v1874_v17, %v1871_v25  ;;  %v639_v27 = vshrl.u32 %v532_v31, 16  ;;  %v642_v33 = vshll.u32 %v532_v31, 16  ;;  %v1404_v51 = vld [vmem:[%s6556_s19 + $0x30] sm:$0xf]  ;;  %6175 = vmatpush.bf16.msra.mxu2 %v6962_v5  ;;  %v1405_v26 = vld [vmem:[%s6556_s19 + $0x34] sm:$0x1] }
  0x83   : > { %v2241_v50 = vunpack.c.l.b16 %v1691_v29  ;;  %v1889_v39 = vor.u32 %v1888_v36, %v1885_v35  ;;  %v1894_v40 = vrot.slane %v1892_v55, 5  ;;  %v648_v47 = vshll.u32 %v549_v34, 16  ;;  %v1407_v29 = vld [vmem:[%s6556_s19 + $0x3c] sm:$0x1] }
  0x84   : > { %2238 = vrot.lane.b32.xlu1 %v5627_v41, %s8617_s17  ;;  %v1876_v49 = vrot.slane %v1875_v37, 4  ;;  %v641_v52 = vrot.slane %v639_v27, 4  ;;  %v644_v53 = vrot.slane %v642_v33, 5  ;;  %v653_v54 = vshrl.u32 %v533_v12, 16 }
  0x85   : > { %v2248_v10 = vpack.c.b16 %v2241_v50, %v2240_v46  ;;  %v1890_v56 = vrot.slane %v1889_v39, 4  ;;  %v650_v58 = vrot.slane %v648_v47, 5  ;;  %v656_v62 = vshll.u32 %v533_v12, 16  ;;  %v1406_v46 = vld [vmem:[%s6556_s19 + $0x38] sm:$0xf]  ;;  %1295 = vmatpush.bf16.msra.mxu0 %v6970_v23 }
  0x86   : > { %v1881_v1 = vsel %vm6589_vm2, %v1876_v49, %v1880_v32  ;;  %v645_v7 = vor.u32 %v644_v53, %v641_v52  ;;  %v655_v57 = vrot.slane %v653_v54, 4  ;;  %v662_v18 = vshll.u32 %v550_v45, 16  ;;  %6176 = vmatpush.bf16.msra.mxu2 %v6970_v23  ;;  %v5382_v47 = vld [vmem:[%s6556_s19] sm:$0xf]  ;;  %v6077_v49 = vld [vmem:[%s6556_s19 + $0x4] sm:$0xf0] }
  0x87   : > { %2252 = vrot.lane.b32.xlu2 %v2248_v10, %s8601_s28  ;;  %v1895_v41 = vsel %vm6589_vm2, %v1890_v56, %v1894_v40  ;;  %v2266_v22 = vunpack.c.l.b16 %v1881_v1  ;;  %v658_v2 = vrot.slane %v656_v62, 5  ;;  %v2005_v4 = vshrl.u32 %v5584_v0, 16  ;;  %s8618_s28 = smov 80   ;;  %v5518_v40 = vld [vmem:[%s6556_s19 + $0x58] sm:$0xf]  ;;  %v6997_v10 = vld [vmem:[%s8615_s2 + $0x8] sm:$0xff] }
  0x88   : > { %v2267_v8 = vunpack.c.l.b16 %v1895_v41  ;;  %v646_v11 = vrot.slane %v645_v7, 4  ;;  %v664_v14 = vrot.slane %v662_v18, 5  ;;  %v2008_v38 = vshll.u32 %v5584_v0, 16  ;;  %v5526_v18 = vld [vmem:[%s6556_s19 + $0x5c] sm:$0x1] }
  0x89   : > { %v659_v15 = vor.u32 %v658_v2, %v655_v57  ;;  %v2007_v43 = vrot.slane %v2005_v4, 4  ;;  %v2014_v3 = vshll.u32 %v5585_v63, 16  ;;  %v2019_v19 = vshrl.u32 %v5586_v44, 16  ;;  %v7003_v57 = vpop.permute.xlu2 %1106  ;;  %1296 = vmatpush.bf16.msra.mxu0 %v6997_v10  ;;  %v7010_v63 = vld [vmem:[%s8615_s2] sm:$0xff] }
  0x8a   : > { %v2271_v24 = vpack.c.b16 %v2267_v8, %v2266_v22  ;;  %v651_v25 = vsel %vm6589_vm2, %v646_v11, %v650_v58  ;;  %v2010_v30 = vrot.slane %v2008_v38, 5  ;;  %v2022_v31 = vshll.u32 %v5586_v44, 16  ;;  %v6076_v44 = vld [vmem:[%s8615_s2 + $0x40] sm:$0xff]  ;;  %6177 = vmatpush.bf16.msra.mxu2 %v6997_v10  ;;  %s419_s2 = sand.u32 1, %s6414_s22  }
  0x8b   : > { %v660_v17 = vrot.slane %v659_v15, 4  ;;  %v996_v32 = vunpack.c.l.b16 %v651_v25  ;;  %v2016_v34 = vrot.slane %v2014_v3, 5  ;;  %v2021_v35 = vrot.slane %v2019_v19, 4  ;;  %v5519_v8 = vld [vmem:[%s6556_s19 + $0x60] sm:$0xf]  ;;  %1326 = vmatpush.bf16.msra.mxu1 %v6076_v44  ;;  %2452 = vmatpush.bf16.msra.mxu3 %v6076_v44 }
  0x8c   : > { %2306 = vrot.lane.b32.xlu1 %v5643_v9, %s8605_s29  ;;  %2278 = vrot.lane.b32.xlu0 %v2271_v24, %s8618_s28  ;;  %v2011_v36 = vor.u32 %v2010_v30, %v2007_v43  ;;  %v2024_v55 = vrot.slane %v2022_v31, 5  ;;  %v2028_v12 = vshll.u32 %v5587_v42, 16  ;;  %v1493_v37 = vshrl.u32 %v1404_v51, 16  ;;  %v5527_v15 = vld [vmem:[%s6556_s19 + $0x64] sm:$0x1]  ;;  %s8621_s29 = smov 64  }
  0x8d   : > { %v665_v27 = vsel %vm6589_vm2, %v660_v17, %v664_v14  ;;  %v1496_v33 = vshll.u32 %v1404_v51, 16  ;;  %v1502_v50 = vshll.u32 %v1405_v26, 16  ;;  %v1507_v39 = vshrl.u32 %v1406_v46, 16  ;;  %v7025_v25 = vld [vmem:[%s6556_s19 + $0xc0] sm:$0xf]  ;;  %1297 = vmatpush.bf16.msra.mxu0 %v7010_v63 }
  0x8e   : > { %v997_v48 = vunpack.c.l.b16 %v665_v27  ;;  %v2012_v59 = vrot.slane %v2011_v36, 4  ;;  %v2025_v9 = vor.u32 %v2024_v55, %v2021_v35  ;;  %v2030_v45 = vrot.slane %v2028_v12, 5  ;;  %v7028_v30 = vld [vmem:[%s6556_s19 + $0xc4] sm:$0xf0]  ;;  %6178 = vmatpush.bf16.msra.mxu2 %v7010_v63  ;;  %v5553_v12 = vld [vmem:[%s6556_s19 + $0xc4] sm:$0x1] }
  0x8f   : > { %1138 = vrot.lane.b32.xlu2 %v5471_v60, %s8619_s16  ;;  %v1495_v52 = vrot.slane %v1493_v37, 4  ;;  %v1498_v53 = vrot.slane %v1496_v33, 5  ;;  %v1504_v54 = vrot.slane %v1502_v50, 5  ;;  %v1509_v0 = vrot.slane %v1507_v39, 4  ;;  %2416 = vmatpush.bf16.msrb.mxu1 %v6853_v61  ;;  %v5554_v50 = vld [vmem:[%s6556_s19 + $0xc8] sm:$0xf] }
  0x90   : > { %v1001_v56 = vpack.c.b16 %v997_v48, %v996_v32  ;;  %v2017_v58 = vsel %vm6589_vm2, %v2012_v59, %v2016_v34  ;;  %v2026_v62 = vrot.slane %v2025_v9, 4  ;;  %v1510_v1 = vshll.u32 %v1406_v46, 16  ;;  %v5552_v32 = vld [vmem:[%s6556_s19 + $0xc0] sm:$0xf]  ;;  %3241 = vmatpush.bf16.msrb.mxu3 %v6076_v44 }
  0x91   : > { %v2314_v7 = vunpack.c.l.b16 %v2017_v58  ;;  %v1499_v16 = vor.u32 %v1498_v53, %v1495_v52  ;;  %v1516_v20 = vshll.u32 %v1407_v29, 16  ;;  %v7001_v60 = vpop.permute.xlu1 %1030  ;;  %v5383_v4 = vor.u32 %v6077_v49, %v5382_v47  ;;  %4328 = vmatpush.bf16.msrb.mxu0 %v6853_v61  ;;  %v5555_v49 = vld [vmem:[%s6556_s19 + $0xcc] sm:$0x1] }
  0x92   : > { %v2031_v41 = vsel %vm6589_vm2, %v2026_v62, %v2030_v45  ;;  %v1512_v22 = vrot.slane %v1510_v1, 5  ;;  %v983_v2 = vpop.permute.xlu0 %982  ;;  %v1557_v11 = vshrl.u32 %v5518_v40, 16  ;;  %v1560_v42 = vshll.u32 %v5518_v40, 16  ;;  %4364 = vmatpush.bf16.msrb.mxu2 %v6076_v44  ;;  %v5338_v1 = vld [vmem:[%s6556_s19 + $0xc0] sm:$0xf]  ;;  %v7054_v44 = vpop.permute.xlu2 %1078 }
  0x93   : > { %v2315_v14 = vunpack.c.l.b16 %v2031_v41  ;;  %v1500_v38 = vrot.slane %v1499_v16, 4  ;;  %v1518_v51 = vrot.slane %v1516_v20, 5  ;;  %v7022_v3 = vsel %vm1154_vm3, %v5383_v4, %v983_v2  ;;  %2417 = vmatpush.bf16.msrb.mxu1 %v6869_v6  ;;  %v5339_v41 = vld [vmem:[%s6556_s19 + $0xc8] sm:$0xf] }
  0x94   : > { %1008 = vrot.lane.b32.xlu1 %v1001_v56, %s8616_s26  ;;  %v1513_v43 = vor.u32 %v1512_v22, %v1509_v0  ;;  %v1559_v19 = vrot.slane %v1557_v11, 4  ;;  %v1566_v24 = vshll.u32 %v5526_v18, 16  ;;  %v1562_v46 = vrot.slane %v1560_v42, 5  ;;  %v5354_v22 = vld [vmem:[%s6556_s19 + $0xc4] sm:$0x1] }
  0x95   : > { %v2319_v31 = vpack.c.b16 %v2315_v14, %v2314_v7  ;;  %v1505_v26 = vsel %vm6589_vm2, %v1500_v38, %v1504_v54  ;;  %v1571_v17 = vshrl.u32 %v5519_v8, 16  ;;  %v1574_v55 = vshll.u32 %v5519_v8, 16  ;;  %4329 = vmatpush.bf16.msrb.mxu0 %v6869_v6 }
  0x96   : > { %v1514_v34 = vrot.slane %v1513_v43, 4  ;;  %v2178_v35 = vunpack.c.l.b16 %v1505_v26  ;;  %v1568_v36 = vrot.slane %v1566_v24, 5  ;;  %v1563_v29 = vor.u32 %v1562_v46, %v1559_v19  ;;  %v5618_v43 = vld [vmem:[%s6556_s19 + $0xe8] sm:$0xf]  ;;  %v6106_v19 = vld [vmem:[%s6556_s19 + $0xec] sm:$0xf0] }
  0x97   : > { %2326 = vrot.lane.b32.xlu0 %v2319_v31, %s8619_s16  ;;  %v1573_v37 = vrot.slane %v1571_v17, 4  ;;  %v1580_v27 = vshll.u32 %v5527_v15, 16  ;;  %v5427_v33 = vor.u32 %v7028_v30, %v7025_v25  ;;  %v1576_v40 = vrot.slane %v1574_v55, 5  ;;  %2418 = vmatpush.bf16.msrb.mxu1 %v6915_v13  ;;  %v7066_v26 = vld [vmem:[%s6556_s19 + $0x78] sm:$0xf] }
  0x98   : > { %v1519_v39 = vsel %vm6589_vm2, %v1514_v34, %v1518_v51  ;;  %v1749_v48 = vshrl.u32 %v5552_v32, 16  ;;  %v1752_v59 = vshll.u32 %v5552_v32, 16  ;;  %v1564_v45 = vrot.slane %v1563_v29, 4  ;;  %v5355_v51 = vld [vmem:[%s6556_s19 + $0xcc] sm:$0x1] }
  0x99   : > { %v2179_v9 = vunpack.c.l.b16 %v1519_v39  ;;  %v1582_v47 = vrot.slane %v1580_v27, 5  ;;  %v1758_v52 = vshll.u32 %v5553_v12, 16  ;;  %v1577_v53 = vor.u32 %v1576_v40, %v1573_v37  ;;  %v7046_v58 = vpop.permute.xlu1 %1058  ;;  %4330 = vmatpush.bf16.msrb.mxu0 %v6915_v13  ;;  %v6078_v27 = vld [vmem:[%s6556_s19 + $0x14] sm:$0xf0] }
  0x9a   : > { %v1751_v54 = vrot.slane %v1749_v48, 4  ;;  %v1754_v0 = vrot.slane %v1752_v59, 5  ;;  %v1763_v56 = vshrl.u32 %v5554_v50, 16  ;;  %v7048_v62 = vpop.permute.xlu0 %1134  ;;  %v1569_v16 = vsel %vm6589_vm2, %v1564_v45, %v1568_v36  ;;  %v5386_v36 = vld [vmem:[%s6556_s19 + $0x10] sm:$0xf] }
  0x9b   : > { %v2183_v7 = vpack.c.b16 %v2179_v9, %v2178_v35  ;;  %v1760_v20 = vrot.slane %v1758_v52, 5  ;;  %v1766_v18 = vshll.u32 %v5554_v50, 16  ;;  %v1578_v2 = vrot.slane %v1577_v53, 4  ;;  %v7071_v35 = vld [vmem:[%s6556_s19 + $0x7c] sm:$0xf0]  ;;  %2419 = vmatpush.bf16.msrb.mxu1 %v6927_v21 }
  0x9c   : > { %v2194_v4 = vunpack.c.l.b16 %v1569_v16  ;;  %v1755_v8 = vor.u32 %v1754_v0, %v1751_v54  ;;  %v1765_v11 = vrot.slane %v1763_v56, 4  ;;  %v1772_v38 = vshll.u32 %v5555_v49, 16 }
  0x9d   : > { %2190 = vrot.lane.b32.xlu2 %v2183_v7, %s8620_s0  ;;  %v1768_v14 = vrot.slane %v1766_v18, 5  ;;  %v777_v15 = vshrl.u32 %v5338_v1, 16  ;;  %v780_v42 = vshll.u32 %v5338_v1, 16  ;;  %v1583_v24 = vsel %vm6589_vm2, %v1578_v2, %v1582_v47  ;;  %4331 = vmatpush.bf16.msrb.mxu0 %v6927_v21  ;;  %v5534_v7 = vld [vmem:[%s6556_s19 + $0xe8] sm:$0xf] }
  0x9e   : > { %v1756_v25 = vrot.slane %v1755_v8, 4  ;;  %v786_v30 = vshll.u32 %v5354_v22, 16  ;;  %v791_v31 = vshrl.u32 %v5339_v41, 16  ;;  %v2195_v46 = vunpack.c.l.b16 %v1583_v24  ;;  %v5535_v22 = vld [vmem:[%s6556_s19 + $0xf0] sm:$0xf] }
  0x9f   : > { %1036 = vrot.lane.b32.xlu0 %v5427_v33, %s8617_s17  ;;  %v1769_v17 = vor.u32 %v1768_v14, %v1765_v11  ;;  %v1774_v32 = vrot.slane %v1772_v38, 5  ;;  %v779_v34 = vrot.slane %v777_v15, 4  ;;  %v782_v12 = vrot.slane %v780_v42, 5  ;;  %2420 = vmatpush.bf16.msrb.mxu1 %v6962_v5  ;;  %v5558_v2 = vld [vmem:[%s6556_s19 + $0xec] sm:$0x1] }
  0xa0   : > { %v1761_v55 = vsel %vm6589_vm2, %v1756_v25, %v1760_v20  ;;  %v788_v29 = vrot.slane %v786_v30, 5  ;;  %v793_v37 = vrot.slane %v791_v31, 4  ;;  %v2201_v50 = vpack.c.b16 %v2195_v46, %v2194_v4  ;;  %v5559_v38 = vld [vmem:[%s6556_s19 + $0xf4] sm:$0x1]  ;;  %v6096_v15 = vld [vmem:[%s6556_s19 + $0x3c] sm:$0xf0] }
  0xa1   : > { %v1770_v39 = vrot.slane %v1769_v17, 4  ;;  %v2246_v40 = vunpack.c.l.b16 %v1761_v55  ;;  %v794_v48 = vshll.u32 %v5339_v41, 16  ;;  %v783_v33 = vor.u32 %v782_v12, %v779_v34  ;;  %v985_v1 = vpop.permute.xlu1 %984  ;;  %v1005_v41 = vpop.permute.xlu2 %1004  ;;  %4332 = vmatpush.bf16.msrb.mxu0 %v6962_v5  ;;  %v5356_v31 = vld [vmem:[%s6556_s19 + $0x8] sm:$0xf] }
  0xa2   : > { %v800_v59 = vshll.u32 %v5355_v51, 16  ;;  %v5619_v9 = vor.u32 %v6106_v19, %v5618_v43  ;;  %v5411_v45 = vor.u32 %v7071_v35, %v7066_v26  ;;  %v1003_v47 = vpop.permute.xlu0 %1002  ;;  %2206 = vrot.lane.b32.xlu1 %v2201_v50, %s8616_s26  ;;  %v5387_v53 = vor.u32 %v6078_v27, %v5386_v36  ;;  %v5458_v51 = vld [vmem:[%s6556_s19 + $0x38] sm:$0xf]  ;;  %v5357_v36 = vld [vmem:[%s6556_s19 + $0x10] sm:$0xf] }
  0xa3   : > { %v1775_v49 = vsel %vm6589_vm2, %v1770_v39, %v1774_v32  ;;  %v796_v52 = vrot.slane %v794_v48, 5  ;;  %v784_v0 = vrot.slane %v783_v33, 4  ;;  %v1168_v18 = vsel %vm452_vm4, %v7022_v3, %v1003_v47  ;;  %2421 = vmatpush.bf16.msrb.mxu1 %v6970_v23  ;;  %v5373_v39 = vld [vmem:[%s6556_s19 + $0x14] sm:$0x1] }
  0xa4   : > { %v2247_v54 = vunpack.c.l.b16 %v1775_v49  ;;  %v802_v56 = vrot.slane %v800_v59, 5  ;;  %v1160_v20 = vsel %vm1154_vm3, %v5387_v53, %v985_v1  ;;  %v1177_v11 = vsel %vm1175_vm5, %v1168_v18, %v7001_v60  ;;  %v1396_v49 = vld [vmem:[%s6556_s19 + $0x10] sm:$0xf] }
  0xa5   : > { %v797_v16 = vor.u32 %v796_v52, %v793_v37  ;;  %v789_v8 = vsel %vm6589_vm2, %v784_v0, %v788_v29  ;;  %v7096_v14 = vsel %vm452_vm4, %v1160_v20, %v1005_v41  ;;  %v7105_v43 = vsel %vm1184_vm6, %v1177_v11, %v7046_v58  ;;  %v5372_v58 = vld [vmem:[%s6556_s19 + $0xc] sm:$0x1]  ;;  %4333 = vmatpush.bf16.msrb.mxu0 %v6970_v23  ;;  %v1398_v11 = vld [vmem:[%s6556_s19 + $0x18] sm:$0xf] }
  0xa6   : > { %v2251_v4 = vpack.c.b16 %v2247_v54, %v2246_v40  ;;  %v1072_v42 = vunpack.c.l.b16 %v789_v8  ;;  %v1813_v60 = vshrl.u32 %v5534_v7, 16  ;;  %v1816_v19 = vshll.u32 %v5534_v7, 16 }
  0xa7   : > { %v798_v3 = vrot.slane %v797_v16, 4  ;;  %2234 = vrot.lane.b32.xlu0 %v5619_v9, %s8617_s17  ;;  %v1822_v24 = vshll.u32 %v5558_v2, 16  ;;  %v1827_v25 = vshrl.u32 %v5535_v22, 16  ;;  %v1830_v30 = vshll.u32 %v5535_v22, 16  ;;  %2422 = vmatpush.bf16.msrb.mxu1 %v6997_v10 }
  0xa8   : > { %2258 = vrot.lane.b32.xlu2 %v2251_v4, %s8621_s29  ;;  %v1815_v17 = vrot.slane %v1813_v60, 4  ;;  %v1836_v32 = vshll.u32 %v5559_v38, 16  ;;  %v5459_v34 = vor.u32 %v6096_v15, %v5458_v51  ;;  %v1818_v12 = vrot.slane %v1816_v19, 5  ;;  %v1399_v19 = vld [vmem:[%s6556_s19 + $0x1c] sm:$0x1] }
  0xa9   : > { %v803_v46 = vsel %vm6589_vm2, %v798_v3, %v802_v56  ;;  %v1824_v29 = vrot.slane %v1822_v24, 5  ;;  %v1829_v37 = vrot.slane %v1827_v25, 4  ;;  %v1832_v27 = vrot.slane %v1830_v30, 5  ;;  %v1397_v56 = vld [vmem:[%s6556_s19 + $0x14] sm:$0x1]  ;;  %4334 = vmatpush.bf16.msrb.mxu0 %v6997_v10 }
  0xaa   : > { %v1073_v55 = vunpack.c.l.b16 %v803_v46  ;;  %v1838_v50 = vrot.slane %v1836_v32, 5  ;;  %v831_v40 = vshrl.u32 %v5356_v31, 16  ;;  %v834_v48 = vshll.u32 %v5356_v31, 16 }
  0xab   : > { %v1819_v59 = vor.u32 %v1818_v12, %v1815_v17  ;;  %v840_v9 = vshll.u32 %v5372_v58, 16  ;;  %v845_v47 = vshrl.u32 %v5357_v36, 16  ;;  %v1833_v52 = vor.u32 %v1832_v27, %v1829_v37  ;;  %2423 = vmatpush.bf16.msrb.mxu1 %v7010_v63  ;;  %v1033_v58 = vpop.permute.xlu0 %1032  ;;  %v1061_v37 = vpop.permute.xlu1 %1060 }
  0xac   : > { %v1077_v33 = vpack.c.b16 %v1073_v55, %v1072_v42  ;;  %v833_v53 = vrot.slane %v831_v40, 4  ;;  %v836_v54 = vrot.slane %v834_v48, 5  ;;  %v848_v0 = vshll.u32 %v5357_v36, 16  ;;  %v1081_v48 = vpop.permute.xlu2 %1080 }
  0xad   : > { %v1820_v1 = vrot.slane %v1819_v59, 4  ;;  %v842_v7 = vrot.slane %v840_v9, 5  ;;  %v847_v16 = vrot.slane %v845_v47, 4  ;;  %v854_v20 = vshll.u32 %v5373_v39, 16  ;;  %4335 = vmatpush.bf16.msrb.mxu0 %v7010_v63  ;;  %v5565_v47 = vld [vmem:[%s6556_s19 + $0x58] sm:$0xf] }
  0xae   : > { %1084 = vrot.lane.b32.xlu1 %v1077_v33, %s8618_s28  ;;  %v1834_v18 = vrot.slane %v1833_v52, 4  ;;  %v837_v41 = vor.u32 %v836_v54, %v833_v53  ;;  %v850_v22 = vrot.slane %v848_v0, 5  ;;  %v1437_v2 = vshrl.u32 %v1396_v49, 16  ;;  %v5564_v33 = vld [vmem:[%s6556_s19 + $0x50] sm:$0xf] }
  0xaf   : > { %1112 = vrot.lane.b32.xlu0 %v5459_v34, %s8622_s18  ;;  %v1825_v4 = vsel %vm6589_vm2, %v1820_v1, %v1824_v29  ;;  %v856_v8 = vrot.slane %v854_v20, 5  ;;  %v1440_v38 = vshll.u32 %v1396_v49, 16  ;;  %v1446_v51 = vshll.u32 %v1397_v56, 16  ;;  %v5588_v49 = vld [vmem:[%s6556_s19 + $0x54] sm:$0x1] }
  0xb0   : > { %988 = vrot.lane.b32.xlu2 %v5411_v45, %s8620_s0  ;;  %v1839_v15 = vsel %vm6589_vm2, %v1834_v18, %v1838_v50  ;;  %v2262_v3 = vunpack.c.l.b16 %v1825_v4  ;;  %v838_v42 = vrot.slane %v837_v41, 4  ;;  %v851_v60 = vor.u32 %v850_v22, %v847_v16  ;;  %v5576_v0 = vld [vmem:[%s6556_s19 + $0x18] sm:$0xf]  ;;  %v5577_v41 = vld [vmem:[%s6556_s19 + $0x1c] sm:$0x1] }
  0xb1   : > { %v2263_v24 = vunpack.c.l.b16 %v1839_v15  ;;  %v1439_v25 = vrot.slane %v1437_v2, 4  ;;  %v1442_v26 = vrot.slane %v1440_v38, 5  ;;  %v1448_v35 = vrot.slane %v1446_v51, 5  ;;  %v5578_v22 = vld [vmem:[%s6556_s19 + $0x20] sm:$0xf] }
  0xb2   : > { %v843_v45 = vsel %vm6589_vm2, %v838_v42, %v842_v7  ;;  %v852_v30 = vrot.slane %v851_v60, 4  ;;  %v1451_v31 = vshrl.u32 %v1398_v11, 16  ;;  %v1454_v46 = vshll.u32 %v1398_v11, 16  ;;  %v5579_v11 = vld [vmem:[%s6556_s19 + $0x24] sm:$0x1] }
  0xb3   : > { %v2269_v17 = vpack.c.b16 %v2263_v24, %v2262_v3  ;;  %v1142_v32 = vunpack.c.l.b16 %v843_v45  ;;  %v1443_v34 = vor.u32 %v1442_v26, %v1439_v25  ;;  %v1460_v36 = vshll.u32 %v1399_v19, 16  ;;  %v5634_v42 = vld [vmem:[%s6556_s19 + $0x60] sm:$0xf]  ;;  %v6110_v26 = vld [vmem:[%s6556_s19 + $0x64] sm:$0xf0] }
  0xb4   : > { %v857_v55 = vsel %vm6589_vm2, %v852_v30, %v856_v8  ;;  %v1453_v12 = vrot.slane %v1451_v31, 4  ;;  %v1456_v29 = vrot.slane %v1454_v46, 5  ;;  %v1195_v40 = vsel %vm1193_vm7, %v7105_v43, %v7054_v44  ;;  %v5589_v43 = vld [vmem:[%s6556_s19 + $0x5c] sm:$0x1]  ;;  %v5442_v46 = vld [vmem:[%s6556_s19 + $0x108] sm:$0xf] }
  0xb5   : > { %v1143_v27 = vunpack.c.l.b16 %v857_v55  ;;  %v1444_v50 = vrot.slane %v1443_v34, 4  ;;  %v1462_v39 = vrot.slane %v1460_v36, 5  ;;  %v1179_v9 = vsel %vm1175_vm5, %v7096_v14, %v1033_v58  ;;  %v1109_v58 = vpop.permute.xlu0 %1108  ;;  %v5606_v55 = vld [vmem:[%s6556_s19 + $0x68] sm:$0xf] }
  0xb6   : > { %2274 = vrot.lane.b32.xlu1 %v2269_v17, %s8618_s28  ;;  %v1457_v59 = vor.u32 %v1456_v29, %v1453_v12  ;;  %v1204_v54 = vsel %vm1202_vm8, %v1195_v40, %v7003_v57  ;;  %v1188_v44 = vsel %vm1184_vm6, %v1179_v9, %v1061_v37  ;;  %v2041_v16 = vshrl.u32 %v5564_v33, 16  ;;  %v6092_v17 = vld [vmem:[%s6556_s19 + $0x10c] sm:$0xf0] }
  0xb7   : > { %v1150_v52 = vpack.c.b16 %v1143_v27, %v1142_v32  ;;  %v1449_v53 = vsel %vm6589_vm2, %v1444_v50, %v1448_v35  ;;  %v1213_v14 = vsel %vm1211_vm9, %v1204_v54, %v7048_v62  ;;  %v1197_v7 = vsel %vm1193_vm7, %v1188_v44, %v1081_v48  ;;  %v6103_v50 = vld [vmem:[%s6556_s19 + $0x6c] sm:$0xf0] }
  0xb8   : > { %v1458_v56 = vrot.slane %v1457_v59, 4  ;;  %v2174_v1 = vunpack.c.l.b16 %v1449_v53  ;;  %1298 = vmatmul.bf16.vlgmr.msra.gmra.mxu0 %v1213_v14  ;;  %v2044_v20 = vshll.u32 %v5564_v33, 16  ;;  %v2050_v18 = vshll.u32 %v5588_v49, 16  ;;  %v5820_v59 = vld [vmem:[%s6556_s19 + $0xd8] sm:$0xf]  ;;  %v2189_v14 = vpop.permute.xlu2 %2188 }
  0xb9   : > { %5512 = vmatmul.msk.bf16.vlgmr.msra.gmra.mxu1 %vm1154_vm3, %v1150_v52  ;;  %v2055_v57 = vshrl.u32 %v5565_v47, 16  ;;  %v2058_v4 = vshll.u32 %v5565_v47, 16  ;;  %v2064_v8 = vshll.u32 %v5589_v43, 16  ;;  %v1949_v62 = vshrl.u32 %v5576_v0, 16  ;;  %v5821_v52 = vld [vmem:[%s6556_s19 + $0xe0] sm:$0xf] }
  0xba   : > { %v1463_v2 = vsel %vm6589_vm2, %v1458_v56, %v1462_v39  ;;  %3205 = vmatpush.bf16.msra.mxu1 %v6853_v61  ;;  %v2043_v51 = vrot.slane %v2041_v16, 4  ;;  %v2046_v15 = vrot.slane %v2044_v20, 5  ;;  %v2052_v3 = vrot.slane %v2050_v18, 5  ;;  %v5844_v53 = vld [vmem:[%s6556_s19 + $0xdc] sm:$0x1] }
  0xbb   : > { %v2175_v38 = vunpack.c.l.b16 %v1463_v2  ;;  %v2057_v60 = vrot.slane %v2055_v57, 4  ;;  %v2060_v19 = vrot.slane %v2058_v4, 5  ;;  %v2066_v24 = vrot.slane %v2064_v8, 5  ;;  %v5845_v16 = vld [vmem:[%s6556_s19 + $0xe4] sm:$0x1] }
  0xbc   : > { %v1951_v25 = vrot.slane %v1949_v62, 4  ;;  %v2047_v45 = vor.u32 %v2046_v15, %v2043_v51  ;;  %v1952_v30 = vshll.u32 %v5576_v0, 16  ;;  %v1958_v31 = vshll.u32 %v5577_v41, 16  ;;  %v5358_v18 = vld [vmem:[%s6556_s19 + $0x18] sm:$0xf] }
  0xbd   : > { %v2181_v35 = vpack.c.b16 %v2175_v38, %v2174_v1  ;;  %v2061_v61 = vor.u32 %v2060_v19, %v2057_v60  ;;  %v1963_v32 = vshrl.u32 %v5578_v22, 16  ;;  %v1966_v34 = vshll.u32 %v5578_v22, 16  ;;  %v5374_v4 = vld [vmem:[%s6556_s19 + $0x1c] sm:$0x1]  ;;  %v5738_v38 = vld [vmem:[%s6556_s19 + $0xd8] sm:$0xf] }
  0xbe   : > { %v1972_v36 = vshll.u32 %v5579_v11, 16  ;;  %3206 = vmatpush.bf16.msra.mxu1 %v6869_v6  ;;  %v2048_v12 = vrot.slane %v2047_v45, 4  ;;  %v1954_v29 = vrot.slane %v1952_v30, 5  ;;  %v1960_v37 = vrot.slane %v1958_v31, 5  ;;  %v6117_v51 = vld [vmem:[%s6556_s19 + $0xdc] sm:$0xf0] }
  0xbf   : > { %2186 = vrot.lane.b32.xlu2 %v2181_v35, %s8620_s0  ;;  %v5635_v27 = vor.u32 %v6110_v26, %v5634_v42  ;;  %v2062_v39 = vrot.slane %v2061_v61, 4  ;;  %v1965_v40 = vrot.slane %v1963_v32, 4  ;;  %v1968_v48 = vrot.slane %v1966_v34, 5  ;;  %v7196_v42 = vpop.permute.xlu1 %1136  ;;  %v5359_v45 = vld [vmem:[%s6556_s19 + $0x20] sm:$0xf] }
  0xc0   : > { %v1974_v33 = vrot.slane %v1972_v36, 5  ;;  %v2053_v9 = vsel %vm6589_vm2, %v2048_v12, %v2052_v3  ;;  %v1955_v47 = vor.u32 %v1954_v29, %v1951_v25  ;;  %v5443_v6 = vor.u32 %v6092_v17, %v5442_v46  ;;  %v5375_v31 = vld [vmem:[%s6556_s19 + $0x24] sm:$0x1] }
  0xc1   : > { %2302 = vrot.lane.b32.xlu0 %v5635_v27, %s8622_s18  ;;  %v7177_v49 = vsel %vm1202_vm8, %v1197_v7, %v1109_v58  ;;  %v2067_v54 = vsel %vm6589_vm2, %v2062_v39, %v2066_v24  ;;  %v2328_v44 = vunpack.c.l.b16 %v2053_v9  ;;  %v1969_v43 = vor.u32 %v1968_v48, %v1965_v40  ;;  %v5544_v58 = vld [vmem:[%s6556_s19 + $0xa0] sm:$0xf]  ;;  %v5545_v48 = vld [vmem:[%s6556_s19 + $0xa4] sm:$0x1] }
  0xc2   : > { %v5607_v0 = vor.u32 %v6103_v50, %v5606_v55  ;;  %3207 = vmatpush.bf16.msra.mxu1 %v6915_v13  ;;  %v2329_v56 = vunpack.c.l.b16 %v2067_v54  ;;  %v1956_v1 = vrot.slane %v1955_v47, 4  ;;  %v3441_v20 = vshrl.u32 %v5820_v59, 16 }
  0xc3   : > { %v3444_v7 = vshll.u32 %v5820_v59, 16  ;;  %v1970_v57 = vrot.slane %v1969_v43, 4  ;;  %v3450_v22 = vshll.u32 %v5844_v53, 16  ;;  %v3455_v2 = vshrl.u32 %v5821_v52, 16 }
  0xc4   : > { %v7187_v41 = vsel %vm1154_vm3, %v5607_v0, %v2189_v14  ;;  %v2336_v8 = vpack.c.b16 %v2329_v56, %v2328_v44  ;;  %v1961_v13 = vsel %vm6589_vm2, %v1956_v1, %v1960_v37  ;;  %v3443_v11 = vrot.slane %v3441_v20, 4  ;;  %v5547_v20 = vld [vmem:[%s6556_s19 + $0xac] sm:$0x1] }
  0xc5   : > { %v3446_v62 = vrot.slane %v3444_v7, 5  ;;  %v1975_v15 = vsel %vm6589_vm2, %v1970_v57, %v1974_v33  ;;  %v2310_v3 = vunpack.c.l.b16 %v1961_v13  ;;  %v3452_v60 = vrot.slane %v3450_v22, 5  ;;  %v5546_v33 = vld [vmem:[%s6556_s19 + $0xa8] sm:$0xf] }
  0xc6   : > { %v3457_v19 = vrot.slane %v3455_v2, 4  ;;  %3208 = vmatpush.bf16.msra.mxu1 %v6927_v21  ;;  %5644 = vmatmul.msk.bf16.vlgmr.msra.gmra.mxu3 %vm1154_vm3, %v2336_v8  ;;  %v2311_v24 = vunpack.c.l.b16 %v1975_v15  ;;  %v3458_v26 = vshll.u32 %v5821_v52, 16  ;;  %v3464_v35 = vshll.u32 %v5845_v16, 16 }
  0xc7   : > { %1064 = vrot.lane.b32.xlu2 %v5443_v6, %s8621_s29  ;;  %v3447_v25 = vor.u32 %v3446_v62, %v3443_v11  ;;  %v5739_v30 = vor.u32 %v6117_v51, %v5738_v38  ;;  %v859_v46 = vshrl.u32 %v5358_v18, 16  ;;  %v862_v17 = vshll.u32 %v5358_v18, 16  ;;  %v2237_v8 = vpop.permute.xlu1 %2236  ;;  %v2257_v38 = vpop.permute.xlu2 %2256  ;;  %v5566_v51 = vld [vmem:[%s6556_s19 + $0x60] sm:$0xf] }
  0xc8   : > { %v868_v61 = vshll.u32 %v5374_v4, 16  ;;  %v2317_v32 = vpack.c.b16 %v2311_v24, %v2310_v3  ;;  %v3460_v21 = vrot.slane %v3458_v26, 5  ;;  %v3466_v36 = vrot.slane %v3464_v35, 5  ;;  %v5567_v24 = vld [vmem:[%s6556_s19 + $0x68] sm:$0xf] }
  0xc9   : > { %v3448_v34 = vrot.slane %v3447_v25, 4  ;;  %2957 = vrot.lane.b32.xlu0 %v5739_v30, %s8620_s0  ;;  %v861_v55 = vrot.slane %v859_v46, 4  ;;  %v864_v12 = vrot.slane %v862_v17, 5  ;;  %v873_v37 = vshrl.u32 %v5359_v45, 16  ;;  %v5590_v25 = vld [vmem:[%s6556_s19 + $0x64] sm:$0x1] }
  0xca   : > { %v870_v29 = vrot.slane %v868_v61, 5  ;;  %3209 = vmatpush.bf16.msra.mxu1 %v6962_v5  ;;  %2322 = vrot.lane.b32.xlu1 %v2317_v32, %s8619_s16  ;;  %v3461_v50 = vor.u32 %v3460_v21, %v3457_v19  ;;  %v876_v39 = vshll.u32 %v5359_v45, 16  ;;  %v882_v40 = vshll.u32 %v5375_v31, 16  ;;  %v2209_v5 = vpop.permute.xlu0 %2208  ;;  %v5591_v31 = vld [vmem:[%s6556_s19 + $0x6c] sm:$0x1] }
  0xcb   : > { %v3453_v27 = vsel %vm6589_vm2, %v3448_v34, %v3452_v60  ;;  %v865_v9 = vor.u32 %v864_v12, %v861_v55  ;;  %v875_v47 = vrot.slane %v873_v37, 4  ;;  %v1693_v6 = vshrl.u32 %v5544_v58, 16  ;;  %v5934_v61 = vld [vmem:[%s6556_s19 + $0x50] sm:$0xf]  ;;  %v6141_v32 = vld [vmem:[%s6556_s19 + $0x54] sm:$0xf0] }
  0xcc   : > { %v4104_v59 = vunpack.c.l.b16 %v3453_v27  ;;  %v3462_v52 = vrot.slane %v3461_v50, 4  ;;  %v878_v53 = vrot.slane %v876_v39, 5  ;;  %v884_v54 = vrot.slane %v882_v40, 5  ;;  %v7239_v55 = vld [vmem:[%s6556_s19 + $0x80] sm:$0xf] }
  0xcd   : > { %v1696_v44 = vshll.u32 %v5544_v58, 16  ;;  %v866_v43 = vrot.slane %v865_v9, 4  ;;  %v1695_v0 = vrot.slane %v1693_v6, 4  ;;  %v1702_v56 = vshll.u32 %v5545_v48, 16  ;;  %v7242_v50 = vld [vmem:[%s6556_s19 + $0x84] sm:$0xf0] }
  0xce   : > { %v1707_v1 = vshrl.u32 %v5546_v33, 16  ;;  %3210 = vmatpush.bf16.msra.mxu1 %v6970_v23  ;;  %v3467_v14 = vsel %vm6589_vm2, %v3462_v52, %v3466_v36  ;;  %v879_v16 = vor.u32 %v878_v53, %v875_v47  ;;  %v1710_v18 = vshll.u32 %v5546_v33, 16  ;;  %v5390_v39 = vld [vmem:[%s6556_s19 + $0x20] sm:$0xf]  ;;  %v6079_v47 = vld [vmem:[%s6556_s19 + $0x24] sm:$0xf0] }
  0xcf   : > { %v1698_v7 = vrot.slane %v1696_v44, 5  ;;  %v4105_v57 = vunpack.c.l.b16 %v3467_v14  ;;  %v871_v22 = vsel %vm6589_vm2, %v866_v43, %v870_v29  ;;  %v1704_v2 = vrot.slane %v1702_v56, 5  ;;  %v5852_v44 = vld [vmem:[%s6556_s19 + $0x50] sm:$0xf]  ;;  %v5853_v56 = vld [vmem:[%s6556_s19 + $0x58] sm:$0xf] }
  0xd0   : > { %v1709_v4 = vrot.slane %v1707_v1, 4  ;;  %v880_v13 = vrot.slane %v879_v16, 4  ;;  %v1144_v11 = vunpack.c.l.b16 %v871_v22  ;;  %v1712_v62 = vrot.slane %v1710_v18, 5  ;;  %v5876_v1 = vld [vmem:[%s6556_s19 + $0x54] sm:$0x1] }
  0xd1   : > { %v1699_v23 = vor.u32 %v1698_v7, %v1695_v0  ;;  %v4112_v15 = vpack.c.b16 %v4105_v57, %v4104_v59  ;;  %v1716_v3 = vshll.u32 %v5547_v20, 16  ;;  %v1216_v60 = vsel %vm1211_vm9, %v7177_v49, %v7196_v42  ;;  %v5754_v49 = vld [vmem:[%s6556_s19 + $0x8] sm:$0xf]  ;;  %v6121_v42 = vld [vmem:[%s6556_s19 + $0xc] sm:$0xf0]  ;;  %v7255_v20 = vpop.permute.xlu1 %2304 }
  0xd2   : > { %v2357_v19 = vsel %vm452_vm4, %v7187_v41, %v2209_v5  ;;  %3211 = vmatpush.bf16.msra.mxu1 %v6997_v10  ;;  %v885_v26 = vsel %vm6589_vm2, %v880_v13, %v884_v54  ;;  %v1713_v45 = vor.u32 %v1712_v62, %v1709_v4  ;;  %1303 = vmatmul.bf16.gmra.mxu0 %v1216_v60  ;;  %v2069_v17 = vshrl.u32 %v5566_v51, 16  ;;  %v2277_v9 = vpop.permute.xlu0 %2276  ;;  %v5877_v57 = vld [vmem:[%s6556_s19 + $0x5c] sm:$0x1]  ;;  %v987_v4 = vpop.permute.xlu2 %986 }
  0xd3   : > { %v1700_v35 = vrot.slane %v1699_v23, 4  ;;  %v2365_v30 = vsel %vm1175_vm5, %v2357_v19, %v2237_v8  ;;  %4116 = vrot.lane.b32.xlu1 %v4112_v15, %s8616_s26  ;;  %v1145_v41 = vunpack.c.l.b16 %v885_v26  ;;  %v1718_v46 = vrot.slane %v1716_v3, 5  ;;  %v5828_v23 = vld [vmem:[%s6556_s19 + $0x90] sm:$0xf]  ;;  %v6125_v3 = vld [vmem:[%s6556_s19 + $0x54] sm:$0xf0] }
  0xd4   : > { %v2373_v10 = vsel %vm1184_vm6, %v2365_v30, %v2257_v38  ;;  %v1714_v21 = vrot.slane %v1713_v45, 4  ;;  %v2072_v36 = vshll.u32 %v5566_v51, 16  ;;  %v2078_v58 = vshll.u32 %v5590_v25, 16  ;;  %v5829_v26 = vld [vmem:[%s6556_s19 + $0x94] sm:$0x1] }
  0xd5   : > { %v1705_v34 = vsel %vm6589_vm2, %v1700_v35, %v1704_v2  ;;  %v1151_v12 = vpack.c.b16 %v1145_v41, %v1144_v11  ;;  %v2071_v37 = vrot.slane %v2069_v17, 4  ;;  %v2083_v27 = vshrl.u32 %v5567_v24, 16  ;;  %v5770_v11 = vld [vmem:[%s6556_s19 + $0x50] sm:$0xf] }
  0xd6   : > { %v2242_v29 = vunpack.c.l.b16 %v1705_v34  ;;  %3212 = vmatpush.bf16.msra.mxu1 %v7010_v63  ;;  %v1719_v40 = vsel %vm6589_vm2, %v1714_v21, %v1718_v46  ;;  %v2074_v48 = vrot.slane %v2072_v36, 5  ;;  %v2080_v33 = vrot.slane %v2078_v58, 5 }
  0xd7   : > { %v2086_v59 = vshll.u32 %v5567_v24, 16  ;;  %5513 = vmatmul.msk.bf16.gmra.mxu1 %vm1154_vm3, %v1151_v12  ;;  %v2243_v6 = vunpack.c.l.b16 %v1719_v40  ;;  %v2085_v52 = vrot.slane %v2083_v27, 4  ;;  %v2092_v53 = vshll.u32 %v5591_v31, 16  ;;  %v6101_v40 = vld [vmem:[%s6556_s19 + $0x4c] sm:$0xf0] }
  0xd8   : > { %v5755_v54 = vor.u32 %v6121_v42, %v5754_v49  ;;  %v2075_v5 = vor.u32 %v2074_v48, %v2071_v37  ;;  %v5935_v43 = vor.u32 %v6141_v32, %v5934_v61  ;;  %v5475_v0 = vor.u32 %v7242_v50, %v7239_v55  ;;  %v5830_v49 = vld [vmem:[%s6556_s19 + $0x98] sm:$0xf]  ;;  %v5831_v32 = vld [vmem:[%s6556_s19 + $0x9c] sm:$0x1] }
  0xd9   : > { %v2088_v63 = vrot.slane %v2086_v59, 5  ;;  %v2249_v14 = vpack.c.b16 %v2243_v6, %v2242_v29  ;;  %v2094_v16 = vrot.slane %v2092_v53, 5  ;;  %v7258_v7 = vsel %vm1193_vm7, %v2373_v10, %v2277_v9  ;;  %v5598_v29 = vld [vmem:[%s6556_s19 + $0x48] sm:$0xf] }
  0xda   : > { %v5391_v18 = vor.u32 %v6079_v47, %v5390_v39  ;;  %v2076_v22 = vrot.slane %v2075_v5, 4  ;;  %4144 = vrot.lane.b32.xlu0 %v5935_v43, %s8617_s17  ;;  %v3697_v8 = vshrl.u32 %v5852_v44, 16  ;;  %v3700_v13 = vshll.u32 %v5852_v44, 16  ;;  %v5568_v47 = vld [vmem:[%s6556_s19 + $0x70] sm:$0xf]  ;;  %v1007_v44 = vpop.permute.xlu1 %1006  ;;  %v2325_v5 = vpop.permute.xlu0 %2324 }
  0xdb   : > { %v2089_v2 = vor.u32 %v2088_v63, %v2085_v52  ;;  %2254 = vrot.lane.b32.xlu2 %v2249_v14, %s8621_s29  ;;  %3005 = vrot.lane.b32.xlu1 %v5755_v54, %s8617_s17  ;;  %v3706_v38 = vshll.u32 %v5876_v1, 16  ;;  %v3711_v51 = vshrl.u32 %v5853_v56, 16  ;;  %v3714_v15 = vshll.u32 %v5853_v56, 16  ;;  %v5592_v14 = vld [vmem:[%s6556_s19 + $0x74] sm:$0x1] }
  0xdc   : > { %v1163_v62 = vsel %vm1154_vm3, %v5391_v18, %v987_v4  ;;  %v2081_v60 = vsel %vm6589_vm2, %v2076_v22, %v2080_v33  ;;  %v3699_v24 = vrot.slane %v3697_v8, 4  ;;  %v3702_v25 = vrot.slane %v3700_v13, 5  ;;  %v2185_v18 = vpop.permute.xlu2 %2184  ;;  %v5569_v22 = vld [vmem:[%s6556_s19 + $0x78] sm:$0xf] }
  0xdd   : > { %v2090_v19 = vrot.slane %v2089_v2, 4  ;;  %v2330_v35 = vunpack.c.l.b16 %v2081_v60  ;;  %v3708_v45 = vrot.slane %v3706_v38, 5  ;;  %v3713_v30 = vrot.slane %v3711_v51, 4 }
  0xde   : > { %v3716_v31 = vrot.slane %v3714_v15, 5  ;;  %v3703_v41 = vor.u32 %v3702_v25, %v3699_v24  ;;  %v3720_v46 = vshll.u32 %v5877_v57, 16  ;;  %v5771_v10 = vor.u32 %v6125_v3, %v5770_v11  ;;  %v5361_v24 = vld [vmem:[%s6556_s19 + $0x30] sm:$0xf] }
  0xdf   : > { %v2095_v42 = vsel %vm6589_vm2, %v2090_v19, %v2094_v16  ;;  %v3321_v34 = vshrl.u32 %v5828_v23, 16  ;;  %v3324_v21 = vshll.u32 %v5828_v23, 16  ;;  %v3330_v55 = vshll.u32 %v5829_v26, 16  ;;  %v5593_v23 = vld [vmem:[%s6556_s19 + $0x7c] sm:$0x1] }
  0xe0   : > { %v2331_v17 = vunpack.c.l.b16 %v2095_v42  ;;  %v3717_v61 = vor.u32 %v3716_v31, %v3713_v30  ;;  %v3704_v36 = vrot.slane %v3703_v41, 4  ;;  %v3722_v58 = vrot.slane %v3720_v46, 5  ;;  %v5377_v41 = vld [vmem:[%s6556_s19 + $0x34] sm:$0x1] }
  0xe1   : > { %v3335_v12 = vshrl.u32 %v5830_v49, 16  ;;  %v3323_v50 = vrot.slane %v3321_v34, 4  ;;  %v3326_v39 = vrot.slane %v3324_v21, 5  ;;  %v3332_v33 = vrot.slane %v3330_v55, 5  ;;  %v5786_v34 = vld [vmem:[%s6556_s19 + $0x98] sm:$0xf] }
  0xe2   : > { %v2337_v37 = vpack.c.b16 %v2331_v17, %v2330_v35  ;;  %v3718_v27 = vrot.slane %v3717_v61, 4  ;;  %v3709_v48 = vsel %vm6589_vm2, %v3704_v36, %v3708_v45  ;;  %3033 = vrot.lane.b32.xlu0 %v5771_v10, %s8621_s29  ;;  %v3338_v9 = vshll.u32 %v5830_v49, 16  ;;  %v5376_v45 = vld [vmem:[%s6556_s19 + $0x2c] sm:$0x1]  ;;  %v6129_v21 = vld [vmem:[%s6556_s19 + $0x9c] sm:$0xf0] }
  0xe3   : > { %v3337_v59 = vrot.slane %v3335_v12, 4  ;;  %1140 = vrot.lane.b32.xlu2 %v5475_v0, %s8619_s16  ;;  %v4172_v52 = vunpack.c.l.b16 %v3709_v48  ;;  %v3327_v53 = vor.u32 %v3326_v39, %v3323_v50  ;;  %v3344_v54 = vshll.u32 %v5831_v32, 16 }
  0xe4   : > { %5645 = vmatmul.msk.bf16.gmra.mxu3 %vm1154_vm3, %v2337_v37  ;;  %v3723_v6 = vsel %vm6589_vm2, %v3718_v27, %v3722_v58  ;;  %v3340_v43 = vrot.slane %v3338_v9, 5  ;;  %v7286_v56 = vsel %vm452_vm4, %v1163_v62, %v1007_v44  ;;  %v5599_v1 = vor.u32 %v6101_v40, %v5598_v29  ;;  %v5360_v62 = vld [vmem:[%s6556_s19 + $0x28] sm:$0xf]  ;;  %v5950_v29 = vld [vmem:[%s6556_s19 + $0xe0] sm:$0xf] }
  0xe5   : > { %v4173_v63 = vunpack.c.l.b16 %v3723_v6  ;;  %v3328_v16 = vrot.slane %v3327_v53, 4  ;;  %v3346_v0 = vrot.slane %v3344_v54, 5  ;;  %v2389_v57 = vsel %vm1202_vm8, %v7258_v7, %v7255_v20  ;;  %v6145_v40 = vld [vmem:[%s6556_s19 + $0xe4] sm:$0xf0]  ;;  %v5649_v44 = vld [vmem:[%s6556_s19 + $0x98] sm:$0xf] }
  0xe6   : > { %v2097_v2 = vshrl.u32 %v5568_v47, 16  ;;  %v3341_v8 = vor.u32 %v3340_v43, %v3337_v59  ;;  %v7294_v13 = vsel %vm1154_vm3, %v5599_v1, %v2185_v18  ;;  %v2399_v11 = vsel %vm1211_vm9, %v2389_v57, %v2325_v5  ;;  %v5664_v5 = vld [vmem:[%s6556_s19 + $0x94] sm:$0x1] }
  0xe7   : > { %v4180_v4 = vpack.c.b16 %v4173_v63, %v4172_v52  ;;  %v3333_v38 = vsel %vm6589_vm2, %v3328_v16, %v3332_v33  ;;  %2434 = vmatmul.bf16.vlgmr.msra.gmra.mxu2 %v2399_v11  ;;  %v2100_v15 = vshll.u32 %v5568_v47, 16  ;;  %v2106_v20 = vshll.u32 %v5592_v14, 16  ;;  %v5648_v47 = vld [vmem:[%s6556_s19 + $0x90] sm:$0xf] }
  0xe8   : > { %v2099_v51 = vrot.slane %v2097_v2, 4  ;;  %v3342_v7 = vrot.slane %v3341_v8, 4  ;;  %v4084_v3 = vunpack.c.l.b16 %v3333_v38  ;;  %v2111_v60 = vshrl.u32 %v5569_v22, 16  ;;  %v5665_v2 = vld [vmem:[%s6556_s19 + $0x9c] sm:$0x1] }
  0xe9   : > { %4184 = vrot.lane.b32.xlu1 %v4180_v4, %s8618_s28  ;;  %v2114_v19 = vshll.u32 %v5569_v22, 16  ;;  %v2102_v25 = vrot.slane %v2100_v15, 5  ;;  %v2108_v26 = vrot.slane %v2106_v20, 5  ;;  %v2120_v35 = vshll.u32 %v5593_v23, 16  ;;  %v1035_v23 = vpop.permute.xlu0 %1034  ;;  %v2205_v20 = vpop.permute.xlu1 %2204 }
  0xea   : > { %v887_v30 = vshrl.u32 %v5360_v62, 16  ;;  %v3347_v31 = vsel %vm6589_vm2, %v3342_v7, %v3346_v0  ;;  %v2113_v49 = vrot.slane %v2111_v60, 4  ;;  %v890_v46 = vshll.u32 %v5360_v62, 16  ;;  %v1063_v7 = vpop.permute.xlu2 %1062 }
  0xeb   : > { %v2116_v42 = vrot.slane %v2114_v19, 5  ;;  %v4085_v10 = vunpack.c.l.b16 %v3347_v31  ;;  %v2103_v17 = vor.u32 %v2102_v25, %v2099_v51  ;;  %v2122_v61 = vrot.slane %v2120_v35, 5 }
  0xec   : > { %v889_v32 = vrot.slane %v887_v30, 4  ;;  %v892_v58 = vrot.slane %v890_v46, 5  ;;  %v896_v55 = vshll.u32 %v5376_v45, 16  ;;  %v901_v12 = vshrl.u32 %v5361_v24, 16 }
  0xed   : > { %v2117_v36 = vor.u32 %v2116_v42, %v2113_v49  ;;  %v4092_v37 = vpack.c.b16 %v4085_v10, %v4084_v3  ;;  %v2104_v27 = vrot.slane %v2103_v17, 4  ;;  %v904_v50 = vshll.u32 %v5361_v24, 16  ;;  %v5832_v3 = vld [vmem:[%s6556_s19 + $0xa0] sm:$0xf]  ;;  %v5834_v49 = vld [vmem:[%s6556_s19 + $0xa8] sm:$0xf] }
  0xee   : > { %v910_v39 = vshll.u32 %v5377_v41, 16  ;;  %v893_v33 = vor.u32 %v892_v58, %v889_v32  ;;  %v898_v59 = vrot.slane %v896_v55, 5  ;;  %v903_v9 = vrot.slane %v901_v12, 4 }
  0xef   : > { %v2118_v48 = vrot.slane %v2117_v36, 4  ;;  %4096 = vrot.lane.b32.xlu2 %v4092_v37, %s8620_s0  ;;  %v2109_v6 = vsel %vm6589_vm2, %v2104_v27, %v2108_v26  ;;  %v906_v52 = vrot.slane %v904_v50, 5  ;;  %v5787_v54 = vor.u32 %v6129_v21, %v5786_v34  ;;  %v5833_v26 = vld [vmem:[%s6556_s19 + $0xa4] sm:$0x1]  ;;  %v5860_v36 = vld [vmem:[%s6556_s19 + $0x8] sm:$0xf] }
  0xf0   : > { %v912_v53 = vrot.slane %v910_v39, 5  ;;  %v2332_v43 = vunpack.c.l.b16 %v2109_v6  ;;  %v894_v1 = vrot.slane %v893_v33, 4  ;;  %v5951_v14 = vor.u32 %v6145_v40, %v5950_v29  ;;  %v6133_v39 = vld [vmem:[%s6556_s19 + $0xe4] sm:$0xf0] }
  0xf1   : > { %v2123_v63 = vsel %vm6589_vm2, %v2118_v48, %v2122_v61  ;;  %v907_v0 = vor.u32 %v906_v52, %v903_v9  ;;  %3081 = vrot.lane.b32.xlu1 %v5787_v54, %s8622_s18  ;;  %v2532_v18 = vshrl.u32 %v5648_v47, 16  ;;  %v2535_v57 = vshll.u32 %v5648_v47, 16  ;;  %v5835_v61 = vld [vmem:[%s6556_s19 + $0xac] sm:$0x1]  ;;  %v5862_v54 = vld [vmem:[%s6556_s19 + $0x10] sm:$0xf] }
  0xf2   : > { %v2333_v16 = vunpack.c.l.b16 %v2123_v63  ;;  %v899_v22 = vsel %vm6589_vm2, %v894_v1, %v898_v59  ;;  %4212 = vrot.lane.b32.xlu0 %v5951_v14, %s8622_s18  ;;  %v2541_v4 = vshll.u32 %v5664_v5, 16  ;;  %v2546_v8 = vshrl.u32 %v5649_v44, 16  ;;  %v5861_v9 = vld [vmem:[%s6556_s19 + $0xc] sm:$0x1]  ;;  %v5863_v63 = vld [vmem:[%s6556_s19 + $0x14] sm:$0x1] }
  0xf3   : > { %v2549_v11 = vshll.u32 %v5649_v44, 16  ;;  %v908_v38 = vrot.slane %v907_v0, 4  ;;  %v1146_v51 = vunpack.c.l.b16 %v899_v22  ;;  %v2534_v15 = vrot.slane %v2532_v18, 4 }
  0xf4   : > { %v2338_v62 = vpack.c.b16 %v2333_v16, %v2332_v43  ;;  %v2537_v60 = vrot.slane %v2535_v57, 5  ;;  %v2543_v19 = vrot.slane %v2541_v4, 5  ;;  %v2548_v24 = vrot.slane %v2546_v8, 4  ;;  %v1083_v57 = vpop.permute.xlu1 %1082 }
  0xf5   : > { %v2551_v25 = vrot.slane %v2549_v11, 5  ;;  %v913_v35 = vsel %vm6589_vm2, %v908_v38, %v912_v53  ;;  %v2555_v45 = vshll.u32 %v5665_v2, 16  ;;  %v7331_v30 = vsel %vm452_vm4, %v7294_v13, %v2205_v20 }
  0xf6   : > { %5646 = vmatmul.msk.bf16.gmra.mxu3 %vm1154_vm3, %v2338_v62  ;;  %v1181_v31 = vsel %vm1175_vm5, %v7286_v56, %v1035_v23  ;;  %v1147_v42 = vunpack.c.l.b16 %v913_v35  ;;  %v2538_v41 = vor.u32 %v2537_v60, %v2534_v15  ;;  %v3349_v32 = vshrl.u32 %v5832_v3, 16  ;;  %v5802_v56 = vld [vmem:[%s6556_s19 + $0xe0] sm:$0xf]  ;;  %v5362_v15 = vld [vmem:[%s6556_s19 + $0x38] sm:$0xf] }
  0xf7   : > { %v2552_v46 = vor.u32 %v2551_v25, %v2548_v24  ;;  %v1190_v10 = vsel %vm1184_vm6, %v1181_v31, %v1063_v7  ;;  %v2557_v17 = vrot.slane %v2555_v45, 5  ;;  %v3352_v34 = vshll.u32 %v5832_v3, 16  ;;  %v5378_v24 = vld [vmem:[%s6556_s19 + $0x3c] sm:$0x1] }
  0xf8   : > { %v3358_v21 = vshll.u32 %v5833_v26, 16  ;;  %v1152_v13 = vpack.c.b16 %v1147_v42, %v1146_v51  ;;  %v2539_v58 = vrot.slane %v2538_v41, 4  ;;  %v3363_v12 = vshrl.u32 %v5834_v49, 16  ;;  %v2233_v51 = vpop.permute.xlu0 %2232  ;;  %v5379_v41 = vld [vmem:[%s6556_s19 + $0x44] sm:$0x1] }
  0xf9   : > { %v2553_v55 = vrot.slane %v2552_v46, 4  ;;  %v3351_v29 = vrot.slane %v3349_v32, 4  ;;  %v3354_v37 = vrot.slane %v3352_v34, 5  ;;  %v3366_v50 = vshll.u32 %v5834_v49, 16 }
  0xfa   : > { %v3360_v27 = vrot.slane %v3358_v21, 5  ;;  %5514 = vmatmul.msk.bf16.gmra.mxu1 %vm1154_vm3, %v1152_v13  ;;  %v2544_v40 = vsel %vm6589_vm2, %v2539_v58, %v2543_v19  ;;  %v3365_v33 = vrot.slane %v3363_v12, 4  ;;  %v3372_v59 = vshll.u32 %v5835_v61, 16  ;;  %v5363_v19 = vld [vmem:[%s6556_s19 + $0x40] sm:$0xf]  ;;  %v7370_v12 = vpop.permute.xlu2 %2252 }
  0xfb   : > { %v2558_v48 = vsel %vm6589_vm2, %v2553_v55, %v2557_v17  ;;  %v2965_v47 = vunpack.c.l.b16 %v2544_v40  ;;  %v3355_v52 = vor.u32 %v3354_v37, %v3351_v29  ;;  %v3368_v53 = vrot.slane %v3366_v50, 5  ;;  %v5650_v13 = vld [vmem:[%s6556_s19 + $0xa0] sm:$0xf]  ;;  %v5651_v58 = vld [vmem:[%s6556_s19 + $0xa8] sm:$0xf] }
  0xfc   : > { %v2966_v6 = vunpack.c.l.b16 %v2558_v48  ;;  %v3374_v44 = vrot.slane %v3372_v59, 5  ;;  %v5803_v5 = vor.u32 %v6133_v39, %v5802_v56  ;;  %v3577_v43 = vshrl.u32 %v5860_v36, 16  ;;  %v5666_v37 = vld [vmem:[%s6556_s19 + $0xa4] sm:$0x1] }
  0xfd   : > { %v3580_v1 = vshll.u32 %v5860_v36, 16  ;;  %v3356_v16 = vrot.slane %v3355_v52, 4  ;;  %v3369_v0 = vor.u32 %v3368_v53, %v3365_v33  ;;  %v3586_v18 = vshll.u32 %v5861_v9, 16 }
  0xfe   : > { %v2973_v14 = vpack.c.b16 %v2966_v6, %v2965_v47  ;;  %3109 = vrot.lane.b32.xlu0 %v5803_v5, %s8619_s16  ;;  %v3579_v22 = vrot.slane %v3577_v43, 4  ;;  %v3591_v4 = vshrl.u32 %v5862_v54, 16  ;;  %v3594_v8 = vshll.u32 %v5862_v54, 16  ;;  %v5822_v47 = vld [vmem:[%s6556_s19 + $0xe8] sm:$0xf]  ;;  %v7377_v6 = vpop.permute.xlu1 %2272 }
  0xff   : > { %v3582_v2 = vrot.slane %v3580_v1, 5  ;;  %v3361_v11 = vsel %vm6589_vm2, %v3356_v16, %v3360_v27  ;;  %v3370_v23 = vrot.slane %v3369_v0, 4  ;;  %v3588_v62 = vrot.slane %v3586_v18, 5  ;;  %v5667_v54 = vld [vmem:[%s6556_s19 + $0xac] sm:$0x1] }
 0x100   : > { %2977 = vrot.lane.b32.xlu2 %v2973_v14, %s8616_s26  ;;  %v3600_v38 = vshll.u32 %v5863_v63, 16  ;;  %v4086_v20 = vunpack.c.l.b16 %v3361_v11  ;;  %v3593_v3 = vrot.slane %v3591_v4, 4  ;;  %v3596_v60 = vrot.slane %v3594_v8, 5  ;;  %v7380_v16 = vpop.permute.xlu0 %1110  ;;  %v5823_v11 = vld [vmem:[%s6556_s19 + $0xf0] sm:$0xf] }
 0x101   : > { %v3583_v7 = vor.u32 %v3582_v2, %v3579_v22  ;;  %v3375_v25 = vsel %vm6589_vm2, %v3370_v23, %v3374_v44  ;;  %v7359_v35 = vsel %vm1193_vm7, %v1190_v10, %v1083_v57  ;;  %v7363_v42 = vsel %vm1175_vm5, %v7331_v30, %v2233_v51  ;;  %v5846_v23 = vld [vmem:[%s6556_s19 + $0xec] sm:$0x1] }
 0x102   : > { %v3602_v26 = vrot.slane %v3600_v38, 5  ;;  %v4087_v45 = vunpack.c.l.b16 %v3375_v25  ;;  %v3597_v49 = vor.u32 %v3596_v60, %v3593_v3  ;;  %v915_v46 = vshrl.u32 %v5362_v15, 16 }
 0x103   : > { %v3584_v31 = vrot.slane %v3583_v7, 4  ;;  %v918_v17 = vshll.u32 %v5362_v15, 16  ;;  %v924_v61 = vshll.u32 %v5378_v24, 16  ;;  %v929_v32 = vshrl.u32 %v5363_v19, 16 }
 0x104   : > { %v4093_v34 = vpack.c.b16 %v4087_v45, %v4086_v20  ;;  %v3598_v36 = vrot.slane %v3597_v49, 4  ;;  %v932_v10 = vshll.u32 %v5363_v19, 16  ;;  %v917_v30 = vrot.slane %v915_v46, 4  ;;  %v5847_v20 = vld [vmem:[%s6556_s19 + $0xf4] sm:$0x1] }
 0x105   : > { %v3589_v21 = vsel %vm6589_vm2, %v3584_v31, %v3588_v62  ;;  %v920_v56 = vrot.slane %v918_v17, 5  ;;  %v926_v29 = vrot.slane %v924_v61, 5  ;;  %v931_v50 = vrot.slane %v929_v32, 4  ;;  %v5672_v49 = vld [vmem:[%s6556_s19 + $0x8] sm:$0xf] }
 0x106   : > { %v4152_v55 = vunpack.c.l.b16 %v3589_v21  ;;  %4098 = vrot.lane.b32.xlu1 %v4093_v34, %s8620_s0  ;;  %v3603_v27 = vsel %vm6589_vm2, %v3598_v36, %v3602_v26  ;;  %v934_v39 = vrot.slane %v932_v10, 5  ;;  %v938_v40 = vshll.u32 %v5379_v41, 16  ;;  %v5688_v32 = vld [vmem:[%s6556_s19 + $0xc] sm:$0x1]  ;;  %v1139_v34 = vpop.permute.xlu2 %1138 }
 0x107   : > { %v4153_v48 = vunpack.c.l.b16 %v3603_v27  ;;  %v921_v33 = vor.u32 %v920_v56, %v917_v30  ;;  %v2560_v59 = vshrl.u32 %v5650_v13, 16  ;;  %v2563_v9 = vshll.u32 %v5650_v13, 16 }
 0x108   : > { %v935_v52 = vor.u32 %v934_v39, %v931_v50  ;;  %v940_v53 = vrot.slane %v938_v40, 5  ;;  %v2569_v44 = vshll.u32 %v5666_v37, 16  ;;  %v2574_v5 = vshrl.u32 %v5651_v58, 16  ;;  %v7396_v37 = vpop.permute.xlu1 %2320 }
 0x109   : > { %v4160_v63 = vpack.c.b16 %v4153_v48, %v4152_v55  ;;  %v922_v43 = vrot.slane %v921_v33, 4  ;;  %v2562_v1 = vrot.slane %v2560_v59, 4  ;;  %v2565_v14 = vrot.slane %v2563_v9, 5  ;;  %v5689_v59 = vld [vmem:[%s6556_s19 + $0x14] sm:$0x1] }
 0x10a   : > { %v936_v0 = vrot.slane %v935_v52, 4  ;;  %v2571_v18 = vrot.slane %v2569_v44, 5  ;;  %v2576_v57 = vrot.slane %v2574_v5, 4  ;;  %v2577_v22 = vshll.u32 %v5651_v58, 16  ;;  %v5673_v58 = vld [vmem:[%s6556_s19 + $0x10] sm:$0xf]  ;;  %v7401_v52 = vpop.permute.xlu0 %2300 }
 0x10b   : > { %4164 = vrot.lane.b32.xlu2 %v4160_v63, %s8621_s29  ;;  %v927_v2 = vsel %vm6589_vm2, %v922_v43, %v926_v29  ;;  %v2566_v4 = vor.u32 %v2565_v14, %v2562_v1  ;;  %v2583_v8 = vshll.u32 %v5667_v54, 16  ;;  %v3469_v62 = vshrl.u32 %v5822_v47, 16  ;;  %v5864_v63 = vld [vmem:[%s6556_s19 + $0x18] sm:$0xf] }
 0x10c   : > { %v941_v38 = vsel %vm6589_vm2, %v936_v0, %v940_v53  ;;  %v1148_v51 = vunpack.c.l.b16 %v927_v2  ;;  %v2579_v15 = vrot.slane %v2577_v22, 5  ;;  %v3472_v7 = vshll.u32 %v5822_v47, 16 }
 0x10d   : > { %v1149_v3 = vunpack.c.l.b16 %v941_v38  ;;  %v2567_v60 = vrot.slane %v2566_v4, 4  ;;  %v2585_v19 = vrot.slane %v2583_v8, 5  ;;  %v3471_v24 = vrot.slane %v3469_v62, 4  ;;  %v5865_v4 = vld [vmem:[%s6556_s19 + $0x1c] sm:$0x1] }
 0x10e   : > { %v2580_v25 = vor.u32 %v2579_v15, %v2576_v57  ;;  %v3474_v26 = vrot.slane %v3472_v7, 5  ;;  %v3478_v45 = vshll.u32 %v5846_v23, 16  ;;  %v3483_v31 = vshrl.u32 %v5823_v11, 16  ;;  %v5866_v8 = vld [vmem:[%s6556_s19 + $0x20] sm:$0xf] }
 0x10f   : > { %v1153_v41 = vpack.c.b16 %v1149_v3, %v1148_v51  ;;  %v2572_v46 = vsel %vm6589_vm2, %v2567_v60, %v2571_v18  ;;  %v3486_v17 = vshll.u32 %v5823_v11, 16  ;;  %v3492_v61 = vshll.u32 %v5847_v20, 16  ;;  %v5867_v7 = vld [vmem:[%s6556_s19 + $0x24] sm:$0x1] }
 0x110   : > { %v2581_v21 = vrot.slane %v2580_v25, 4  ;;  %v2967_v36 = vunpack.c.l.b16 %v2572_v46  ;;  %v3475_v10 = vor.u32 %v3474_v26, %v3471_v24  ;;  %v3480_v13 = vrot.slane %v3478_v45, 5  ;;  %v7419_v24 = vpop.permute.xlu2 %2190  ;;  %v5892_v45 = vld [vmem:[%s6556_s19 + $0x98] sm:$0xf] }
 0x111   : > { %5515 = vmatmul.msk.bf16.gmra.mxu1 %vm1154_vm3, %v1153_v41  ;;  %v3485_v55 = vrot.slane %v3483_v31, 4  ;;  %v3488_v30 = vrot.slane %v3486_v17, 5  ;;  %v3494_v56 = vrot.slane %v3492_v61, 5  ;;  %v2668_v29 = vshrl.u32 %v5672_v49, 16  ;;  %v5893_v17 = vld [vmem:[%s6556_s19 + $0x9c] sm:$0x1] }
 0x112   : > { %v2586_v27 = vsel %vm6589_vm2, %v2581_v21, %v2585_v19  ;;  %v3476_v50 = vrot.slane %v3475_v10, 4  ;;  %v2671_v39 = vshll.u32 %v5672_v49, 16  ;;  %v2677_v40 = vshll.u32 %v5688_v32, 16  ;;  %v5894_v61 = vld [vmem:[%s6556_s19 + $0xa0] sm:$0xf]  ;;  %v7426_v32 = vpop.permute.xlu1 %2238 }
 0x113   : > { %v2968_v48 = vunpack.c.l.b16 %v2586_v27  ;;  %v3489_v33 = vor.u32 %v3488_v30, %v3485_v55  ;;  %v2670_v9 = vrot.slane %v2668_v29, 4  ;;  %v2682_v47 = vshrl.u32 %v5673_v58, 16  ;;  %v7435_v27 = vpop.permute.xlu0 %2210 }
 0x114   : > { %v2369_v53 = vsel %vm1184_vm6, %v7363_v42, %v7370_v12  ;;  %v3481_v54 = vsel %vm6589_vm2, %v3476_v50, %v3480_v13  ;;  %v2673_v44 = vrot.slane %v2671_v39, 5  ;;  %v2685_v5 = vshll.u32 %v5673_v58, 16  ;;  %v5758_v13 = vld [vmem:[%s6556_s19 + $0x18] sm:$0xf]  ;;  %v5895_v39 = vld [vmem:[%s6556_s19 + $0xa4] sm:$0x1] }
 0x115   : > { %v2974_v43 = vpack.c.b16 %v2968_v48, %v2967_v36  ;;  %v3490_v1 = vrot.slane %v3489_v33, 4  ;;  %v2679_v14 = vrot.slane %v2677_v40, 5  ;;  %v2684_v0 = vrot.slane %v2682_v47, 4 }
 0x116   : > { %v4106_v18 = vunpack.c.l.b16 %v3481_v54  ;;  %v2674_v57 = vor.u32 %v2673_v44, %v2670_v9  ;;  %v2687_v22 = vrot.slane %v2685_v5, 5  ;;  %v2691_v2 = vshll.u32 %v5689_v59, 16 }
 0x117   : > { %2979 = vrot.lane.b32.xlu1 %v2974_v43, %s8616_s26  ;;  %v3495_v42 = vsel %vm6589_vm2, %v3490_v1, %v3494_v56  ;;  %v1208_v12 = vsel %vm1202_vm8, %v7359_v35, %v7380_v16  ;;  %v3605_v11 = vshrl.u32 %v5864_v63, 16  ;;  %v3608_v23 = vshll.u32 %v5864_v63, 16  ;;  %v6122_v56 = vld [vmem:[%s6556_s19 + $0x1c] sm:$0xf0]  ;;  %v5610_v43 = vld [vmem:[%s6556_s19 + $0x78] sm:$0xf] }
 0x118   : > { %v4107_v62 = vunpack.c.l.b16 %v3495_v42  ;;  %v2675_v38 = vrot.slane %v2674_v57, 4  ;;  %v2688_v51 = vor.u32 %v2687_v22, %v2684_v0  ;;  %v2693_v15 = vrot.slane %v2691_v2, 5  ;;  %v6104_v1 = vld [vmem:[%s6556_s19 + $0x7c] sm:$0xf0] }
 0x119   : > { %v1219_v20 = vsel %vm1211_vm9, %v1208_v12, %v1139_v34  ;;  %v3607_v3 = vrot.slane %v3605_v11, 4  ;;  %v3610_v60 = vrot.slane %v3608_v23, 5  ;;  %v3614_v19 = vshll.u32 %v5865_v4, 16  ;;  %v5675_v42 = vld [vmem:[%s6556_s19 + $0x20] sm:$0xf] }
 0x11a   : > { %v4113_v25 = vpack.c.b16 %v4107_v62, %v4106_v18  ;;  %v2680_v35 = vsel %vm6589_vm2, %v2675_v38, %v2679_v14  ;;  %v2689_v16 = vrot.slane %v2688_v51, 4  ;;  %1308 = vmatmul.bf16.gmra.mxu0 %v1219_v20  ;;  %v3619_v26 = vshrl.u32 %v5866_v8, 16  ;;  %v5690_v12 = vld [vmem:[%s6556_s19 + $0x1c] sm:$0x1]  ;;  %v5691_v38 = vld [vmem:[%s6556_s19 + $0x24] sm:$0x1] }
 0x11b   : > { %v3041_v31 = vunpack.c.l.b16 %v2680_v35  ;;  %v3611_v49 = vor.u32 %v3610_v60, %v3607_v3  ;;  %v3616_v41 = vrot.slane %v3614_v19, 5  ;;  %v3622_v46 = vshll.u32 %v5866_v8, 16  ;;  %v5854_v35 = vld [vmem:[%s6556_s19 + $0x60] sm:$0xf] }
 0x11c   : > { %4118 = vrot.lane.b32.xlu0 %v4113_v25, %s8616_s26  ;;  %v2694_v34 = vsel %vm6589_vm2, %v2689_v16, %v2693_v15  ;;  %v2377_v21 = vsel %vm1193_vm7, %v2369_v53, %v7377_v6  ;;  %v3621_v36 = vrot.slane %v3619_v26, 4  ;;  %v3628_v10 = vshll.u32 %v5867_v7, 16  ;;  %v5674_v53 = vld [vmem:[%s6556_s19 + $0x18] sm:$0xf]  ;;  %v7453_v15 = vpop.permute.xlu2 %2258  ;;  %v7457_v16 = vpop.permute.xlu1 %2306 }
 0x11d   : > { %v3042_v58 = vunpack.c.l.b16 %v2694_v34  ;;  %v3612_v55 = vrot.slane %v3611_v49, 4  ;;  %v3624_v30 = vrot.slane %v3622_v46, 5  ;;  %v3833_v29 = vshrl.u32 %v5892_v45, 16 }
 0x11e   : > { %v3630_v50 = vrot.slane %v3628_v10, 5  ;;  %v3836_v40 = vshll.u32 %v5892_v45, 16  ;;  %v3842_v48 = vshll.u32 %v5893_v17, 16  ;;  %v3847_v33 = vshrl.u32 %v5894_v61, 16 }
 0x11f   : > { %v3049_v59 = vpack.c.b16 %v3042_v58, %v3041_v31  ;;  %v3617_v6 = vsel %vm6589_vm2, %v3612_v55, %v3616_v41  ;;  %v3625_v9 = vor.u32 %v3624_v30, %v3621_v36  ;;  %v3835_v47 = vrot.slane %v3833_v29, 4  ;;  %v5878_v41 = vld [vmem:[%s6556_s19 + $0x64] sm:$0x1]  ;;  %v7463_v36 = vpop.permute.xlu0 %2278 }
 0x120   : > { %v4154_v54 = vunpack.c.l.b16 %v3617_v6  ;;  %v5759_v44 = vor.u32 %v6122_v56, %v5758_v13  ;;  %v3838_v5 = vrot.slane %v3836_v40, 5  ;;  %v3849_v63 = vrot.slane %v3847_v33, 4 }
 0x121   : > { %3053 = vrot.lane.b32.xlu2 %v3049_v59, %s8618_s28  ;;  %v3626_v14 = vrot.slane %v3625_v9, 4  ;;  %v3850_v0 = vshll.u32 %v5894_v61, 16  ;;  %v3856_v18 = vshll.u32 %v5895_v39, 16  ;;  %v2385_v57 = vsel %vm1202_vm8, %v2377_v21, %v7401_v52  ;;  %v5855_v21 = vld [vmem:[%s6556_s19 + $0x68] sm:$0xf] }
 0x122   : > { %v3839_v22 = vor.u32 %v3838_v5, %v3835_v47  ;;  %v3844_v2 = vrot.slane %v3842_v48, 5  ;;  %v2393_v4 = vsel %vm1211_vm9, %v2385_v57, %v7396_v37  ;;  %v2696_v8 = vshrl.u32 %v5674_v53, 16  ;;  %v5879_v48 = vld [vmem:[%s6556_s19 + $0x6c] sm:$0x1] }
 0x123   : > { %v3631_v11 = vsel %vm6589_vm2, %v3626_v14, %v3630_v50  ;;  %v3852_v23 = vrot.slane %v3850_v0, 5  ;;  %v5611_v62 = vor.u32 %v6104_v1, %v5610_v43  ;;  %2424 = vmatmul.bf16.vlgmr.msrb.gmra.mxu1 %v2393_v4  ;;  %v2699_v51 = vshll.u32 %v5674_v53, 16  ;;  %v5897_v57 = vld [vmem:[%s6556_s19 + $0xac] sm:$0x1]  ;;  %v5742_v4 = vld [vmem:[%s6556_s19 + $0xe8] sm:$0xf] }
 0x124   : > { %v4155_v52 = vunpack.c.l.b16 %v3631_v11  ;;  %3007 = vrot.lane.b32.xlu0 %v5759_v44, %s8617_s17  ;;  %v3840_v20 = vrot.slane %v3839_v22, 4  ;;  %v3858_v37 = vrot.slane %v3856_v18, 5  ;;  %v2698_v7 = vrot.slane %v2696_v8, 4  ;;  %v989_v22 = vpop.permute.xlu2 %988 }
 0x125   : > { %v3853_v3 = vor.u32 %v3852_v23, %v3849_v63  ;;  %v2701_v60 = vrot.slane %v2699_v51, 5  ;;  %v2705_v19 = vshll.u32 %v5690_v12, 16  ;;  %v2710_v25 = vshrl.u32 %v5675_v42, 16 }
 0x126   : > { %v4161_v26 = vpack.c.b16 %v4155_v52, %v4154_v54  ;;  %v3845_v45 = vsel %vm6589_vm2, %v3840_v20, %v3844_v2  ;;  %v2713_v31 = vshll.u32 %v5675_v42, 16  ;;  %v2719_v49 = vshll.u32 %v5691_v38, 16  ;;  %v5896_v54 = vld [vmem:[%s6556_s19 + $0xa8] sm:$0xf]  ;;  %v6118_v42 = vld [vmem:[%s6556_s19 + $0xec] sm:$0xf0] }
 0x127   : > { %v3854_v46 = vrot.slane %v3853_v3, 4  ;;  %v4220_v17 = vunpack.c.l.b16 %v3845_v45  ;;  %v2702_v61 = vor.u32 %v2701_v60, %v2698_v7  ;;  %v2707_v34 = vrot.slane %v2705_v19, 5  ;;  %v5899_v52 = vld [vmem:[%s6556_s19 + $0xb4] sm:$0x1]  ;;  %v7485_v20 = vld [vmem:[%s6556_s19 + $0xa8] sm:$0xf] }
 0x128   : > { %4166 = vrot.lane.b32.xlu1 %v4161_v26, %s8621_s29  ;;  %v2712_v10 = vrot.slane %v2710_v25, 4  ;;  %v2715_v13 = vrot.slane %v2713_v31, 5  ;;  %v2721_v58 = vrot.slane %v2719_v49, 5  ;;  %v3725_v55 = vshrl.u32 %v5854_v35, 16  ;;  %v7492_v19 = vld [vmem:[%s6556_s19 + $0xac] sm:$0xf0] }
 0x129   : > { %v3859_v30 = vsel %vm6589_vm2, %v3854_v46, %v3858_v37  ;;  %v2703_v56 = vrot.slane %v2702_v61, 4  ;;  %v3728_v29 = vshll.u32 %v5854_v35, 16  ;;  %v3734_v50 = vshll.u32 %v5878_v41, 16  ;;  %v7487_v37 = vpop.permute.xlu1 %1008  ;;  %v7497_v31 = vld [vmem:[%s6556_s19 + $0x60] sm:$0xf]  ;;  %v7502_v41 = vpop.permute.xlu0 %2326 }
 0x12a   : > { %v4221_v39 = vunpack.c.l.b16 %v3859_v30  ;;  %v2716_v40 = vor.u32 %v2715_v13, %v2712_v10  ;;  %v3727_v33 = vrot.slane %v3725_v55, 4  ;;  %v3739_v59 = vshrl.u32 %v5855_v21, 16  ;;  %v7500_v49 = vld [vmem:[%s6556_s19 + $0x64] sm:$0xf0]  ;;  %v5836_v30 = vld [vmem:[%s6556_s19 + $0xb0] sm:$0xf] }
 0x12b   : > { %v2351_v6 = vsel %vm1154_vm3, %v5611_v62, %v7419_v24  ;;  %v2708_v9 = vsel %vm6589_vm2, %v2703_v56, %v2707_v34  ;;  %v3730_v47 = vrot.slane %v3728_v29, 5  ;;  %v3742_v53 = vshll.u32 %v5855_v21, 16  ;;  %v5898_v24 = vld [vmem:[%s6556_s19 + $0xb0] sm:$0xf]  ;;  %v6080_v21 = vld [vmem:[%s6556_s19 + $0x34] sm:$0xf0] }
 0x12c   : > { %v4228_v44 = vpack.c.b16 %v4221_v39, %v4220_v17  ;;  %v2717_v5 = vrot.slane %v2716_v40, 4  ;;  %v3736_v63 = vrot.slane %v3734_v50, 5  ;;  %v3741_v43 = vrot.slane %v3739_v59, 4  ;;  %v5394_v34 = vld [vmem:[%s6556_s19 + $0x30] sm:$0xf] }
 0x12d   : > { %v3043_v1 = vunpack.c.l.b16 %v2708_v9  ;;  %v3731_v14 = vor.u32 %v3730_v47, %v3727_v33  ;;  %v3744_v0 = vrot.slane %v3742_v53, 5  ;;  %v3748_v18 = vshll.u32 %v5879_v48, 16  ;;  %v7515_v40 = vld [vmem:[%s6556_s19 + $0xf8] sm:$0xf]  ;;  %v7518_v48 = vld [vmem:[%s6556_s19 + $0xfc] sm:$0xf0] }
 0x12e   : > { %4232 = vrot.lane.b32.xlu2 %v4228_v44, %s8619_s16  ;;  %v2722_v2 = vsel %vm6589_vm2, %v2717_v5, %v2721_v58  ;;  %v2359_v12 = vsel %vm452_vm4, %v2351_v6, %v7435_v27  ;;  %v3861_v8 = vshrl.u32 %v5896_v54, 16  ;;  %v3864_v11 = vshll.u32 %v5896_v54, 16  ;;  %v5837_v9 = vld [vmem:[%s6556_s19 + $0xb4] sm:$0x1]  ;;  %v5838_v47 = vld [vmem:[%s6556_s19 + $0xb8] sm:$0xf] }
 0x12f   : > { %v3044_v23 = vunpack.c.l.b16 %v2722_v2  ;;  %v3732_v62 = vrot.slane %v3731_v14, 4  ;;  %v3745_v38 = vor.u32 %v3744_v0, %v3741_v43  ;;  %v3750_v51 = vrot.slane %v3748_v18, 5  ;;  %v5839_v5 = vld [vmem:[%s6556_s19 + $0xbc] sm:$0x1]  ;;  %v7534_v18 = vld [vmem:[%s6556_s19 + $0x60] sm:$0xf] }
 0x130   : > { %v2367_v7 = vsel %vm1175_vm5, %v2359_v12, %v7426_v32  ;;  %v3863_v3 = vrot.slane %v3861_v8, 4  ;;  %v3866_v27 = vrot.slane %v3864_v11, 5  ;;  %v3870_v60 = vshll.u32 %v5897_v57, 16  ;;  %v7537_v57 = vld [vmem:[%s6556_s19 + $0x64] sm:$0xf0] }
 0x131   : > { %v3050_v25 = vpack.c.b16 %v3044_v23, %v3043_v1  ;;  %v3737_v35 = vsel %vm6589_vm2, %v3732_v62, %v3736_v63  ;;  %v3746_v26 = vrot.slane %v3745_v38, 4  ;;  %v5743_v45 = vor.u32 %v6118_v42, %v5742_v4  ;;  %v5570_v12 = vld [vmem:[%s6556_s19 + $0x80] sm:$0xf]  ;;  %v5602_v62 = vld [vmem:[%s6556_s19 + $0x58] sm:$0xf]  ;;  %v7542_v38 = vpop.permute.xlu1 %2206 }
 0x132   : > { %v4174_v32 = vunpack.c.l.b16 %v3737_v35  ;;  %v3867_v46 = vor.u32 %v3866_v27, %v3863_v3  ;;  %v3872_v17 = vrot.slane %v3870_v60, 5  ;;  %v3875_v61 = vshrl.u32 %v5898_v24, 16  ;;  %v6102_v27 = vld [vmem:[%s6556_s19 + $0x5c] sm:$0xf0] }
 0x133   : > { %3055 = vrot.lane.b32.xlu1 %v3050_v25, %s8618_s28  ;;  %v3751_v10 = vsel %vm6589_vm2, %v3746_v26, %v3750_v51  ;;  %v2375_v13 = vsel %vm1184_vm6, %v2367_v7, %v7453_v15  ;;  %v3878_v58 = vshll.u32 %v5898_v24, 16  ;;  %v3884_v55 = vshll.u32 %v5899_v52, 16  ;;  %v2187_v24 = vpop.permute.xlu2 %2186 }
 0x134   : > { %v4175_v56 = vunpack.c.l.b16 %v3751_v10  ;;  %v3868_v29 = vrot.slane %v3867_v46, 4  ;;  %v3877_v50 = vrot.slane %v3875_v61, 4  ;;  %v5791_v39 = vor.u32 %v7492_v19, %v7485_v20  ;;  %v7577_v19 = vld [vmem:[%s6556_s19 + $0x70] sm:$0xf] }
 0x135   : > { %v3880_v33 = vrot.slane %v3878_v58, 5  ;;  %v3886_v59 = vrot.slane %v3884_v55, 5  ;;  %v5939_v15 = vor.u32 %v7500_v49, %v7497_v31  ;;  %v5395_v6 = vor.u32 %v6080_v21, %v5394_v34  ;;  %v7554_v31 = vpop.permute.xlu0 %1036 }
 0x136   : > { %v4181_v53 = vpack.c.b16 %v4175_v56, %v4174_v32  ;;  %2959 = vrot.lane.b32.xlu2 %v5743_v45, %s8620_s0  ;;  %v3873_v54 = vsel %vm6589_vm2, %v3868_v29, %v3872_v17  ;;  %v2383_v44 = vsel %vm1193_vm7, %v2375_v13, %v7463_v36  ;;  %v3377_v63 = vshrl.u32 %v5836_v30, 16  ;;  %v5594_v45 = vld [vmem:[%s6556_s19 + $0x84] sm:$0x1]  ;;  %v5571_v17 = vld [vmem:[%s6556_s19 + $0x88] sm:$0xf] }
 0x137   : > { %v3881_v43 = vor.u32 %v3880_v33, %v3877_v50  ;;  %v1166_v1 = vsel %vm1154_vm3, %v5395_v6, %v989_v22  ;;  %v5747_v14 = vor.u32 %v7518_v48, %v7515_v40  ;;  %v3380_v0 = vshll.u32 %v5836_v30, 16  ;;  %v5595_v13 = vld [vmem:[%s6556_s19 + $0x8c] sm:$0x1]  ;;  %v7615_v48 = vld [vmem:[%s6556_s19 + $0x74] sm:$0xf0] }
 0x138   : > { %4186 = vrot.lane.b32.xlu0 %v4181_v53, %s8618_s28  ;;  %v3379_v2 = vrot.slane %v3377_v63, 4  ;;  %v3386_v36 = vshll.u32 %v5837_v9, 16  ;;  %v3391_v4 = vshrl.u32 %v5838_v47, 16  ;;  %v3394_v42 = vshll.u32 %v5838_v47, 16  ;;  %v5668_v47 = vld [vmem:[%s6556_s19 + $0xb4] sm:$0x1] }
 0x139   : > { %v3882_v22 = vrot.slane %v3881_v43, 4  ;;  %v4222_v8 = vunpack.c.l.b16 %v3873_v54  ;;  %v3382_v11 = vrot.slane %v3380_v0, 5  ;;  %v3400_v23 = vshll.u32 %v5839_v5, 16  ;;  %v5653_v63 = vld [vmem:[%s6556_s19 + $0xb8] sm:$0xf] }
 0x13a   : > { %v3388_v51 = vrot.slane %v3386_v36, 5  ;;  %v3393_v52 = vrot.slane %v3391_v4, 4  ;;  %v3396_v7 = vrot.slane %v3394_v42, 5  ;;  %v5775_v3 = vor.u32 %v7537_v57, %v7534_v18 }
 0x13b   : > { %v3887_v60 = vsel %vm6589_vm2, %v3882_v22, %v3886_v59  ;;  %v3383_v25 = vor.u32 %v3382_v11, %v3379_v2  ;;  %v3402_v35 = vrot.slane %v3400_v23, 5  ;;  %v7551_v26 = vsel %vm452_vm4, %v1166_v1, %v7487_v37  ;;  %v5652_v59 = vld [vmem:[%s6556_s19 + $0xb0] sm:$0xf]  ;;  %v1065_v43 = vpop.permute.xlu2 %1064  ;;  %v7584_v11 = vpop.permute.xlu1 %1084 }
 0x13c   : > { %v4223_v49 = vunpack.c.l.b16 %v3887_v60  ;;  %v3397_v32 = vor.u32 %v3396_v7, %v3393_v52  ;;  %v2391_v46 = vsel %vm1202_vm8, %v2383_v44, %v7457_v16  ;;  %v2125_v61 = vshrl.u32 %v5570_v12, 16  ;;  %v6146_v52 = vld [vmem:[%s6556_s19 + $0xf4] sm:$0xf0] }
 0x13d   : > { %v3384_v34 = vrot.slane %v3383_v25, 4  ;;  %v5603_v21 = vor.u32 %v6102_v27, %v5602_v62  ;;  %v2402_v10 = vsel %vm1211_vm9, %v2391_v46, %v7502_v41  ;;  %v2128_v58 = vshll.u32 %v5570_v12, 16  ;;  %v7581_v12 = vld [vmem:[%s6556_s19 + $0x74] sm:$0xf0] }
 0x13e   : > { %v4229_v37 = vpack.c.b16 %v4223_v49, %v4222_v8  ;;  %4146 = vrot.lane.b32.xlu2 %v5939_v15, %s8617_s17  ;;  %v3398_v55 = vrot.slane %v3397_v32, 4  ;;  %2439 = vmatmul.bf16.gmra.mxu2 %v2402_v10  ;;  %v2127_v30 = vrot.slane %v2125_v61, 4  ;;  %v2134_v56 = vshll.u32 %v5594_v45, 16  ;;  %v5954_v8 = vld [vmem:[%s6556_s19 + $0xf0] sm:$0xf] }
 0x13f   : > { %v3389_v16 = vsel %vm6589_vm2, %v3384_v34, %v3388_v51  ;;  %v2130_v29 = vrot.slane %v2128_v58, 5  ;;  %v2139_v50 = vshrl.u32 %v5571_v17, 16  ;;  %v2142_v33 = vshll.u32 %v5571_v17, 16  ;;  %v5868_v17 = vld [vmem:[%s6556_s19 + $0x28] sm:$0xf] }
 0x140   : > { %4234 = vrot.lane.b32.xlu1 %v4229_v37, %s8619_s16  ;;  %3083 = vrot.lane.b32.xlu0 %v5791_v39, %s8622_s18  ;;  %v3403_v41 = vsel %vm6589_vm2, %v3398_v55, %v3402_v35  ;;  %v4088_v15 = vunpack.c.l.b16 %v3389_v16  ;;  %v2136_v6 = vrot.slane %v2134_v56, 5  ;;  %v2148_v9 = vshll.u32 %v5595_v13, 16  ;;  %v5669_v39 = vld [vmem:[%s6556_s19 + $0xbc] sm:$0x1]  ;;  %v2235_v35 = vpop.permute.xlu0 %2234  ;;  %v5869_v13 = vld [vmem:[%s6556_s19 + $0x2c] sm:$0x1] }
 0x141   : > { %v4089_v53 = vunpack.c.l.b16 %v3403_v41  ;;  %v2131_v54 = vor.u32 %v2130_v29, %v2127_v30  ;;  %v2141_v44 = vrot.slane %v2139_v50, 4  ;;  %v2144_v5 = vrot.slane %v2142_v33, 5  ;;  %v7608_v37 = vld [vmem:[%s6556_s19 + $0x70] sm:$0xf] }
 0x142   : > { %v2345_v1 = vsel %vm1154_vm3, %v5603_v21, %v2187_v24  ;;  %v2150_v20 = vrot.slane %v2148_v9, 5  ;;  %v2588_v0 = vshrl.u32 %v5652_v59, 16  ;;  %v2591_v2 = vshll.u32 %v5652_v59, 16  ;;  %v5870_v55 = vld [vmem:[%s6556_s19 + $0x30] sm:$0xf] }
 0x143   : > { %v4094_v36 = vpack.c.b16 %v4089_v53, %v4088_v15  ;;  %v2132_v4 = vrot.slane %v2131_v54, 4  ;;  %v2145_v42 = vor.u32 %v2144_v5, %v2141_v44  ;;  %v2597_v22 = vshll.u32 %v5668_v47, 16  ;;  %v2255_v9 = vpop.permute.xlu2 %2254 }
 0x144   : > { %v2590_v23 = vrot.slane %v2588_v0, 4  ;;  %v2593_v62 = vrot.slane %v2591_v2, 5  ;;  %v2602_v24 = vshrl.u32 %v5653_v63, 16  ;;  %v2605_v51 = vshll.u32 %v5653_v63, 16 }
 0x145   : > { %v2137_v7 = vsel %vm6589_vm2, %v2132_v4, %v2136_v6  ;;  %v2146_v27 = vrot.slane %v2145_v42, 4  ;;  %v2599_v60 = vrot.slane %v2597_v22, 5  ;;  %v2611_v25 = vshll.u32 %v5669_v39, 16  ;;  %v6134_v6 = vld [vmem:[%s6556_s19 + $0xf4] sm:$0xf0]  ;;  %v7631_v39 = vpop.permute.xlu1 %2274 }
 0x146   : > { %3035 = vrot.lane.b32.xlu2 %v5775_v3, %s8621_s29  ;;  %v2334_v45 = vunpack.c.l.b16 %v2137_v7  ;;  %v2594_v49 = vor.u32 %v2593_v62, %v2590_v23  ;;  %v2604_v32 = vrot.slane %v2602_v24, 4  ;;  %v2607_v46 = vrot.slane %v2605_v51, 5  ;;  %v5677_v42 = vld [vmem:[%s6556_s19 + $0x30] sm:$0xf] }
 0x147   : > { %v2151_v61 = vsel %vm6589_vm2, %v2146_v27, %v2150_v20  ;;  %v5943_v34 = vor.u32 %v7581_v12, %v7577_v19  ;;  %v2613_v21 = vrot.slane %v2611_v25, 5  ;;  %v5955_v10 = vor.u32 %v6146_v52, %v5954_v8  ;;  %v5676_v20 = vld [vmem:[%s6556_s19 + $0x28] sm:$0xf]  ;;  %v5692_v19 = vld [vmem:[%s6556_s19 + $0x2c] sm:$0x1] }
 0x148   : > { %2961 = vrot.lane.b32.xlu1 %v5747_v14, %s8620_s0  ;;  %4100 = vrot.lane.b32.xlu0 %v4094_v36, %s8620_s0  ;;  %v2335_v18 = vunpack.c.l.b16 %v2151_v61  ;;  %v2595_v57 = vrot.slane %v2594_v49, 4  ;;  %v2608_v3 = vor.u32 %v2607_v46, %v2604_v32  ;;  %v1183_v58 = vsel %vm1175_vm5, %v7551_v26, %v7554_v31  ;;  %v5871_v14 = vld [vmem:[%s6556_s19 + $0x34] sm:$0x1]  ;;  %v7621_v31 = vld [vmem:[%s6556_s19 + $0xf0] sm:$0xf]  ;;  %v1113_v24 = vpop.permute.xlu0 %1112 }
 0x149   : > { %v2355_v30 = vsel %vm452_vm4, %v2345_v1, %v7542_v38  ;;  %v1192_v40 = vsel %vm1184_vm6, %v1183_v58, %v1065_v43  ;;  %v3633_v56 = vshrl.u32 %v5868_v17, 16  ;;  %v3636_v16 = vshll.u32 %v5868_v17, 16  ;;  %v5693_v12 = vld [vmem:[%s6556_s19 + $0x34] sm:$0x1]  ;;  %v5825_v49 = vld [vmem:[%s6556_s19 + $0x100] sm:$0xf] }
 0x14a   : > { %v2339_v29 = vpack.c.b16 %v2335_v18, %v2334_v45  ;;  %v2600_v50 = vsel %vm6589_vm2, %v2595_v57, %v2599_v60  ;;  %v2609_v33 = vrot.slane %v2608_v3, 4  ;;  %v3642_v26 = vshll.u32 %v5869_v13, 16  ;;  %v5824_v60 = vld [vmem:[%s6556_s19 + $0xf8] sm:$0xf] }
 0x14b   : > { %v2969_v59 = vunpack.c.l.b16 %v2600_v50  ;;  %v3635_v41 = vrot.slane %v3633_v56, 4  ;;  %v3638_v38 = vrot.slane %v3636_v16, 5  ;;  %v3647_v15 = vshrl.u32 %v5870_v55, 16  ;;  %v5849_v56 = vld [vmem:[%s6556_s19 + $0x104] sm:$0x1]  ;;  %v1141_v50 = vpop.permute.xlu2 %1140 }
 0x14c   : > { %5647 = vmatmul.msk.bf16.gmra.mxu3 %vm1154_vm3, %v2339_v29  ;;  %v2614_v47 = vsel %vm6589_vm2, %v2609_v33, %v2613_v21  ;;  %v5779_v53 = vor.u32 %v7615_v48, %v7608_v37  ;;  %v3650_v54 = vshll.u32 %v5870_v55, 16  ;;  %v3656_v44 = vshll.u32 %v5871_v14, 16  ;;  %v6147_v33 = vld [vmem:[%s6556_s19 + $0x104] sm:$0xf0]  ;;  %v5901_v48 = vld [vmem:[%s6556_s19 + $0xbc] sm:$0x1] }
 0x14d   : > { %v2970_v5 = vunpack.c.l.b16 %v2614_v47  ;;  %v3639_v63 = vor.u32 %v3638_v38, %v3635_v41  ;;  %v3644_v43 = vrot.slane %v3642_v26, 5  ;;  %v3649_v1 = vrot.slane %v3647_v15, 4  ;;  %v2323_v47 = vpop.permute.xlu1 %2322 }
 0x14e   : > { %4214 = vrot.lane.b32.xlu2 %v5955_v10, %s8622_s18  ;;  %v3652_v0 = vrot.slane %v3650_v54, 5  ;;  %v3658_v2 = vrot.slane %v3656_v44, 5  ;;  %v5807_v36 = vor.u32 %v6134_v6, %v7621_v31  ;;  %v2363_v4 = vsel %vm1175_vm5, %v2355_v30, %v2235_v35 }
 0x14f   : > { %v2975_v22 = vpack.c.b16 %v2970_v5, %v2969_v59  ;;  %v3640_v8 = vrot.slane %v3639_v63, 4  ;;  %v1201_v23 = vsel %vm1193_vm7, %v1192_v40, %v7584_v11  ;;  %v7641_v62 = vsel %vm1184_vm6, %v2363_v4, %v2255_v9  ;;  %v7653_v40 = vld [vmem:[%s6556_s19 + $0x100] sm:$0xf] }
 0x150   : > { %4148 = vrot.lane.b32.xlu1 %v5943_v34, %s8617_s17  ;;  %v3653_v51 = vor.u32 %v3652_v0, %v3649_v1  ;;  %v2724_v52 = vshrl.u32 %v5676_v20, 16  ;;  %v2727_v7 = vshll.u32 %v5676_v20, 16  ;;  %v2733_v27 = vshll.u32 %v5692_v19, 16  ;;  %v5848_v34 = vld [vmem:[%s6556_s19 + $0xfc] sm:$0x1]  ;;  %v2303_v0 = vpop.permute.xlu0 %2302 }
 0x151   : > { %2981 = vrot.lane.b32.xlu0 %v2975_v22, %s8616_s26  ;;  %v3645_v25 = vsel %vm6589_vm2, %v3640_v8, %v3644_v43  ;;  %v2738_v35 = vshrl.u32 %v5677_v42, 16  ;;  %v2741_v45 = vshll.u32 %v5677_v42, 16  ;;  %v2747_v11 = vshll.u32 %v5693_v12, 16  ;;  %v5900_v43 = vld [vmem:[%s6556_s19 + $0xb8] sm:$0xf] }
 0x152   : > { %v3654_v32 = vrot.slane %v3653_v51, 4  ;;  %v4156_v46 = vunpack.c.l.b16 %v3645_v25  ;;  %v2726_v17 = vrot.slane %v2724_v52, 4  ;;  %v2729_v61 = vrot.slane %v2727_v7, 5  ;;  %v7673_v12 = vld [vmem:[%s6556_s19 + $0x100] sm:$0xf] }
 0x153   : > { %v2735_v21 = vrot.slane %v2733_v27, 5  ;;  %v2740_v10 = vrot.slane %v2738_v35, 4  ;;  %v2743_v13 = vrot.slane %v2741_v45, 5  ;;  %v2749_v18 = vrot.slane %v2747_v11, 5  ;;  %v5903_v22 = vld [vmem:[%s6556_s19 + $0xc4] sm:$0x1]  ;;  %v1299_v27 = vpop.f32.mrf.mxu0 }
 0x154   : > { %v3659_v57 = vsel %vm6589_vm2, %v3654_v32, %v3658_v2  ;;  %v2730_v3 = vor.u32 %v2729_v61, %v2726_v17  ;;  %v3497_v58 = vshrl.u32 %v5824_v60, 16  ;;  %v3500_v55 = vshll.u32 %v5824_v60, 16  ;;  %v7681_v52 = vld [vmem:[%s6556_s19 + $0x104] sm:$0xf0]  ;;  %v1328_v60 = vpop.f32.mrf.mxu1  ;;  %v6137_v61 = vld [vmem:[%s6556_s19 + $0xdc] sm:$0xf0] }
 0x155   : > { %v4157_v30 = vunpack.c.l.b16 %v3659_v57  ;;  %v2744_v14 = vor.u32 %v2743_v13, %v2740_v10  ;;  %v3506_v16 = vshll.u32 %v5848_v34, 16  ;;  %v3511_v29 = vshrl.u32 %v5825_v49, 16  ;;  %v7684_v7 = vld [vmem:[%s6556_s19 + $0x28] sm:$0xf] }
 0x156   : > { %3111 = vrot.lane.b32.xlu2 %v5807_v36, %s8619_s16  ;;  %v2731_v26 = vrot.slane %v2730_v3, 4  ;;  %v3499_v31 = vrot.slane %v3497_v58, 4  ;;  %v3502_v59 = vrot.slane %v3500_v55, 5  ;;  %v3514_v41 = vshll.u32 %v5825_v49, 16  ;;  %v7689_v49 = vld [vmem:[%s6556_s19 + $0x2c] sm:$0xf0]  ;;  %v4097_v55 = vpop.permute.xlu2 %4096 }
 0x157   : > { %v4162_v38 = vpack.c.b16 %v4157_v30, %v4156_v46  ;;  %v2745_v15 = vrot.slane %v2744_v14, 4  ;;  %v3508_v6 = vrot.slane %v3506_v16, 5  ;;  %v3513_v9 = vrot.slane %v3511_v29, 4  ;;  %v451_v30 = vld [vmem:[%s8623_s3] sm:$0x1]  ;;  %s5320_s3 = sshll.u32 %s419_s2, 6 }
 0x158   : > { %3037 = vrot.lane.b32.xlu1 %v5779_v53, %s8621_s29  ;;  %v2736_v54 = vsel %vm6589_vm2, %v2731_v26, %v2735_v21  ;;  %v3503_v44 = vor.u32 %v3502_v59, %v3499_v31  ;;  %v3516_v5 = vrot.slane %v3514_v41, 5  ;;  %v3520_v63 = vshll.u32 %v5849_v56, 16  ;;  %v5902_v53 = vld [vmem:[%s6556_s19 + $0xc0] sm:$0xf]  ;;  %v5826_v29 = vld [vmem:[%s6556_s19 + $0x108] sm:$0xf]  ;;  %v7708_v59 = vpop.permute.xlu1 %4116 }
 0x159   : > { %4168 = vrot.lane.b32.xlu0 %v4162_v38, %s8621_s29  ;;  %v5959_v1 = vor.u32 %v6147_v33, %v7653_v40  ;;  %v2750_v20 = vsel %vm6589_vm2, %v2745_v15, %v2749_v18  ;;  %v3045_v19 = vunpack.c.l.b16 %v2736_v54  ;;  %v1210_v37 = vsel %vm1202_vm8, %v1201_v23, %v1113_v24  ;;  %v5827_v54 = vld [vmem:[%s6556_s19 + $0x110] sm:$0xf] }
 0x15a   : > { %v3046_v2 = vunpack.c.l.b16 %v2750_v20  ;;  %v3504_v36 = vrot.slane %v3503_v44, 4  ;;  %v3517_v4 = vor.u32 %v3516_v5, %v3513_v9  ;;  %v3522_v42 = vrot.slane %v3520_v63, 5  ;;  %v5851_v44 = vld [vmem:[%s6556_s19 + $0x114] sm:$0x1]  ;;  %v7722_v20 = vpop.permute.xlu0 %2957 }
 0x15b   : > { %v2379_v8 = vsel %vm1193_vm7, %v7641_v62, %v7631_v39  ;;  %v1222_v51 = vsel %vm1211_vm9, %v1210_v37, %v1141_v50  ;;  %v3889_v23 = vshrl.u32 %v5900_v43, 16  ;;  %v3892_v24 = vshll.u32 %v5900_v43, 16  ;;  %v5918_v39 = vld [vmem:[%s6556_s19 + $0xd8] sm:$0xf]  ;;  %v5850_v50 = vld [vmem:[%s6556_s19 + $0x10c] sm:$0x1] }
 0x15c   : > { %v3051_v25 = vpack.c.b16 %v3046_v2, %v3045_v19  ;;  %v3509_v35 = vsel %vm6589_vm2, %v3504_v36, %v3508_v6  ;;  %v3518_v45 = vrot.slane %v3517_v4, 4  ;;  %1313 = vmatmul.bf16.gmra.mxu0 %v1222_v51  ;;  %v3898_v11 = vshll.u32 %v5901_v48, 16 }
 0x15d   : > { %v4108_v62 = vunpack.c.l.b16 %v3509_v35  ;;  %v3891_v32 = vrot.slane %v3889_v23, 4  ;;  %v3894_v46 = vrot.slane %v3892_v24, 5  ;;  %v3903_v17 = vshrl.u32 %v5902_v53, 16 }
 0x15e   : > { %v3523_v34 = vsel %vm6589_vm2, %v3518_v45, %v3522_v42  ;;  %v5811_v21 = vor.u32 %v7681_v52, %v7673_v12  ;;  %v3906_v10 = vshll.u32 %v5902_v53, 16  ;;  %v3912_v13 = vshll.u32 %v5903_v22, 16  ;;  %v5857_v53 = vld [vmem:[%s6556_s19 + $0x78] sm:$0xf]  ;;  %v5880_v42 = vld [vmem:[%s6556_s19 + $0x74] sm:$0x1]  ;;  %v1301_v22 = vpop.f32.mrf.mxu0 }
 0x15f   : > { %v4109_v18 = vunpack.c.l.b16 %v3523_v34  ;;  %v3895_v57 = vor.u32 %v3894_v46, %v3891_v32  ;;  %v3900_v3 = vrot.slane %v3898_v11, 5  ;;  %v3905_v58 = vrot.slane %v3903_v17, 4 }
 0x160   : > { %4216 = vrot.lane.b32.xlu1 %v5959_v1, %s8622_s18  ;;  %v3908_v40 = vrot.slane %v3906_v10, 5  ;;  %v5763_v14 = vor.u32 %v7689_v49, %v7684_v7  ;;  %v2387_v56 = vsel %vm1202_vm8, %v2379_v8, %v2303_v0  ;;  %v5919_v16 = vor.u32 %v6137_v61, %v5918_v39  ;;  %v5856_v1 = vld [vmem:[%s6556_s19 + $0x70] sm:$0xf]  ;;  %v1330_v8 = vpop.f32.mrf.mxu1 }
 0x161   : > { %3057 = vrot.lane.b32.xlu0 %v3051_v25, %s8618_s28  ;;  %v4114_v33 = vpack.c.b16 %v4109_v18, %v4108_v62  ;;  %v3896_v26 = vrot.slane %v3895_v57, 4  ;;  %v2396_v31 = vsel %vm1211_vm9, %v2387_v56, %v2323_v47  ;;  %v3914_v38 = vrot.slane %v3912_v13, 5  ;;  %v5881_v25 = vld [vmem:[%s6556_s19 + $0x7c] sm:$0x1]  ;;  %v7744_v62 = vld [vmem:[%s6556_s19 + $0x10c] sm:$0xf0] }
 0x162   : > { %v3909_v41 = vor.u32 %v3908_v40, %v3905_v58  ;;  %2429 = vmatmul.bf16.gmra.mxu1 %v2396_v31  ;;  %v6431_v15 = vmov 0.0   ;;  %v1329_v6 = vadd.f32 %v1328_v60, %v1299_v27  ;;  %v7712_v9 = vperm.slane %v451_v30, 0  ;;  %v7739_v60 = vld [vmem:[%s6556_s19 + $0x108] sm:$0xf]  ;;  %v5722_v57 = vld [vmem:[%s6556_s19 + $0x90] sm:$0xf] }
 0x163   : > { %508 = vst.msk [vmem:[#allocation2 + $0x1b0] sm:$0xff] %vm452_vm4, %v6431_v15  ;;  %4120 = vrot.lane.b32.xlu2 %v4114_v33, %s8616_s26  ;;  %v3901_v47 = vsel %vm6589_vm2, %v3896_v26, %v3900_v3  ;;  %v3525_v5 = vshrl.u32 %v5826_v29, 16  ;;  %v3528_v63 = vshll.u32 %v5826_v29, 16  ;;  %v3534_v43 = vshll.u32 %v5850_v50, 16  ;;  %v2978_v3 = vpop.permute.xlu2 %2977  ;;  %v3006_v29 = vpop.permute.xlu1 %3005 }
 0x164   : > { %453 = vst.msk [vmem:[#allocation2] sm:$0xff] %vm452_vm4, %v6431_v15  ;;  %v3910_v19 = vrot.slane %v3909_v41, 4  ;;  %v7725_v37 = vsel %vm1154_vm3, %v5919_v16, %v4097_v55  ;;  %vm1348_vm10 = vcmp.gt.f32.partialorder %v1329_v6, 0.0  ;;  %v1359_v48 = vmul.f32 %v7712_v9, %v1329_v6  ;;  %v6113_v55 = vld [vmem:[%s6556_s19 + $0x94] sm:$0xf0]  ;;  %v7771_v33 = vpop.f32.mrf.mxu3 }
 0x165   : > { %456 = vst.msk [vmem:[#allocation2 + $0x10] sm:$0xff] %vm452_vm4, %v6431_v15  ;;  %v4224_v0 = vunpack.c.l.b16 %v3901_v47  ;;  %v3527_v2 = vrot.slane %v3525_v5, 4  ;;  %v3530_v36 = vrot.slane %v3528_v63, 5  ;;  %v3539_v4 = vshrl.u32 %v5827_v54, 16  ;;  %v4145_v47 = vpop.permute.xlu0 %4144 }
 0x166   : > { %458 = vst.msk [vmem:[#allocation2 + $0x20] sm:$0xff] %vm452_vm4, %v6431_v15  ;;  %v3915_v51 = vsel %vm6589_vm2, %v3910_v19, %v3914_v38  ;;  %v1367_v23 = vsel %vm1348_vm10, %v1329_v6, %v1359_v48  ;;  %v3542_v24 = vshll.u32 %v5827_v54, 16  ;;  %v3548_v27 = vshll.u32 %v5851_v44, 16  ;;  %v7776_v6 = vld [vmem:[%s6556_s19 + $0x38] sm:$0xf] }
 0x167   : > { %460 = vst.msk [vmem:[#allocation2 + $0x30] sm:$0xff] %vm452_vm4, %v6431_v15  ;;  %v4225_v35 = vunpack.c.l.b16 %v3915_v51  ;;  %v3531_v45 = vor.u32 %v3530_v36, %v3527_v2  ;;  %v3536_v11 = vrot.slane %v3534_v43, 5  ;;  %v3541_v39 = vrot.slane %v3539_v4, 4  ;;  %v7779_v54 = vld [vmem:[%s6556_s19 + $0x3c] sm:$0xf0] }
 0x168   : > { %1376 = vst.msk [vmem:[#allocation2 + $0x1b0] sm:$0xff] %vm452_vm4, %v1367_v23  ;;  %3113 = vrot.lane.b32.xlu1 %v5811_v21, %s8619_s16  ;;  %v3544_v32 = vrot.slane %v3542_v24, 5  ;;  %v3550_v46 = vrot.slane %v3548_v27, 5  ;;  %v3753_v17 = vshrl.u32 %v5856_v1, 16  ;;  %v3756_v61 = vshll.u32 %v5856_v1, 16  ;;  %v1333_v36 = vpop.f32.mrf.mxu1 }
 0x169   : > { %462 = vst.msk [vmem:[#allocation2 + $0x40] sm:$0xff] %vm452_vm4, %v6431_v15  ;;  %v4230_v34 = vpack.c.b16 %v4225_v35, %v4224_v0  ;;  %v3532_v10 = vrot.slane %v3531_v45, 4  ;;  %v3762_v13 = vshll.u32 %v5880_v42, 16  ;;  %v3767_v18 = vshrl.u32 %v5857_v53, 16  ;;  %v7789_v1 = vld [vmem:[%s6556_s19 + $0x80] sm:$0xf] }
 0x16a   : > { %464 = vst.msk [vmem:[#allocation2 + $0x50] sm:$0xff] %vm452_vm4, %v6431_v15  ;;  %v3545_v12 = vor.u32 %v3544_v32, %v3541_v39  ;;  %v3755_v52 = vrot.slane %v3753_v17, 4  ;;  %v3758_v21 = vrot.slane %v3756_v61, 5  ;;  %v3770_v58 = vshll.u32 %v5857_v53, 16  ;;  %v7792_v19 = vld [vmem:[%s6556_s19 + $0x84] sm:$0xf0] }
 0x16b   : > { %466 = vst.msk [vmem:[#allocation2 + $0x60] sm:$0xff] %vm452_vm4, %v6431_v15  ;;  %4236 = vrot.lane.b32.xlu0 %v4230_v34, %s8619_s16  ;;  %3009 = vrot.lane.b32.xlu2 %v5763_v14, %s8617_s17  ;;  %v3537_v30 = vsel %vm6589_vm2, %v3532_v10, %v3536_v11  ;;  %v5751_v40 = vor.u32 %v7744_v62, %v7739_v60  ;;  %v3769_v56 = vrot.slane %v3767_v18, 4  ;;  %v3776_v16 = vshll.u32 %v5881_v25, 16  ;;  %v7800_v2 = vld [vmem:[%s6556_s19 + $0xb8] sm:$0xf]  ;;  %v4165_v17 = vpop.permute.xlu2 %4164 }
 0x16c   : > { %468 = vst.msk [vmem:[#allocation2 + $0x70] sm:$0xff] %vm452_vm4, %v6431_v15  ;;  %v3546_v50 = vrot.slane %v3545_v12, 4  ;;  %v3759_v7 = vor.u32 %v3758_v21, %v3755_v52  ;;  %v3764_v49 = vrot.slane %v3762_v13, 5  ;;  %v3772_v14 = vrot.slane %v3770_v58, 5  ;;  %v5859_v60 = vld [vmem:[%s6556_s19 + $0x88] sm:$0xf] }
 0x16d   : > { %470 = vst.msk [vmem:[#allocation2 + $0x80] sm:$0xff] %vm452_vm4, %v6431_v15  ;;  %v4110_v26 = vunpack.c.l.b16 %v3537_v30  ;;  %v3778_v31 = vrot.slane %v3776_v16, 5  ;;  %v5723_v41 = vor.u32 %v6113_v55, %v5722_v57  ;;  %v1331_v38 = vadd.f32 %v1330_v8, %v1301_v22  ;;  %v5858_v8 = vld [vmem:[%s6556_s19 + $0x80] sm:$0xf]  ;;  %v5882_v25 = vld [vmem:[%s6556_s19 + $0x84] sm:$0x1] }
 0x16e   : > { %472 = vst.msk [vmem:[#allocation2 + $0x90] sm:$0xff] %vm452_vm4, %v6431_v15  ;;  %v3551_v44 = vsel %vm6589_vm2, %v3546_v50, %v3550_v46  ;;  %v3760_v5 = vrot.slane %v3759_v7, 4  ;;  %v3773_v63 = vor.u32 %v3772_v14, %v3769_v56  ;;  %v4265_v43 = vsel %vm452_vm4, %v7725_v37, %v7708_v59  ;;  %v7803_v59 = vld [vmem:[%s6556_s19 + $0xbc] sm:$0xf0]  ;;  %v1304_v37 = vpop.f32.mrf.mxu0  ;;  %v5883_v61 = vld [vmem:[%s6556_s19 + $0x8c] sm:$0x1] }
 0x16f   : > { %474 = vst.msk [vmem:[#allocation2 + $0xa0] sm:$0xff] %vm452_vm4, %v6431_v15  ;;  %v4111_v48 = vunpack.c.l.b16 %v3551_v44  ;;  %v3131_v53 = vsel %vm1154_vm3, %v5723_v41, %v7722_v20  ;;  %vm1349_vm11 = vcmp.gt.f32.partialorder %v1331_v38, 0.0  ;;  %v1360_v0 = vmul.f32 %v7712_v9, %v1331_v38  ;;  %v5840_v62 = vld [vmem:[%s6556_s19 + $0xc0] sm:$0xf]  ;;  %v5842_v13 = vld [vmem:[%s6556_s19 + $0xc8] sm:$0xf] }
 0x170   : > { %476 = vst.msk [vmem:[#allocation2 + $0xb0] sm:$0xff] %vm452_vm4, %v6431_v15  ;;  %v3765_v4 = vsel %vm6589_vm2, %v3760_v5, %v3764_v49  ;;  %v3774_v42 = vrot.slane %v3773_v63, 4  ;;  %v3142_v20 = vsel %vm452_vm4, %v3131_v53, %v2978_v3  ;;  %v5767_v22 = vor.u32 %v7779_v54, %v7776_v6  ;;  %v5841_v12 = vld [vmem:[%s6556_s19 + $0xc4] sm:$0x1]  ;;  %v5843_v30 = vld [vmem:[%s6556_s19 + $0xcc] sm:$0x1] }
 0x171   : > { %478 = vst.msk [vmem:[#allocation2 + $0xc0] sm:$0xff] %vm452_vm4, %v6431_v15  ;;  %v4115_v51 = vpack.c.b16 %v4111_v48, %v4110_v26  ;;  %v4176_v23 = vunpack.c.l.b16 %v3765_v4  ;;  %v7815_v24 = vsel %vm1349_vm11, %v1331_v38, %v1360_v0  ;;  %v5947_v27 = vor.u32 %v7792_v19, %v7789_v1  ;;  %v7853_v49 = vld [vmem:[%s6556_s19 + $0x80] sm:$0xf]  ;;  %v7859_v41 = vld [vmem:[%s6556_s19 + $0x84] sm:$0xf0] }
 0x172   : > { %480 = vst.msk [vmem:[#allocation2 + $0xd0] sm:$0xff] %vm452_vm4, %v6431_v15  ;;  %v3779_v35 = vsel %vm6589_vm2, %v3774_v42, %v3778_v31  ;;  %v5795_v45 = vor.u32 %v7803_v59, %v7800_v2  ;;  %v7828_v11 = vsel %vm1175_vm5, %v3142_v20, %v3006_v29  ;;  %v1334_v39 = vadd.f32 %v1333_v36, %v1304_v37  ;;  %v7850_v29 = vpop.f32.mrf.mxu3  ;;  %v5908_v1 = vld [vmem:[%s6556_s19 + $0xe4] sm:$0x1] }
 0x173   : > { %482 = vst.msk [vmem:[#allocation2 + $0xe0] sm:$0xff] %vm452_vm4, %v6431_v15  ;;  %4122 = vrot.lane.b32.xlu1 %v4115_v51, %s8616_s26  ;;  %2963 = vrot.lane.b32.xlu0 %v5751_v40, %s8620_s0  ;;  %v4177_v32 = vunpack.c.l.b16 %v3779_v35  ;;  %v4273_v46 = vsel %vm1175_vm5, %v4265_v43, %v4145_v47  ;;  %v3781_v34 = vshrl.u32 %v5858_v8, 16  ;;  %v3784_v10 = vshll.u32 %v5858_v8, 16  ;;  %v4185_v40 = vpop.permute.xlu1 %4184  ;;  %v3034_v47 = vpop.permute.xlu0 %3033 }
 0x174   : > { %484 = vst.msk [vmem:[#allocation2 + $0xf0] sm:$0xff] %vm452_vm4, %v6431_v15  ;;  %vm1350_vm12 = vcmp.gt.f32.partialorder %v1334_v39, 0.0  ;;  %v1361_v18 = vmul.f32 %v7712_v9, %v1334_v39  ;;  %v3790_v57 = vshll.u32 %v5882_v25, 16  ;;  %v3795_v3 = vshrl.u32 %v5859_v60, 16  ;;  %v1335_v51 = vpop.f32.mrf.mxu1 }
 0x175   : > { %486 = vst.msk [vmem:[#allocation2 + $0x100] sm:$0xff] %vm452_vm4, %v6431_v15  ;;  %v4182_v52 = vpack.c.b16 %v4177_v32, %v4176_v23  ;;  %v3783_v21 = vrot.slane %v3781_v34, 4  ;;  %v3786_v58 = vrot.slane %v3784_v10, 5  ;;  %v3798_v55 = vshll.u32 %v5859_v60, 16 }
 0x176   : > { %488 = vst.msk [vmem:[#allocation2 + $0x110] sm:$0xff] %vm452_vm4, %v6431_v15  ;;  %v4281_v56 = vsel %vm1184_vm6, %v4273_v46, %v4165_v17  ;;  %v7848_v16 = vsel %vm1350_vm12, %v1334_v39, %v1361_v18  ;;  %v3797_v50 = vrot.slane %v3795_v3, 4  ;;  %v3804_v7 = vshll.u32 %v5883_v61, 16  ;;  %v1306_v8 = vpop.f32.mrf.mxu0  ;;  %v5884_v39 = vld [vmem:[%s6556_s19 + $0xe0] sm:$0xf] }
 0x177   : > { %490 = vst.msk [vmem:[#allocation2 + $0x120] sm:$0xff] %vm452_vm4, %v6431_v15  ;;  %4188 = vrot.lane.b32.xlu2 %v4182_v52, %s8618_s28  ;;  %v3787_v14 = vor.u32 %v3786_v58, %v3783_v21  ;;  %v3792_v26 = vrot.slane %v3790_v57, 5  ;;  %v3800_v31 = vrot.slane %v3798_v55, 5  ;;  %v3405_v38 = vshrl.u32 %v5840_v62, 16  ;;  %v5885_v17 = vld [vmem:[%s6556_s19 + $0xe8] sm:$0xf] }
 0x178   : > { %492 = vst.msk [vmem:[#allocation2 + $0x130] sm:$0xff] %vm452_vm4, %v6431_v15  ;;  %v3806_v44 = vrot.slane %v3804_v7, 5  ;;  %v3408_v5 = vshll.u32 %v5840_v62, 16  ;;  %v3414_v63 = vshll.u32 %v5841_v12, 16  ;;  %v3419_v43 = vshrl.u32 %v5842_v13, 16 }
 0x179   : > { %494 = vst.msk [vmem:[#allocation2 + $0x140] sm:$0xff] %vm452_vm4, %v6431_v15  ;;  %v3788_v48 = vrot.slane %v3787_v14, 4  ;;  %v3801_v53 = vor.u32 %v3800_v31, %v3797_v50  ;;  %v3407_v0 = vrot.slane %v3405_v38, 4  ;;  %v3422_v37 = vshll.u32 %v5842_v13, 16  ;;  %v5909_v13 = vld [vmem:[%s6556_s19 + $0xec] sm:$0x1] }
 0x17a   : > { %496 = vst.msk [vmem:[#allocation2 + $0x150] sm:$0xff] %vm452_vm4, %v6431_v15  ;;  %v5783_v36 = vor.u32 %v7859_v41, %v7853_v49  ;;  %v3410_v4 = vrot.slane %v3408_v5, 5  ;;  %v3421_v42 = vrot.slane %v3419_v43, 4  ;;  %v3428_v20 = vshll.u32 %v5843_v30, 16  ;;  %v5654_v3 = vld [vmem:[%s6556_s19 + $0xc0] sm:$0xf]  ;;  %v7913_v2 = vpop.f32.mrf.mxu3 }
 0x17b   : > { %498 = vst.msk [vmem:[#allocation2 + $0x160] sm:$0xff] %vm452_vm4, %v6431_v15  ;;  %3011 = vrot.lane.b32.xlu1 %v5767_v22, %s8617_s17  ;;  %4150 = vrot.lane.b32.xlu0 %v5947_v27, %s8617_s17  ;;  %v3793_v23 = vsel %vm6589_vm2, %v3788_v48, %v3792_v26  ;;  %v3802_v60 = vrot.slane %v3801_v53, 4  ;;  %v3416_v25 = vrot.slane %v3414_v63, 5  ;;  %v3424_v35 = vrot.slane %v3422_v37, 5  ;;  %v3054_v10 = vpop.permute.xlu2 %3053  ;;  %v7905_v21 = vld [vmem:[%s6556_s19 + $0xc8] sm:$0xf]  ;;  %v7907_v58 = vpop.permute.xlu1 %3081 }
 0x17c   : > { %500 = vst.msk [vmem:[#allocation2 + $0x170] sm:$0xff] %vm452_vm4, %v6431_v15  ;;  %v4178_v62 = vunpack.c.l.b16 %v3793_v23  ;;  %v3411_v6 = vor.u32 %v3410_v4, %v3407_v0  ;;  %v3430_v54 = vrot.slane %v3428_v20, 5  ;;  %v7885_v22 = vsel %vm1193_vm7, %v4281_v56, %v4185_v40  ;;  %v7916_v40 = vld [vmem:[%s6556_s19 + $0xcc] sm:$0xf0]  ;;  %v5655_v26 = vld [vmem:[%s6556_s19 + $0xc8] sm:$0xf]  ;;  %v4213_v38 = vpop.permute.xlu0 %4212 }
 0x17d   : > { %502 = vst.msk [vmem:[#allocation2 + $0x180] sm:$0xff] %vm452_vm4, %v6431_v15  ;;  %v3807_v19 = vsel %vm6589_vm2, %v3802_v60, %v3806_v44  ;;  %v3425_v27 = vor.u32 %v3424_v35, %v3421_v42  ;;  %v3158_v32 = vsel %vm1184_vm6, %v7828_v11, %v3034_v47  ;;  %v1336_v46 = vadd.f32 %v1335_v51, %v1306_v8  ;;  %v5670_v31 = vld [vmem:[%s6556_s19 + $0xc4] sm:$0x1]  ;;  %v5962_v43 = vld [vmem:[%s6556_s19 + $0x110] sm:$0xf]  ;;  %v7944_v60 = vpop.f32.mrf.mxu1 }
 0x17e   : > { %504 = vst.msk [vmem:[#allocation2 + $0x190] sm:$0xff] %vm452_vm4, %v6431_v15  ;;  %v4179_v61 = vunpack.c.l.b16 %v3807_v19  ;;  %v3412_v34 = vrot.slane %v3411_v6, 4  ;;  %v3953_v18 = vshrl.u32 %v5884_v39, 16  ;;  %v3956_v57 = vshll.u32 %v5884_v39, 16  ;;  %v6148_v37 = vld [vmem:[%s6556_s19 + $0x114] sm:$0xf0] }
 0x17f   : > { %510 = vst.msk [vmem:[#allocation2 + $0x1c0] sm:$0xff] %vm452_vm4, %v6431_v15  ;;  %3085 = vrot.lane.b32.xlu2 %v5795_v45, %s8622_s18  ;;  %v3426_v11 = vrot.slane %v3425_v27, 4  ;;  %vm1351_vm13 = vcmp.gt.f32.partialorder %v1336_v46, 0.0  ;;  %v1362_v12 = vmul.f32 %v7712_v9, %v1336_v46  ;;  %v3962_v52 = vshll.u32 %v5908_v1, 16  ;;  %v5671_v23 = vld [vmem:[%s6556_s19 + $0xcc] sm:$0x1] }
 0x180   : > { %512 = vst.msk [vmem:[#allocation2 + $0x1d0] sm:$0xff] %vm452_vm4, %v6431_v15  ;;  %v4183_v55 = vpack.c.b16 %v4179_v61, %v4178_v62  ;;  %v3417_v30 = vsel %vm6589_vm2, %v3412_v34, %v3416_v25  ;;  %v3955_v59 = vrot.slane %v3953_v18, 4  ;;  %v3958_v45 = vrot.slane %v3956_v57, 5 }
 0x181   : > { %514 = vst.msk [vmem:[#allocation2 + $0x1e0] sm:$0xff] %vm452_vm4, %v6431_v15  ;;  %v3431_v56 = vsel %vm6589_vm2, %v3426_v11, %v3430_v54  ;;  %v4090_v50 = vunpack.c.l.b16 %v3417_v30  ;;  %v7923_v7 = vsel %vm1193_vm7, %v3158_v32, %v3054_v10  ;;  %v3964_v14 = vrot.slane %v3962_v52, 5  ;;  %v5696_v54 = vld [vmem:[%s6556_s19 + $0x98] sm:$0xf] }
 0x182   : > { %516 = vst.msk [vmem:[#allocation2 + $0x1f0] sm:$0xff] %vm452_vm4, %v6431_v15  ;;  %v4091_v47 = vunpack.c.l.b16 %v3431_v56  ;;  %v3959_v44 = vor.u32 %v3958_v45, %v3955_v59  ;;  %v3967_v5 = vshrl.u32 %v5885_v17, 16  ;;  %v3970_v63 = vshll.u32 %v5885_v17, 16  ;;  %v7967_v59 = vpop.f32.mrf.mxu3 }
 0x183   : > { %518 = vst.msk [vmem:[#allocation2 + $0x200] sm:$0xff] %vm452_vm4, %v6431_v15  ;;  %4190 = vrot.lane.b32.xlu1 %v4183_v55, %s8618_s28  ;;  %3039 = vrot.lane.b32.xlu0 %v5783_v36, %s8621_s29  ;;  %v1370_v48 = vsel %vm1351_vm13, %v1336_v46, %v1362_v12  ;;  %v3976_v53 = vshll.u32 %v5909_v13, 16  ;;  %v5799_v0 = vor.u32 %v7916_v40, %v7905_v21  ;;  %v2616_v4 = vshrl.u32 %v5654_v3, 16  ;;  %v5712_v46 = vld [vmem:[%s6556_s19 + $0x9c] sm:$0x1]  ;;  %v7961_v12 = vpop.permute.xlu1 %4098 }
 0x184   : > { %520 = vst.msk [vmem:[#allocation2 + $0x210] sm:$0xff] %vm452_vm4, %v6431_v15  ;;  %v4095_v42 = vpack.c.b16 %v4091_v47, %v4090_v50  ;;  %v3960_v20 = vrot.slane %v3959_v44, 4  ;;  %v3969_v8 = vrot.slane %v3967_v5, 4  ;;  %v3972_v51 = vrot.slane %v3970_v63, 5  ;;  %v5713_v55 = vld [vmem:[%s6556_s19 + $0xa4] sm:$0x1] }
 0x185   : > { %522 = vst.msk [vmem:[#allocation2 + $0x220] sm:$0xff] %vm452_vm4, %v6431_v15  ;;  %v3978_v49 = vrot.slane %v3976_v53, 5  ;;  %v2618_v41 = vrot.slane %v2616_v4, 4  ;;  %v2619_v36 = vshll.u32 %v5654_v3, 16  ;;  %v2625_v25 = vshll.u32 %v5670_v31, 16 }
 0x186   : > { %v3965_v35 = vsel %vm6589_vm2, %v3960_v20, %v3964_v14  ;;  %v3973_v39 = vor.u32 %v3972_v51, %v3969_v8  ;;  %v2630_v62 = vshrl.u32 %v5655_v26, 16  ;;  %v2633_v6 = vshll.u32 %v5655_v26, 16  ;;  %1377 = vst.msk [vmem:[#allocation2 + $0x1c0] sm:$0xff] %vm452_vm4, %v7815_v24  ;;  %v5697_v3 = vld [vmem:[%s6556_s19 + $0xa0] sm:$0xf]  ;;  %v3110_v14 = vpop.permute.xlu0 %3109  ;;  %v7980_v51 = vpop.f32.mrf.mxu1 }
 0x187   : > { %4102 = vrot.lane.b32.xlu2 %v4095_v42, %s8620_s0  ;;  %v4240_v1 = vunpack.c.l.b16 %v3965_v35  ;;  %v5963_v19 = vor.u32 %v6148_v37, %v5962_v43  ;;  %v2621_v27 = vrot.slane %v2619_v36, 5  ;;  %v2639_v32 = vshll.u32 %v5671_v23, 16  ;;  %1378 = vst.msk [vmem:[#allocation2 + $0x1d0] sm:$0xff] %vm452_vm4, %v7848_v16  ;;  %v5814_v50 = vld [vmem:[%s6556_s19 + $0x110] sm:$0xf] }
 0x188   : > { %v3974_v17 = vrot.slane %v3973_v39, 4  ;;  %v2627_v61 = vrot.slane %v2625_v25, 5  ;;  %v2632_v34 = vrot.slane %v2630_v62, 4  ;;  %v2635_v10 = vrot.slane %v2633_v6, 5  ;;  %v4233_v13 = vpop.permute.xlu2 %4232  ;;  %1379 = vst.msk [vmem:[#allocation2 + $0x1e0] sm:$0xff] %vm452_vm4, %v1370_v48 }
 0x189   : > { %v2622_v24 = vor.u32 %v2621_v27, %v2618_v41  ;;  %v2641_v18 = vrot.slane %v2639_v32, 5  ;;  %v4297_v57 = vsel %vm1202_vm8, %v7885_v22, %v4213_v38  ;;  %v2806_v11 = vshrl.u32 %v5696_v54, 16  ;;  %v6136_v44 = vld [vmem:[%s6556_s19 + $0x114] sm:$0xf0]  ;;  %v5874_v8 = vld [vmem:[%s6556_s19 + $0x40] sm:$0xf] }
 0x18a   : > { %v3979_v16 = vsel %vm6589_vm2, %v3974_v17, %v3978_v49  ;;  %v2636_v52 = vor.u32 %v2635_v10, %v2632_v34  ;;  %v4305_v21 = vsel %vm1211_vm9, %v4297_v57, %v4233_v13  ;;  %v2809_v30 = vshll.u32 %v5696_v54, 16  ;;  %v5872_v53 = vld [vmem:[%s6556_s19 + $0x38] sm:$0xf]  ;;  %499 = vst.msk [vmem:[#allocation2 + $0x168] sm:$0x1] %vm454_vm14, %v6431_v15 }
 0x18b   : > { %v4241_v45 = vunpack.c.l.b16 %v3979_v16  ;;  %3087 = vrot.lane.b32.xlu1 %v5799_v0, %s8622_s18  ;;  %4218 = vrot.lane.b32.xlu0 %v5963_v19, %s8622_s18  ;;  %v2623_v22 = vrot.slane %v2622_v24, 4  ;;  %v2808_v40 = vrot.slane %v2806_v11, 4  ;;  %v2815_v56 = vshll.u32 %v5712_v46, 16  ;;  %v5873_v0 = vld [vmem:[%s6556_s19 + $0x3c] sm:$0x1]  ;;  %v7993_v57 = vpop.permute.xlu1 %2979  ;;  %v2435_v16 = vpop.f32.mrf.mxu2 }
 0x18c   : > { %v2637_v26 = vrot.slane %v2636_v52, 4  ;;  %4336 = vmatmul.bf16.vlgmr.msrb.gmra.mxu0 %v4305_v21  ;;  %v2811_v31 = vrot.slane %v2809_v30, 5  ;;  %v2820_v38 = vshrl.u32 %v5697_v3, 16  ;;  %v2823_v47 = vshll.u32 %v5697_v3, 16  ;;  %v5875_v19 = vld [vmem:[%s6556_s19 + $0x44] sm:$0x1]  ;;  %v2464_v52 = vpop.f32.mrf.mxu3 }
 0x18d   : > { %v4248_v5 = vpack.c.b16 %v4241_v45, %v4240_v1  ;;  %v2628_v63 = vsel %vm6589_vm2, %v2623_v22, %v2627_v61  ;;  %v2817_v43 = vrot.slane %v2815_v56, 5  ;;  %v2829_v48 = vshll.u32 %v5713_v55, 16  ;;  %v5678_v21 = vld [vmem:[%s6556_s19 + $0x38] sm:$0xf]  ;;  %v5694_v45 = vld [vmem:[%s6556_s19 + $0x3c] sm:$0x1] }
 0x18e   : > { %v2642_v37 = vsel %vm6589_vm2, %v2637_v26, %v2641_v18  ;;  %v2971_v4 = vunpack.c.l.b16 %v2628_v63  ;;  %v2812_v42 = vor.u32 %v2811_v31, %v2808_v40  ;;  %v2822_v20 = vrot.slane %v2820_v38, 4  ;;  %v8000_v22 = vpop.permute.xlu0 %4118  ;;  %455 = vst.msk [vmem:[#allocation2 + $0x8] sm:$0x1] %vm454_vm14, %v6431_v15  ;;  %v5695_v38 = vld [vmem:[%s6556_s19 + $0x44] sm:$0x1] }
 0x18f   : > { %5964 = vmatmul.msk.bf16.vlgmr.msrb.gmra.mxu2 %vm1154_vm3, %v4248_v5  ;;  %v2972_v23 = vunpack.c.l.b16 %v2642_v37  ;;  %v2825_v49 = vrot.slane %v2823_v47, 5  ;;  %v2831_v41 = vrot.slane %v2829_v48, 5  ;;  %v5815_v36 = vor.u32 %v6136_v44, %v5814_v50  ;;  %v8011_v63 = vld [vmem:[%s6556_s19 + $0xe8] sm:$0xf]  ;;  %457 = vst.msk [vmem:[#allocation2 + $0x18] sm:$0x1] %vm454_vm14, %v6431_v15 }
 0x190   : > { %v2813_v25 = vrot.slane %v2812_v42, 4  ;;  %v3661_v35 = vshrl.u32 %v5872_v53, 16  ;;  %v3664_v39 = vshll.u32 %v5872_v53, 16  ;;  %v3670_v62 = vshll.u32 %v5873_v0, 16  ;;  %v7983_v6 = vpop.permute.xlu2 %2959  ;;  %v8017_v0 = vpop.f32.mrf.mxu1  ;;  %v6138_v42 = vld [vmem:[%s6556_s19 + $0xec] sm:$0xf0] }
 0x191   : > { %v2976_v54 = vpack.c.b16 %v2972_v23, %v2971_v4  ;;  %v2826_v1 = vor.u32 %v2825_v49, %v2822_v20  ;;  %v3675_v27 = vshrl.u32 %v5874_v8, 16  ;;  %v3678_v32 = vshll.u32 %v5874_v8, 16  ;;  %459 = vst.msk [vmem:[#allocation2 + $0x28] sm:$0x1] %vm454_vm14, %v6431_v15 }
 0x192   : > { %v3174_v46 = vsel %vm1202_vm8, %v7923_v7, %v7907_v58  ;;  %v2818_v17 = vsel %vm6589_vm2, %v2813_v25, %v2817_v43  ;;  %v3663_v61 = vrot.slane %v3661_v35, 4  ;;  %v3666_v34 = vrot.slane %v3664_v39, 5  ;;  %461 = vst.msk [vmem:[#allocation2 + $0x38] sm:$0x1] %vm454_vm14, %v6431_v15  ;;  %v6114_v25 = vld [vmem:[%s6556_s19 + $0xa4] sm:$0xf0] }
 0x193   : > { %2983 = vrot.lane.b32.xlu2 %v2976_v54, %s8616_s26  ;;  %v2827_v10 = vrot.slane %v2826_v1, 4  ;;  %3115 = vrot.lane.b32.xlu0 %v5815_v36, %s8619_s16  ;;  %v3672_v13 = vrot.slane %v3670_v62, 5  ;;  %v3677_v24 = vrot.slane %v3675_v27, 4  ;;  %v3680_v18 = vrot.slane %v3678_v32, 5  ;;  %v5726_v36 = vld [vmem:[%s6556_s19 + $0xa0] sm:$0xf] }
 0x194   : > { %v3117_v3 = vunpack.c.l.b16 %v2818_v17  ;;  %v3667_v11 = vor.u32 %v3666_v34, %v3663_v61  ;;  %v3684_v58 = vshll.u32 %v5875_v19, 16  ;;  %v3182_v7 = vsel %vm1211_vm9, %v3174_v46, %v3110_v14  ;;  %v5679_v14 = vld [vmem:[%s6556_s19 + $0x40] sm:$0xf]  ;;  %463 = vst.msk [vmem:[#allocation2 + $0x48] sm:$0x1] %vm454_vm14, %v6431_v15 }
 0x195   : > { %v2832_v55 = vsel %vm6589_vm2, %v2827_v10, %v2831_v41  ;;  %v3681_v30 = vor.u32 %v3680_v18, %v3677_v24  ;;  %3213 = vmatmul.bf16.vlgmr.msra.gmra.mxu1 %v3182_v7  ;;  %v2465_v31 = vadd.f32 %v2464_v52, %v2435_v16  ;;  %v2752_v47 = vshrl.u32 %v5678_v21, 16  ;;  %v5904_v41 = vld [vmem:[%s6556_s19 + $0xc8] sm:$0xf]  ;;  %v5905_v32 = vld [vmem:[%s6556_s19 + $0xcc] sm:$0x1] }
 0x196   : > { %v3118_v40 = vunpack.c.l.b16 %v2832_v55  ;;  %v3668_v56 = vrot.slane %v3667_v11, 4  ;;  %v3686_v50 = vrot.slane %v3684_v58, 5  ;;  %v2755_v43 = vshll.u32 %v5678_v21, 16  ;;  %v5906_v46 = vld [vmem:[%s6556_s19 + $0xd0] sm:$0xf]  ;;  %v3008_v21 = vpop.permute.xlu0 %3007 }
 0x197   : > { %v3682_v26 = vrot.slane %v3681_v30, 4  ;;  %v2761_v48 = vshll.u32 %v5694_v45, 16  ;;  %vm2478_vm15 = vcmp.gt.f32.partialorder %v2465_v31, 0.0  ;;  %v2486_v20 = vmul.f32 %v2465_v31, %v7712_v9  ;;  %465 = vst.msk [vmem:[#allocation2 + $0x58] sm:$0x1] %vm454_vm14, %v6431_v15 }
 0x198   : > { %v3125_v44 = vpack.c.b16 %v3118_v40, %v3117_v3  ;;  %v3673_v5 = vsel %vm6589_vm2, %v3668_v56, %v3672_v13  ;;  %v8015_v53 = vpop.permute.xlu2 %4146  ;;  %v2754_v23 = vrot.slane %v2752_v47, 4  ;;  %v2757_v49 = vrot.slane %v2755_v43, 5  ;;  %v5907_v10 = vld [vmem:[%s6556_s19 + $0xd4] sm:$0x1]  ;;  %467 = vst.msk [vmem:[#allocation2 + $0x68] sm:$0x1] %vm454_vm14, %v6431_v15  ;;  %v8053_v56 = vpop.f32.mrf.mxu1 }
 0x199   : > { %v3687_v37 = vsel %vm6589_vm2, %v3682_v26, %v3686_v50  ;;  %v4158_v4 = vunpack.c.l.b16 %v3673_v5  ;;  %v2494_v35 = vsel %vm2478_vm15, %v2465_v31, %v2486_v20  ;;  %v2766_v39 = vshrl.u32 %v5679_v14, 16  ;;  %469 = vst.msk [vmem:[#allocation2 + $0x78] sm:$0x1] %vm454_vm14, %v6431_v15  ;;  %v5886_v26 = vld [vmem:[%s6556_s19 + $0xf0] sm:$0xf]  ;;  %v2437_v20 = vpop.f32.mrf.mxu2 }
 0x19a   : > { %5816 = vmatmul.msk.bf16.vlgmr.msrb.gmra.mxu3 %vm1154_vm3, %v3125_v44  ;;  %v4159_v8 = vunpack.c.l.b16 %v3687_v37  ;;  %v2769_v62 = vshll.u32 %v5679_v14, 16  ;;  %v2775_v54 = vshll.u32 %v5695_v38, 16  ;;  %2503 = vst.msk [vmem:[#allocation2 + $0x161] sm:$0xff] %vm452_vm4, %v2494_v35  ;;  %v2758_v19 = vor.u32 %v2757_v49, %v2754_v23  ;;  %v8040_v13 = vpop.permute.xlu1 %4166  ;;  %v5910_v37 = vld [vmem:[%s6556_s19 + $0xf4] sm:$0x1] }
 0x19b   : > { %v2763_v27 = vrot.slane %v2761_v48, 5  ;;  %v5923_v17 = vor.u32 %v6138_v42, %v8011_v63  ;;  %v2768_v61 = vrot.slane %v2766_v39, 4  ;;  %v3917_v3 = vshrl.u32 %v5904_v41, 16  ;;  %471 = vst.msk [vmem:[#allocation2 + $0x88] sm:$0x1] %vm454_vm14, %v6431_v15 }
 0x19c   : > { %v4163_v1 = vpack.c.b16 %v4159_v8, %v4158_v4  ;;  %v2771_v34 = vrot.slane %v2769_v62, 5  ;;  %v2759_v24 = vrot.slane %v2758_v19, 4  ;;  %v2777_v18 = vrot.slane %v2775_v54, 5  ;;  %v5887_v49 = vld [vmem:[%s6556_s19 + $0xf8] sm:$0xf] }
 0x19d   : > { %v3920_v11 = vshll.u32 %v5904_v41, 16  ;;  %v3926_v7 = vshll.u32 %v5905_v32, 16  ;;  %v3931_v16 = vshrl.u32 %v5906_v46, 16  ;;  %v3934_v52 = vshll.u32 %v5906_v46, 16  ;;  %v2466_v41 = vpop.f32.mrf.mxu3  ;;  %v5911_v46 = vld [vmem:[%s6556_s19 + $0xfc] sm:$0x1] }
 0x19e   : > { %4170 = vrot.lane.b32.xlu2 %v4163_v1, %s8621_s29  ;;  %v2772_v58 = vor.u32 %v2771_v34, %v2768_v61  ;;  %v5727_v55 = vor.u32 %v6114_v25, %v5726_v36  ;;  %v2764_v30 = vsel %vm6589_vm2, %v2759_v24, %v2763_v27  ;;  %v3919_v45 = vrot.slane %v3917_v3, 4  ;;  %v8064_v25 = vpop.f32.mrf.mxu0  ;;  %v5698_v1 = vld [vmem:[%s6556_s19 + $0xa8] sm:$0xf]  ;;  %491 = vst.msk [vmem:[#allocation2 + $0x128] sm:$0x1] %vm454_vm14, %v6431_v15 }
 0x19f   : > { %v3922_v14 = vrot.slane %v3920_v11, 5  ;;  %v3047_v31 = vunpack.c.l.b16 %v2764_v30  ;;  %v3933_v38 = vrot.slane %v3931_v16, 4  ;;  %v3936_v47 = vrot.slane %v3934_v52, 5  ;;  %493 = vst.msk [vmem:[#allocation2 + $0x138] sm:$0x1] %vm454_vm14, %v6431_v15 }
 0x1a0   : > { %v8051_v40 = vpop.permute.xlu2 %3035  ;;  %v2773_v50 = vrot.slane %v2772_v58, 4  ;;  %v3940_v44 = vshll.u32 %v5907_v10, 16  ;;  %v4257_v5 = vsel %vm1154_vm3, %v5923_v17, %v7961_v12  ;;  %v3928_v48 = vrot.slane %v3926_v7, 5  ;;  %v2425_v3 = vpop.f32.mrf.mxu1  ;;  %495 = vst.msk [vmem:[#allocation2 + $0x148] sm:$0x1] %vm454_vm14, %v6431_v15 }
 0x1a1   : > { %v3923_v43 = vor.u32 %v3922_v14, %v3919_v45  ;;  %v3134_v4 = vsel %vm1154_vm3, %v5727_v55, %v7983_v6  ;;  %v3937_v8 = vor.u32 %v3936_v47, %v3933_v38  ;;  %v3981_v12 = vshrl.u32 %v5886_v26, 16  ;;  %v5715_v47 = vld [vmem:[%s6556_s19 + $0xb4] sm:$0x1]  ;;  %497 = vst.msk [vmem:[#allocation2 + $0x158] sm:$0x1] %vm454_vm14, %v6431_v15 }
 0x1a2   : > { %v2778_v63 = vsel %vm6589_vm2, %v2773_v50, %v2777_v18  ;;  %v3942_v23 = vrot.slane %v3940_v44, 5  ;;  %v3984_v35 = vshll.u32 %v5886_v26, 16  ;;  %v3990_v54 = vshll.u32 %v5910_v37, 16  ;;  %v5699_v18 = vld [vmem:[%s6556_s19 + $0xb0] sm:$0xf] }
 0x1a3   : > { %v3048_v42 = vunpack.c.l.b16 %v2778_v63  ;;  %v3924_v36 = vrot.slane %v3923_v43, 4  ;;  %v3938_v62 = vrot.slane %v3937_v8, 4  ;;  %v3144_v6 = vsel %vm452_vm4, %v3134_v4, %v7993_v57  ;;  %501 = vst.msk [vmem:[#allocation2 + $0x178] sm:$0x1] %vm454_vm14, %v6431_v15 }
 0x1a4   : > { %v4267_v19 = vsel %vm452_vm4, %v4257_v5, %v8000_v22  ;;  %v3983_v17 = vrot.slane %v3981_v12, 4  ;;  %v8077_v61 = vadd.f32 %v2466_v41, %v2437_v20  ;;  %v3986_v57 = vrot.slane %v3984_v35, 5  ;;  %v5714_v22 = vld [vmem:[%s6556_s19 + $0xac] sm:$0x1]  ;;  %503 = vst.msk [vmem:[#allocation2 + $0x188] sm:$0x1] %vm454_vm14, %v6431_v15 }
 0x1a5   : > { %v3052_v39 = vpack.c.b16 %v3048_v42, %v3047_v31  ;;  %v3929_v27 = vsel %vm6589_vm2, %v3924_v36, %v3928_v48  ;;  %v8073_v32 = vpop.permute.xlu1 %3055  ;;  %v3943_v34 = vsel %vm6589_vm2, %v3938_v62, %v3942_v23  ;;  %v3992_v58 = vrot.slane %v3990_v54, 5  ;;  %505 = vst.msk [vmem:[#allocation2 + $0x198] sm:$0x1] %vm454_vm14, %v6431_v15 }
 0x1a6   : > { %v4226_v10 = vunpack.c.l.b16 %v3929_v27  ;;  %v4227_v11 = vunpack.c.l.b16 %v3943_v34  ;;  %v3995_v7 = vshrl.u32 %v5887_v49, 16  ;;  %v3998_v16 = vshll.u32 %v5887_v49, 16  ;;  %v1311_v12 = vpop.f32.mrf.mxu0 }
 0x1a7   : > { %3059 = vrot.lane.b32.xlu2 %v3052_v39, %s8618_s28  ;;  %v3987_v55 = vor.u32 %v3986_v57, %v3983_v17  ;;  %v4004_v30 = vshll.u32 %v5911_v46, 16  ;;  %v2834_v45 = vshrl.u32 %v5698_v1, 16  ;;  %v2837_v50 = vshll.u32 %v5698_v1, 16  ;;  %s8523_s28 = scalar_lea.vmem [#allocation3], %s5320_s3 }
 0x1a8   : > { %v8081_v24 = vpop.permute.xlu2 %4214  ;;  %v4275_v14 = vsel %vm1175_vm5, %v4267_v19, %v8015_v53  ;;  %v3152_v26 = vsel %vm1175_vm5, %v3144_v6, %v3008_v21  ;;  %v3997_v31 = vrot.slane %v3995_v7, 4  ;;  %v4000_v38 = vrot.slane %v3998_v16, 5  ;;  %v2427_v1 = vpop.f32.mrf.mxu1 }
 0x1a9   : > { %v4231_v44 = vpack.c.b16 %v4227_v11, %v4226_v10  ;;  %v3988_v5 = vrot.slane %v3987_v55, 4  ;;  %v4006_v63 = vrot.slane %v4004_v30, 5  ;;  %v2836_v43 = vrot.slane %v2834_v45, 4 }
 0x1aa   : > { %v4187_v52 = vpop.permute.xlu0 %4186  ;;  %vm2479_vm0 = vcmp.gt.f32.partialorder %v8077_v61, 0.0  ;;  %v4001_v48 = vor.u32 %v4000_v38, %v3997_v31  ;;  %v2839_v37 = vrot.slane %v2837_v50, 5  ;;  %v2843_v53 = vshll.u32 %v5714_v22, 16 }
 0x1ab   : > { %v2848_v4 = vshrl.u32 %v5699_v18, 16  ;;  %v2487_v21 = vmul.f32 %v8077_v61, %v7712_v9  ;;  %v3993_v42 = vsel %vm6589_vm2, %v3988_v5, %v3992_v58  ;;  %v2851_v20 = vshll.u32 %v5699_v18, 16 }
 0x1ac   : > { %v2857_v8 = vshll.u32 %v5715_v47, 16  ;;  %v4283_v23 = vsel %vm1184_vm6, %v4275_v14, %v8040_v13  ;;  %v4002_v49 = vrot.slane %v4001_v48, 4  ;;  %v2840_v41 = vor.u32 %v2839_v37, %v2836_v43  ;;  %v5700_v47 = vld [vmem:[%s6556_s19 + $0xb8] sm:$0xf]  ;;  %v5716_v43 = vld [vmem:[%s6556_s19 + $0xbc] sm:$0x1] }
 0x1ad   : > { %v2845_v36 = vrot.slane %v2843_v53, 5  ;;  %v3160_v35 = vsel %vm1184_vm6, %v3152_v26, %v8051_v40  ;;  %v4242_v39 = vunpack.c.l.b16 %v3993_v42  ;;  %v2850_v62 = vrot.slane %v2848_v4, 4 }
 0x1ae   : > { %v2853_v54 = vrot.slane %v2851_v20, 5  ;;  %v1339_v6 = vadd.f32 %v7944_v60, %v8064_v25  ;;  %v4291_v13 = vsel %vm1193_vm7, %v4283_v23, %v4187_v52  ;;  %v4007_v19 = vsel %vm6589_vm2, %v4002_v49, %v4006_v63  ;;  %v5888_v23 = vld [vmem:[%s6556_s19 + $0x100] sm:$0xf] }
 0x1af   : > { %4238 = vrot.lane.b32.xlu2 %v4231_v44, %s8619_s16  ;;  %v2841_v27 = vrot.slane %v2840_v41, 4  ;;  %v4243_v15 = vunpack.c.l.b16 %v4007_v19  ;;  %v2859_v34 = vrot.slane %v2857_v8, 5  ;;  %v1341_v40 = vadd.f32 %v7980_v51, %v1311_v12  ;;  %v5701_v44 = vld [vmem:[%s6556_s19 + $0xc0] sm:$0xf]  ;;  %v5889_v12 = vld [vmem:[%s6556_s19 + $0x108] sm:$0xf] }
 0x1b0   : > { %v3112_v46 = vpop.permute.xlu2 %3111  ;;  %v2854_v17 = vor.u32 %v2853_v54, %v2850_v62  ;;  %v3168_v18 = vsel %vm1193_vm7, %v3160_v35, %v8073_v32  ;;  %v2455_v25 = vadd.f32 %v7771_v33, %v2425_v3  ;;  %v2457_v22 = vadd.f32 %v7850_v29, %v2427_v1  ;;  %v5912_v62 = vld [vmem:[%s6556_s19 + $0x104] sm:$0x1] }
 0x1b1   : > { %v2846_v60 = vsel %vm6589_vm2, %v2841_v27, %v2845_v36  ;;  %v4299_v11 = vsel %vm1202_vm8, %v4291_v13, %v8081_v24  ;;  %v4249_v58 = vpack.c.b16 %v4243_v15, %v4242_v39  ;;  %v1363_v51 = vmul.f32 %v7712_v9, %v1339_v6 }
 0x1b2   : > { %v4235_v10 = vpop.permute.xlu1 %4234  ;;  %v3084_v57 = vpop.permute.xlu0 %3083  ;;  %v2855_v7 = vrot.slane %v2854_v17, 4  ;;  %v3119_v52 = vunpack.c.l.b16 %v2846_v60  ;;  %vm1352_vm1 = vcmp.gt.f32.partialorder %v1339_v6, 0.0  ;;  %v1364_v29 = vmul.f32 %v7712_v9, %v1341_v40 }
 0x1b3   : > { %v3176_v16 = vsel %vm1202_vm8, %v3168_v18, %v3084_v57  ;;  %v4308_v55 = vsel %vm1211_vm9, %v4299_v11, %v4235_v10  ;;  %5965 = vmatmul.msk.bf16.gmra.mxu2 %vm1154_vm3, %v4249_v58  ;;  %vm1353_vm10 = vcmp.gt.f32.partialorder %v1341_v40, 0.0  ;;  %v2482_v3 = vmul.f32 %v2455_v25, %v7712_v9 }
 0x1b4   : > { %v3185_v32 = vsel %vm1211_vm9, %v3176_v16, %v3112_v46  ;;  %v2860_v33 = vsel %vm6589_vm2, %v2855_v7, %v2859_v34  ;;  %4341 = vmatmul.bf16.gmra.mxu0 %v4308_v55  ;;  %v2483_v30 = vmul.f32 %v2457_v22, %v7712_v9  ;;  %v2495_v45 = vsel %vm2479_vm0, %v8077_v61, %v2487_v21  ;;  %v5717_v61 = vld [vmem:[%s6556_s19 + $0xc4] sm:$0x1] }
 0x1b5   : > { %v3120_v24 = vunpack.c.l.b16 %v2860_v33  ;;  %3218 = vmatmul.bf16.gmra.mxu1 %v3185_v32  ;;  %vm2474_vm11 = vcmp.gt.f32.partialorder %v2455_v25, 0.0  ;;  %vm2475_vm12 = vcmp.gt.f32.partialorder %v2457_v22, 0.0  ;;  %v1371_v50 = vsel %vm1352_vm1, %v1339_v6, %v1363_v51  ;;  %2504 = vst.msk [vmem:[#allocation2 + $0x171] sm:$0xff] %vm452_vm4, %v2495_v45  ;;  %v5913_v6 = vld [vmem:[%s6556_s19 + $0x10c] sm:$0x1] }
 0x1b6   : > { %v1372_v26 = vsel %vm1353_vm10, %v1341_v40, %v1364_v29  ;;  %v2490_v5 = vsel %vm2474_vm11, %v2455_v25, %v2482_v3  ;;  %v2491_v63 = vsel %vm2475_vm12, %v2457_v22, %v2483_v30  ;;  %v2862_v48 = vshrl.u32 %v5700_v47, 16  ;;  %1380 = vst.msk [vmem:[#allocation2 + $0x1f0] sm:$0xff] %vm452_vm4, %v1371_v50  ;;  %v5730_v50 = vld [vmem:[%s6556_s19 + $0xb0] sm:$0xf] }
 0x1b7   : > { %v3126_v14 = vpack.c.b16 %v3120_v24, %v3119_v52  ;;  %v2865_v37 = vshll.u32 %v5700_v47, 16  ;;  %v2871_v53 = vshll.u32 %v5716_v43, 16  ;;  %v2876_v4 = vshrl.u32 %v5701_v44, 16  ;;  %1381 = vst.msk [vmem:[#allocation2 + $0x200] sm:$0xff] %vm452_vm4, %v1372_v26 }
 0x1b8   : > { %v2879_v21 = vshll.u32 %v5701_v44, 16  ;;  %v2864_v20 = vrot.slane %v2862_v48, 4  ;;  %v2885_v8 = vshll.u32 %v5717_v61, 16  ;;  %2499 = vst.msk [vmem:[#allocation2 + $0x121] sm:$0xff] %vm452_vm4, %v2490_v5  ;;  %v4009_v54 = vshrl.u32 %v5888_v23, 16 }
 0x1b9   : > { %5817 = vmatmul.msk.bf16.gmra.mxu3 %vm1154_vm3, %v3126_v14  ;;  %v2867_v49 = vrot.slane %v2865_v37, 5  ;;  %v2873_v41 = vrot.slane %v2871_v53, 5  ;;  %v2878_v36 = vrot.slane %v2876_v4, 4  ;;  %2500 = vst.msk [vmem:[#allocation2 + $0x131] sm:$0xff] %vm452_vm4, %v2491_v63  ;;  %v4012_v13 = vshll.u32 %v5888_v23, 16 }
 0x1ba   : > { %v8140_v31 = vpop.permute.xlu1 %2961  ;;  %v8142_v38 = vpop.permute.xlu0 %4100  ;;  %v2881_v35 = vrot.slane %v2879_v21, 5  ;;  %v2887_v39 = vrot.slane %v2885_v8, 5  ;;  %v4018_v19 = vshll.u32 %v5912_v62, 16  ;;  %v4023_v27 = vshrl.u32 %v5889_v12, 16  ;;  %v6115_v14 = vld [vmem:[%s6556_s19 + $0xb4] sm:$0xf0] }
 0x1bb   : > { %v2868_v1 = vor.u32 %v2867_v49, %v2864_v20  ;;  %v4011_v15 = vrot.slane %v4009_v54, 4  ;;  %v4026_v17 = vshll.u32 %v5889_v12, 16  ;;  %v4032_v34 = vshll.u32 %v5913_v6, 16  ;;  %v5926_v4 = vld [vmem:[%s6556_s19 + $0xf8] sm:$0xf] }
 0x1bc   : > { %v2882_v46 = vor.u32 %v2881_v35, %v2878_v36  ;;  %v4014_v57 = vrot.slane %v4012_v13, 5  ;;  %v4025_v18 = vrot.slane %v4023_v27, 4  ;;  %v4020_v7 = vrot.slane %v4018_v19, 5  ;;  %v6139_v21 = vld [vmem:[%s6556_s19 + $0xfc] sm:$0xf0] }
 0x1bd   : > { %v8152_v42 = vpop.permute.xlu2 %4120  ;;  %v2869_v40 = vrot.slane %v2868_v1, 4  ;;  %v4028_v22 = vrot.slane %v4026_v17, 5  ;;  %v4034_v55 = vrot.slane %v4032_v34, 5  ;;  %v5731_v61 = vor.u32 %v6115_v14, %v5730_v50 }
 0x1be   : > { %v2883_v25 = vrot.slane %v2882_v46, 4  ;;  %v4015_v58 = vor.u32 %v4014_v57, %v4011_v15  ;;  %v5927_v23 = vor.u32 %v6139_v21, %v5926_v4  ;;  %v5891_v21 = vld [vmem:[%s6556_s19 + $0x118] sm:$0xf] }
 0x1bf   : > { %v2874_v11 = vsel %vm6589_vm2, %v2869_v40, %v2873_v41  ;;  %v4029_v52 = vor.u32 %v4028_v22, %v4025_v18  ;;  %v4460_v32 = vld [vmem:[#allocation2 + $0x121] sm:$0xff]  ;;  %v3137_v20 = vsel %vm1154_vm3, %v5731_v61, %v8140_v31 }
 0x1c0   : > { %v2888_v16 = vsel %vm6589_vm2, %v2883_v25, %v2887_v39  ;;  %v3121_v51 = vunpack.c.l.b16 %v2874_v11  ;;  %v4461_v33 = vld [vmem:[#allocation2 + $0x131] sm:$0xff]  ;;  %v4016_v24 = vrot.slane %v4015_v58, 4  ;;  %v4260_v62 = vsel %vm1154_vm3, %v5927_v23, %v8142_v38 }
 0x1c1   : > { %v3122_v29 = vunpack.c.l.b16 %v2888_v16  ;;  %v6230_v30 = vpack.i.bf16 %v4461_v33, %v4460_v32  ;;  %v4030_v45 = vrot.slane %v4029_v52, 4  ;;  %v2440_v37 = vpop.f32.mrf.mxu2  ;;  %v4269_v13 = vsel %vm452_vm4, %v4260_v62, %v8152_v42 }
 0x1c2   : > { %v4149_v10 = vpop.permute.xlu1 %4148  ;;  %v4021_v47 = vsel %vm6589_vm2, %v4016_v24, %v4020_v7 }
 0x1c3   : > { %v2982_v60 = vpop.permute.xlu0 %2981  ;;  %v3127_v26 = vpack.c.b16 %v3122_v29, %v3121_v51  ;;  %6231 = vrot.lane.b32.xlu1 %v6230_v30, %s8616_s26  ;;  %v4035_v44 = vsel %vm6589_vm2, %v4030_v45, %v4034_v55  ;;  %v4244_v5 = vunpack.c.l.b16 %v4021_v47  ;;  %v4277_v46 = vsel %vm1175_vm5, %v4269_v13, %v4149_v10  ;;  %v5702_v51 = vld [vmem:[%s6556_s19 + $0xc8] sm:$0xf] }
 0x1c4   : > { %v4245_v43 = vunpack.c.l.b16 %v4035_v44  ;;  %v3146_v36 = vsel %vm452_vm4, %v3137_v20, %v2982_v60  ;;  %v2890_v55 = vshrl.u32 %v5702_v51, 16  ;;  %v2893_v32 = vshll.u32 %v5702_v51, 16  ;;  %v5914_v20 = vld [vmem:[%s6556_s19 + $0x114] sm:$0x1] }
 0x1c5   : > { %v3010_v3 = vpop.permute.xlu2 %3009  ;;  %v4046_v13 = vshll.u32 %v5914_v20, 16 }
 0x1c6   : > { %v4250_v53 = vpack.c.b16 %v4245_v43, %v4244_v5  ;;  %v3154_v1 = vsel %vm1175_vm5, %v3146_v36, %v3010_v3  ;;  %v2892_v30 = vrot.slane %v2890_v55, 4  ;;  %v2895_v45 = vrot.slane %v2893_v32, 5  ;;  %v5718_v5 = vld [vmem:[%s6556_s19 + $0xcc] sm:$0x1] }
 0x1c7   : > { %v2899_v61 = vshll.u32 %v5718_v5, 16 }
 0x1c8   : > { %5966 = vmatmul.msk.bf16.gmra.mxu2 %vm1154_vm3, %v4250_v53  ;;  %v2896_v43 = vor.u32 %v2895_v45, %v2892_v30  ;;  %v6116_v30 = vld [vmem:[%s6556_s19 + $0xc4] sm:$0xf0] }
 0x1c9   : > { %5818 = vmatmul.msk.bf16.gmra.mxu3 %vm1154_vm3, %v3127_v26  ;;  %v2442_v31 = vpop.f32.mrf.mxu2  ;;  %v5890_v26 = vld [vmem:[%s6556_s19 + $0x110] sm:$0xf] }
 0x1ca   : > { %v3038_v63 = vpop.permute.xlu1 %3037 }
 0x1cb   : > { %v4169_v48 = vpop.permute.xlu0 %4168  ;;  %v3162_v6 = vsel %vm1184_vm6, %v3154_v1, %v3038_v63  ;;  %v5719_v63 = vld [vmem:[%s6556_s19 + $0xd4] sm:$0x1] }
 0x1cc   : > { %v4285_v17 = vsel %vm1184_vm6, %v4277_v46, %v4169_v48 }
 0x1cf   : > { %v2469_v8 = vpop.f32.mrf.mxu3 }
 0x1d0   : > { %v2470_v49 = vadd.f32 %v2469_v8, %v2440_v37  ;;  %v2913_v37 = vshll.u32 %v5719_v63, 16  ;;  %v4037_v8 = vshrl.u32 %v5890_v26, 16 }
 0x1d1   : > { %v4189_v41 = vpop.permute.xlu2 %4188 }
 0x1d2   : > { %vm2480_vm13 = vcmp.gt.f32.partialorder %v2470_v49, 0.0  ;;  %v2488_v12 = vmul.f32 %v2470_v49, %v7712_v9  ;;  %v4217_v35 = vpop.permute.xlu1 %4216  ;;  %v4293_v25 = vsel %vm1193_vm7, %v4285_v17, %v4189_v41  ;;  %v2901_v41 = vrot.slane %v2899_v61, 5 }
 0x1d3   : > { %v3058_v39 = vpop.permute.xlu0 %3057  ;;  %v4301_v11 = vsel %vm1202_vm8, %v4293_v25, %v4217_v35  ;;  %v4039_v62 = vrot.slane %v4037_v8, 4 }
 0x1d4   : > { %v2496_v54 = vsel %vm2480_vm13, %v2470_v49, %v2488_v12  ;;  %v3170_v19 = vsel %vm1193_vm7, %v3162_v6, %v3058_v39  ;;  %v2897_v49 = vrot.slane %v2896_v43, 4  ;;  %v2915_v12 = vrot.slane %v2913_v37, 5  ;;  %v5915_v39 = vld [vmem:[%s6556_s19 + $0x11c] sm:$0x1] }
 0x1d5   : > { %2505 = vst.msk [vmem:[#allocation2 + $0x181] sm:$0xff] %vm452_vm4, %v2496_v54  ;;  %v4040_v6 = vshll.u32 %v5890_v26, 16 }
 0x1d6   : > { %v2902_v1 = vsel %vm6589_vm2, %v2897_v49, %v2901_v41 }
 0x1d7   : > { %v2471_v27 = vpop.f32.mrf.mxu3  ;;  %v4042_v17 = vrot.slane %v4040_v6, 5 }
 0x1d8   : > { %v2472_v15 = vadd.f32 %v2471_v27, %v2442_v31  ;;  %v3123_v27 = vunpack.c.l.b16 %v2902_v1 }
 0x1d9   : > { %v3086_v38 = vpop.permute.xlu2 %3085  ;;  %v1314_v34 = vpop.f32.mrf.mxu0 }
 0x1da   : > { %v3178_v40 = vsel %vm1202_vm8, %v3170_v19, %v3086_v38  ;;  %vm2481_vm14 = vcmp.gt.f32.partialorder %v2472_v15, 0.0  ;;  %v2489_v57 = vmul.f32 %v2472_v15, %v7712_v9  ;;  %v3114_v18 = vpop.permute.xlu1 %3113  ;;  %v1344_v42 = vadd.f32 %v8017_v0, %v1314_v34  ;;  %v5703_v0 = vld [vmem:[%s6556_s19 + $0xd0] sm:$0xf] }
 0x1db   : > { %v3188_v60 = vsel %vm1211_vm9, %v3178_v40, %v3114_v18  ;;  %v2904_v33 = vshrl.u32 %v5703_v0, 16  ;;  %v2907_v29 = vshll.u32 %v5703_v0, 16  ;;  %v4054_v38 = vshll.u32 %v5891_v21, 16 }
 0x1dc   : > { %v2497_v10 = vsel %vm2481_vm14, %v2472_v15, %v2489_v57  ;;  %3223 = vmatmul.bf16.gmra.mxu1 %v3188_v60  ;;  %vm1354_vm15 = vcmp.gt.f32.partialorder %v1344_v42, 0.0  ;;  %v1365_v22 = vmul.f32 %v7712_v9, %v1344_v42  ;;  %v4051_v15 = vshrl.u32 %v5891_v21, 16 }
 0x1dd   : > { %2506 = vst.msk [vmem:[#allocation2 + $0x191] sm:$0xff] %vm452_vm4, %v2497_v10  ;;  %v4237_v58 = vpop.permute.xlu0 %4236  ;;  %v2906_v50 = vrot.slane %v2904_v33, 4  ;;  %v2909_v14 = vrot.slane %v2907_v29, 5  ;;  %v4060_v34 = vshll.u32 %v5915_v39, 16  ;;  %v4048_v60 = vrot.slane %v4046_v13, 5 }
 0x1de   : > { %v4311_v7 = vsel %vm1211_vm9, %v4301_v11, %v4237_v58  ;;  %v1373_v16 = vsel %vm1354_vm15, %v1344_v42, %v1365_v22  ;;  %v4053_v18 = vrot.slane %v4051_v15, 4  ;;  %v4043_v42 = vor.u32 %v4042_v17, %v4039_v62  ;;  %v5930_v29 = vld [vmem:[%s6556_s19 + $0x108] sm:$0xf] }
 0x1df   : > { %4346 = vmatmul.bf16.gmra.mxu0 %v4311_v7  ;;  %1382 = vst.msk [vmem:[#allocation2 + $0x210] sm:$0xff] %vm452_vm4, %v1373_v16  ;;  %v2430_v52 = vpop.f32.mrf.mxu1  ;;  %v2910_v48 = vor.u32 %v2909_v14, %v2906_v50  ;;  %v4056_v25 = vrot.slane %v4054_v38, 5  ;;  %v4062_v11 = vrot.slane %v4060_v34, 5 }
 0x1e0   : > { %v2460_v24 = vadd.f32 %v7913_v2, %v2430_v52 }
 0x1e1   : > { %v1316_v3 = vpop.f32.mrf.mxu0  ;;  %v8207_v2 = vpop.permute.xlu2 %4102  ;;  %v2911_v36 = vrot.slane %v2910_v48, 4  ;;  %v4057_v22 = vor.u32 %v4056_v25, %v4053_v18 }
 0x1e2   : > { %v1346_v47 = vadd.f32 %v8053_v56, %v1316_v3  ;;  %vm2476_vm0 = vcmp.gt.f32.partialorder %v2460_v24, 0.0  ;;  %v2484_v44 = vmul.f32 %v2460_v24, %v7712_v9  ;;  %v5734_v3 = vld [vmem:[%s6556_s19 + $0xc0] sm:$0xf] }
 0x1e3   : > { %v2916_v31 = vsel %vm6589_vm2, %v2911_v36, %v2915_v12  ;;  %v4058_v0 = vrot.slane %v4057_v22, 4  ;;  %v5735_v26 = vor.u32 %v6116_v30, %v5734_v3  ;;  %v6166_v12 = vld [vmem:[%s8584_s4 + $0x88] sm:$0xff] }
 0x1e4   : > { %vm1355_vm1 = vcmp.gt.f32.partialorder %v1346_v47, 0.0  ;;  %v1366_v53 = vmul.f32 %v7712_v9, %v1346_v47  ;;  %v2492_v4 = vsel %vm2476_vm0, %v2460_v24, %v2484_v44  ;;  %v3124_v46 = vunpack.c.l.b16 %v2916_v31  ;;  %v6140_v24 = vld [vmem:[%s6556_s19 + $0x10c] sm:$0xf0]  ;;  %4964 = vmatpush.bf16.msra.mxu0 %v6166_v12 }
 0x1e5   : > { %v4123_v56 = vpop.permute.xlu1 %4122  ;;  %v2964_v23 = vpop.permute.xlu0 %2963  ;;  %2501 = vst.msk [vmem:[#allocation2 + $0x141] sm:$0xff] %vm452_vm4, %v2492_v4  ;;  %v4063_v55 = vsel %vm6589_vm2, %v4058_v0, %v4062_v11  ;;  %v5931_v14 = vor.u32 %v6140_v24, %v5930_v29  ;;  %v4428_v11 = vld [vmem:[#allocation2 + $0x90] sm:$0xff] }
 0x1e6   : > { %v1374_v35 = vsel %vm1355_vm1, %v1346_v47, %v1366_v53  ;;  %v3128_v57 = vpack.c.b16 %v3124_v46, %v3123_v27  ;;  %v4247_v32 = vunpack.c.l.b16 %v4063_v55  ;;  %v3140_v5 = vsel %vm1154_vm3, %v5735_v26, %v2964_v23 }
 0x1e7   : > { %1383 = vst.msk [vmem:[#allocation2 + $0x220] sm:$0xff] %vm452_vm4, %v1374_v35  ;;  %v2432_v54 = vpop.f32.mrf.mxu1  ;;  %v4263_v44 = vsel %vm1154_vm3, %v5931_v14, %v8207_v2  ;;  %v6165_v35 = vld [vmem:[%s8584_s4 + $0x80] sm:$0xff] }
 0x1e8   : > { %v2462_v19 = vadd.f32 %v7967_v59, %v2432_v54  ;;  %5819 = vmatmul.msk.bf16.gmra.mxu3 %vm1154_vm3, %v3128_v57  ;;  %v4044_v59 = vrot.slane %v4043_v42, 4  ;;  %v4271_v63 = vsel %vm452_vm4, %v4263_v44, %v4123_v56  ;;  %4965 = vmatpush.bf16.msra.mxu0 %v6165_v35  ;;  %v4444_v14 = vld [vmem:[#allocation2 + $0x120] sm:$0xff] }
 0x1ea   : > { %vm2477_vm10 = vcmp.gt.f32.partialorder %v2462_v19, 0.0  ;;  %v2485_v40 = vmul.f32 %v2462_v19, %v7712_v9  ;;  %v4049_v51 = vsel %vm6589_vm2, %v4044_v59, %v4048_v60 }
 0x1eb   : > { %v4246_v52 = vunpack.c.l.b16 %v4049_v51 }
 0x1ec   : > { %v2493_v10 = vsel %vm2477_vm10, %v2462_v19, %v2485_v40 }
 0x1ed   : > { %2502 = vst.msk [vmem:[#allocation2 + $0x151] sm:$0xff] %vm452_vm4, %v2493_v10  ;;  %v2984_v58 = vpop.permute.xlu2 %2983  ;;  %v4151_v7 = vpop.permute.xlu0 %4150  ;;  %v4251_v33 = vpack.c.b16 %v4247_v32, %v4246_v52  ;;  %v4436_v52 = vld [vmem:[#allocation2 + $0x1] sm:$0xff] }
 0x1ee   : > { %v3012_v16 = vpop.permute.xlu1 %3011  ;;  %v3148_v43 = vsel %vm452_vm4, %v3140_v5, %v2984_v58  ;;  %v4279_v53 = vsel %vm1175_vm5, %v4271_v63, %v4151_v7 }
 0x1ef   : > { %5967 = vmatmul.msk.bf16.gmra.mxu2 %vm1154_vm3, %v4251_v33  ;;  %v3156_v61 = vsel %vm1175_vm5, %v3148_v43, %v3012_v16  ;;  %v4462_v33 = vld [vmem:[#allocation2 + $0x141] sm:$0xff] }
 0x1f4   : > { %v4463_v55 = vld [vmem:[#allocation2 + $0x151] sm:$0xff] }
 0x1f5   : > { %v3040_v45 = vpop.permute.xlu0 %3039  ;;  %v6260_v24 = vpack.i.bf16 %v4463_v55, %v4462_v33 }
 0x1f6   : > { %v4191_v47 = vpop.permute.xlu1 %4190  ;;  %v3164_v48 = vsel %vm1184_vm6, %v3156_v61, %v3040_v45  ;;  %v4445_v45 = vld [vmem:[#allocation2 + $0x130] sm:$0xff] }
 0x1f7   : > { %v6255_v44 = vpack.i.bf16 %v4445_v45, %v4444_v14  ;;  %v4467_v45 = vld [vmem:[#allocation2 + $0x191] sm:$0xff] }
 0x1f8   : > { %v4171_v50 = vpop.permute.xlu2 %4170 }
 0x1f9   : > { %v4287_v20 = vsel %vm1184_vm6, %v4279_v53, %v4171_v50 }
 0x1fa   : > { %v4295_v23 = vsel %vm1193_vm7, %v4287_v20, %v4191_v47 }
 0x1fd   : > { %v4219_v28 = vpop.permute.xlu0 %4218 }
 0x1fe   : > { %v3088_v4 = vpop.permute.xlu1 %3087  ;;  %v4303_v49 = vsel %vm1202_vm8, %v4295_v23, %v4219_v28 }
 0x201   : > { %v3060_v37 = vpop.permute.xlu2 %3059 }
 0x202   : > { %v3172_v21 = vsel %vm1193_vm7, %v3164_v48, %v3060_v37 }
 0x203   : > { %v3180_v2 = vsel %vm1202_vm8, %v3172_v21, %v3088_v4 }
 0x205   : > { %v3116_v8 = vpop.permute.xlu0 %3115 }
 0x206   : > { %v3191_v56 = vsel %vm1211_vm9, %v3180_v2, %v3116_v8 }
 0x207   : > { %3228 = vmatmul.bf16.gmra.mxu1 %v3191_v56 }
 0x209   : > { %v4239_v41 = vpop.permute.xlu2 %4238  ;;  %v4337_v39 = vpop.f32.mrf.mxu0 }
 0x20a   : > { %v4314_v36 = vsel %vm1211_vm9, %v4303_v49, %v4239_v41 }
 0x20b   : > { %4351 = vmatmul.bf16.gmra.mxu0 %v4314_v36 }
 0x211   : > { %v4339_v6 = vpop.f32.mrf.mxu0 }
 0x212   : > { %v4366_v62 = vpop.f32.mrf.mxu2  ;;  %v3214_v13 = vpop.f32.mrf.mxu1 }
 0x213   : > { %v4367_v54 = vadd.f32 %v4366_v62, %v4337_v39 }
 0x215   : > { %vm4386_vm2 = vcmp.gt.f32.partialorder %v4367_v54, 0.0  ;;  %v4394_v1 = vmul.f32 %v4367_v54, %v7712_v9 }
 0x217   : > { %v4402_v31 = vsel %vm4386_vm2, %v4367_v54, %v4394_v1 }
 0x218   : > { %4411 = vst.msk [vmem:[#allocation2 + $0x11] sm:$0xff] %vm452_vm4, %v4402_v31  ;;  %v4465_v31 = vld [vmem:[#allocation2 + $0x171] sm:$0xff] }
 0x21a   : > { %v4368_v19 = vpop.f32.mrf.mxu2  ;;  %v3216_v57 = vpop.f32.mrf.mxu1 }
 0x21b   : > { %v4369_v27 = vadd.f32 %v4368_v19, %v4339_v6  ;;  %v4464_v6 = vld [vmem:[#allocation2 + $0x161] sm:$0xff] }
 0x21c   : > { %v6290_v19 = vpack.i.bf16 %v4465_v31, %v4464_v6  ;;  %v6152_v31 = vld [vmem:[%s8584_s4 + $0x18] sm:$0xff] }
 0x21d   : > { %v3243_v46 = vpop.f32.mrf.mxu3  ;;  %vm4387_vm5 = vcmp.gt.f32.partialorder %v4369_v27, 0.0  ;;  %v4395_v15 = vmul.f32 %v4369_v27, %v7712_v9 }
 0x21e   : > { %v3244_v17 = vadd.f32 %v3243_v46, %v3214_v13 }
 0x21f   : > { %v4403_v38 = vsel %vm4387_vm5, %v4369_v27, %v4395_v15  ;;  %v8259_v60 = vld [vmem:[#allocation2 + $0x10] sm:$0xff] }
 0x220   : > { %vm3263_vm7 = vcmp.gt.f32.partialorder %v3244_v17, 0.0  ;;  %v3271_v34 = vmul.f32 %v3244_v17, %v7712_v9  ;;  %4412 = vst.msk [vmem:[#allocation2 + $0x21] sm:$0xff] %vm452_vm4, %v4403_v38  ;;  %v4484_v10 = vld [vmem:[#allocation2 + $0x11] sm:$0xff] }
 0x221   : > { %v6250_v32 = vpack.i.bf16 %v4484_v10, %v4436_v52  ;;  %v4447_v38 = vld [vmem:[#allocation2 + $0x150] sm:$0xff] }
 0x222   : > { %v3279_v40 = vsel %vm3263_vm7, %v3244_v17, %v3271_v34 }
 0x223   : > { %3288 = vst.msk [vmem:[#allocation2 + $0xa0] sm:$0xff] %vm452_vm4, %v3279_v40 }
 0x225   : > { %v3245_v18 = vpop.f32.mrf.mxu3 }
 0x226   : > { %v3246_v42 = vadd.f32 %v3245_v18, %v3216_v57  ;;  %v4446_v57 = vld [vmem:[#allocation2 + $0x140] sm:$0xff] }
 0x227   : > { %v8261_v25 = vld [vmem:[#allocation2 + $0x20] sm:$0xff]  ;;  %v6285_v18 = vpack.i.bf16 %v4447_v38, %v4446_v57 }
 0x228   : > { %v8263_v59 = vld [vmem:[#allocation2 + $0x21] sm:$0xff]  ;;  %vm3264_vm9 = vcmp.gt.f32.partialorder %v3246_v42, 0.0  ;;  %v3272_v22 = vmul.f32 %v3246_v42, %v7712_v9  ;;  %v6245_v58 = vpack.i.bf16 %v8261_v25, %v8259_v60 }
 0x229   : > { %v4734_v7 = vpack.c.bf16 %v8263_v59, %v4484_v10 }
 0x22a   : > { %v3280_v16 = vsel %vm3264_vm9, %v3246_v42, %v3272_v22  ;;  %v4429_v51 = vld [vmem:[#allocation2 + $0xa0] sm:$0xff]  ;;  %6246 = vrot.lane.b32.xlu2 %v6245_v58, %s8621_s29 }
 0x22b   : > { %6040 = vmatmul.msk.bf16.vlgmr.msra.gmra.mxu0 %vm452_vm4, %v4734_v7  ;;  %3289 = vst.msk [vmem:[#allocation2 + $0xb0] sm:$0xff] %vm452_vm4, %v3280_v16  ;;  %v6235_v0 = vpack.i.bf16 %v4429_v51, %v4428_v11 }
 0x22d   : > { %6236 = vrot.lane.b32.xlu1 %v6235_v0, %s8616_s26 }
 0x231   : > { %v4342_v30 = vpop.f32.mrf.mxu0 }
 0x232   : > { %v4477_v29 = vld [vmem:[#allocation2 + $0xb0] sm:$0xff]  ;;  %6251 = vrot.lane.b32.xlu2 %v6250_v32, %s8621_s29  ;;  %v3219_v47 = vpop.f32.mrf.mxu1 }
 0x233   : > { %v6240_v3 = vpack.i.bf16 %v4477_v29, %v4429_v51 }
 0x235   : > { %6261 = vrot.lane.b32.xlu1 %v6260_v24, %s8616_s26  ;;  %6241 = vrot.lane.b32.xlu0 %v6240_v3, %s8622_s18 }
 0x236   : > { %v4371_v50 = vpop.f32.mrf.mxu2 }
 0x237   : > { %v4372_v26 = vadd.f32 %v4371_v50, %v4342_v30  ;;  %v4466_v50 = vld [vmem:[#allocation2 + $0x181] sm:$0xff] }
 0x239   : > { %vm4388_vm11 = vcmp.gt.f32.partialorder %v4372_v26, 0.0  ;;  %v4396_v5 = vmul.f32 %v4372_v26, %v7712_v9  ;;  %v4344_v61 = vpop.f32.mrf.mxu0 }
 0x23a   : > { %v3221_v20 = vpop.f32.mrf.mxu1 }
 0x23b   : > { %v4404_v28 = vsel %vm4388_vm11, %v4372_v26, %v4396_v5  ;;  %v6320_v26 = vpack.i.bf16 %v4467_v45, %v4466_v50  ;;  %v6232_v45 = vpop.permute.xlu1 %6231  ;;  %vm5076_vm11 = vcmask 15360  }
 0x23c   : > { %v3248_v63 = vpop.f32.mrf.mxu3  ;;  %4413 = vst.msk [vmem:[#allocation2 + $0x31] sm:$0xff] %vm452_vm4, %v4404_v28 }
 0x23d   : > { %6256 = vrot.lane.b32.xlu0 %v6255_v44, %s8622_s18  ;;  %v3249_v43 = vadd.f32 %v3248_v63, %v3219_v47 }
 0x23e   : > { %v4373_v37 = vpop.f32.mrf.mxu2 }
 0x23f   : > { %vm3265_vm12 = vcmp.gt.f32.partialorder %v3249_v43, 0.0  ;;  %v3273_v48 = vmul.f32 %v3249_v43, %v7712_v9  ;;  %v4374_v53 = vadd.f32 %v4373_v37, %v4344_v61  ;;  %v4448_v37 = vld [vmem:[#allocation2 + $0x160] sm:$0xff] }
 0x241   : > { %v3281_v4 = vsel %vm3265_vm12, %v3249_v43, %v3273_v48  ;;  %vm4389_vm13 = vcmp.gt.f32.partialorder %v4374_v53, 0.0  ;;  %v4397_v21 = vmul.f32 %v4374_v53, %v7712_v9  ;;  %v4449_v48 = vld [vmem:[#allocation2 + $0x170] sm:$0xff] }
 0x242   : > { %3290 = vst.msk [vmem:[#allocation2 + $0xc0] sm:$0xff] %vm452_vm4, %v3281_v4  ;;  %v6164_v4 = vld [vmem:[%s8584_s4 + $0x78] sm:$0xff] }
 0x243   : > { %v4405_v2 = vsel %vm4389_vm13, %v4374_v53, %v4397_v21  ;;  %v8285_v12 = vld [vmem:[#allocation2 + $0x30] sm:$0xff]  ;;  %v6315_v53 = vpack.i.bf16 %v4449_v48, %v4448_v37  ;;  %v6156_v21 = vld [vmem:[%s8584_s4 + $0x38] sm:$0xff]  ;;  %4929 = vmatpush.bf16.msra.mxu3 %v6164_v4  ;;  %v4453_v4 = vld [vmem:[#allocation2 + $0x1c0] sm:$0xff] }
 0x244   : > { %v3250_v8 = vpop.f32.mrf.mxu3  ;;  %4414 = vst.msk [vmem:[#allocation2 + $0x41] sm:$0xff] %vm452_vm4, %v4405_v2  ;;  %v4486_v39 = vld [vmem:[#allocation2 + $0x31] sm:$0xff]  ;;  %4900 = vmatpush.bf16.msrb.mxu1 %v6156_v21 }
 0x245   : > { %v3251_v23 = vadd.f32 %v3250_v8, %v3221_v20  ;;  %v6280_v15 = vpack.i.bf16 %v4486_v39, %v8263_v59  ;;  %v6163_v20 = vld [vmem:[%s8584_s4 + $0x70] sm:$0xff] }
 0x246   : > { %v6155_v8 = vld [vmem:[%s8584_s4 + $0x30] sm:$0xff] }
 0x247   : > { %vm3266_vm14 = vcmp.gt.f32.partialorder %v3251_v23, 0.0  ;;  %v3274_v56 = vmul.f32 %v3251_v23, %v7712_v9  ;;  %4930 = vmatpush.bf16.msra.mxu3 %v6163_v20 }
 0x248   : > { %4901 = vmatpush.bf16.msrb.mxu1 %v6155_v8 }
 0x249   : > { %v3282_v49 = vsel %vm3266_vm14, %v3251_v23, %v3274_v56  ;;  %v4431_v41 = vld [vmem:[#allocation2 + $0xc0] sm:$0xff]  ;;  %v6162_v23 = vld [vmem:[%s8584_s4 + $0x68] sm:$0xff] }
 0x24a   : > { %3291 = vst.msk [vmem:[#allocation2 + $0xd0] sm:$0xff] %vm452_vm4, %v3282_v49  ;;  %v6270_v36 = vpack.i.bf16 %v4431_v41, %v4477_v29  ;;  %v6154_v56 = vld [vmem:[%s8584_s4 + $0x28] sm:$0xff]  ;;  %v6161_v49 = vld [vmem:[%s8584_s4 + $0x60] sm:$0xff] }
 0x24b   : > { %v8288_v35 = vld [vmem:[#allocation2 + $0x40] sm:$0xff]  ;;  %v4376_v17 = vpop.f32.mrf.mxu2  ;;  %4931 = vmatpush.bf16.msra.mxu3 %v6162_v23 }
 0x24c   : > { %6271 = vrot.lane.b32.xlu1 %v6270_v36, %s8616_s26  ;;  %v8290_v62 = vld [vmem:[#allocation2 + $0x41] sm:$0xff]  ;;  %v6275_v54 = vpack.i.bf16 %v8288_v35, %v8285_v12  ;;  %v3253_v46 = vpop.f32.mrf.mxu3  ;;  %4902 = vmatpush.bf16.msrb.mxu1 %v6154_v56 }
 0x24d   : > { %v4737_v1 = vpack.c.bf16 %v8290_v62, %v4486_v39 }
 0x24e   : > { %6276 = vrot.lane.b32.xlu2 %v6275_v54, %s8621_s29  ;;  %v6160_v54 = vld [vmem:[%s8584_s4 + $0x58] sm:$0xff] }
 0x24f   : > { %6041 = vmatmul.msk.bf16.gmra.mxu0 %vm452_vm4, %v4737_v1  ;;  %4932 = vmatpush.bf16.msra.mxu3 %v6161_v49 }
 0x251   : > { %v4479_v13 = vld [vmem:[#allocation2 + $0xd0] sm:$0xff] }
 0x252   : > { %v6265_v27 = vpack.i.bf16 %v4479_v13, %v4431_v41  ;;  %v6153_v41 = vld [vmem:[%s8584_s4 + $0x20] sm:$0xff] }
 0x253   : > { %v4378_v0 = vpop.f32.mrf.mxu2  ;;  %4903 = vmatpush.bf16.msrb.mxu1 %v6153_v41  ;;  %4933 = vmatpush.bf16.msra.mxu3 %v6160_v54 }
 0x254   : > { %6291 = vrot.lane.b32.xlu1 %v6290_v19, %s8616_s26  ;;  %6266 = vrot.lane.b32.xlu0 %v6265_v27, %s8622_s18  ;;  %v3255_v58 = vpop.f32.mrf.mxu3  ;;  %v6159_v19 = vld [vmem:[%s8584_s4 + $0x50] sm:$0xff] }
 0x256   : > { %6281 = vrot.lane.b32.xlu2 %v6280_v15, %s8621_s29  ;;  %v6151_v15 = vld [vmem:[%s8584_s4 + $0x10] sm:$0xff] }
 0x257   : > { %4904 = vmatpush.bf16.msrb.mxu1 %v6152_v31  ;;  %4934 = vmatpush.bf16.msra.mxu3 %v6159_v19 }
 0x259   : > { %v3224_v34 = vpop.f32.mrf.mxu1 }
 0x25a   : > { %v3254_v40 = vadd.f32 %v3253_v46, %v3224_v34 }
 0x25b   : > { %4905 = vmatpush.bf16.msrb.mxu1 %v6151_v15 }
 0x25c   : > { %vm3267_vm15 = vcmp.gt.f32.partialorder %v3254_v40, 0.0  ;;  %v3275_v42 = vmul.f32 %v3254_v40, %v7712_v9  ;;  %v4347_v10 = vpop.f32.mrf.mxu0  ;;  %6286 = vrot.lane.b32.xlu0 %v6285_v18, %s8622_s18 }
 0x25d   : > { %v4377_v22 = vadd.f32 %v4376_v17, %v4347_v10 }
 0x25e   : > { %v3283_v11 = vsel %vm3267_vm15, %v3254_v40, %v3275_v42  ;;  %v6158_v40 = vld [vmem:[%s8584_s4 + $0x48] sm:$0xff] }
 0x25f   : > { %3292 = vst.msk [vmem:[#allocation2 + $0xe0] sm:$0xff] %vm452_vm4, %v3283_v11  ;;  %vm4390_vm0 = vcmp.gt.f32.partialorder %v4377_v22, 0.0  ;;  %v4398_v59 = vmul.f32 %v4377_v22, %v7712_v9  ;;  %v6150_v42 = vld [vmem:[%s8584_s4 + $0x8] sm:$0xff]  ;;  %4935 = vmatpush.bf16.msra.mxu3 %v6158_v40 }
 0x260   : > { %4906 = vmatpush.bf16.msrb.mxu1 %v6150_v42 }
 0x261   : > { %v4406_v7 = vsel %vm4390_vm0, %v4377_v22, %v4398_v59  ;;  %v3226_v16 = vpop.f32.mrf.mxu1  ;;  %v6157_v59 = vld [vmem:[%s8584_s4 + $0x40] sm:$0xff] }
 0x262   : > { %4415 = vst.msk [vmem:[#allocation2 + $0x51] sm:$0xff] %vm452_vm4, %v4406_v7  ;;  %v3256_v51 = vadd.f32 %v3255_v58, %v3226_v16 }
 0x263   : > { %4936 = vmatpush.bf16.msra.mxu3 %v6157_v59 }
 0x264   : > { %vm3268_vm1 = vcmp.gt.f32.partialorder %v3256_v51, 0.0  ;;  %v3276_v52 = vmul.f32 %v3256_v51, %v7712_v9  ;;  %v4349_v55 = vpop.f32.mrf.mxu0 }
 0x265   : > { %v4379_v32 = vadd.f32 %v4378_v0, %v4349_v55  ;;  %v6149_v0 = vld [vmem:[%s8584_s4] sm:$0xff] }
 0x266   : > { %v3284_v33 = vsel %vm3268_vm1, %v3256_v51, %v3276_v52  ;;  %v4433_v29 = vld [vmem:[#allocation2 + $0xe0] sm:$0xff]  ;;  %4907 = vmatpush.bf16.msrb.mxu1 %v6149_v0 }
 0x267   : > { %3293 = vst.msk [vmem:[#allocation2 + $0xf0] sm:$0xff] %vm452_vm4, %v3284_v33  ;;  %vm4391_vm10 = vcmp.gt.f32.partialorder %v4379_v32, 0.0  ;;  %v4399_v24 = vmul.f32 %v4379_v32, %v7712_v9  ;;  %v6300_v3 = vpack.i.bf16 %v4433_v29, %v4479_v13 }
 0x269   : > { %v4407_v30 = vsel %vm4391_vm10, %v4379_v32, %v4399_v24  ;;  %6301 = vrot.lane.b32.xlu1 %v6300_v3, %s8616_s26  ;;  %v8314_v44 = vld [vmem:[#allocation2 + $0x50] sm:$0xff] }
 0x26a   : > { %4416 = vst.msk [vmem:[#allocation2 + $0x61] sm:$0xff] %vm452_vm4, %v4407_v30  ;;  %v4488_v28 = vld [vmem:[#allocation2 + $0x51] sm:$0xff] }
 0x26b   : > { %v6310_v2 = vpack.i.bf16 %v4488_v28, %v8290_v62  ;;  %v3258_v36 = vpop.f32.mrf.mxu3 }
 0x26e   : > { %v8311_v14 = vld [vmem:[#allocation2 + $0xf0] sm:$0xff] }
 0x26f   : > { %v6295_v47 = vpack.i.bf16 %v8311_v14, %v4433_v29 }
 0x271   : > { %6321 = vrot.lane.b32.xlu1 %v6320_v26, %s8616_s26  ;;  %6296 = vrot.lane.b32.xlu0 %v6295_v47, %s8622_s18  ;;  %v8318_v5 = vld [vmem:[#allocation2 + $0x60] sm:$0xff] }
 0x272   : > { %v8320_v63 = vld [vmem:[#allocation2 + $0x61] sm:$0xff]  ;;  %v6305_v43 = vpack.i.bf16 %v8318_v5, %v8314_v44  ;;  %v4381_v39 = vpop.f32.mrf.mxu2 }
 0x273   : > { %v4740_v61 = vpack.c.bf16 %v8320_v63, %v4488_v28  ;;  %v3260_v38 = vpop.f32.mrf.mxu3  ;;  %v4450_v47 = vld [vmem:[#allocation2 + $0x180] sm:$0xff] }
 0x274   : > { %6306 = vrot.lane.b32.xlu2 %v6305_v43, %s8621_s29  ;;  %v6234_v43 = vunpack.i.h.bf16 %v6232_v45 }
 0x275   : > { %6042 = vmatmul.msk.bf16.gmra.mxu0 %vm452_vm4, %v4740_v61  ;;  %v6233_v61 = vunpack.i.l.bf16 %v6232_v45 }
 0x276   : > { %v4709_v8 = vsel %vm452_vm4, %v4453_v4, %v6234_v43 }
 0x279   : > { %6316 = vrot.lane.b32.xlu0 %v6315_v53, %s8622_s18  ;;  %v4452_v53 = vld [vmem:[#allocation2 + $0x1b0] sm:$0xff] }
 0x27a   : > { %v4383_v10 = vpop.f32.mrf.mxu2  ;;  %v4708_v23 = vsel %vm452_vm4, %v4452_v53, %v6233_v61 }
 0x27c   : > { %6311 = vrot.lane.b32.xlu2 %v6310_v2, %s8621_s29 }
 0x284   : > { %v3229_v62 = vpop.f32.mrf.mxu1  ;;  %v6247_v26 = vpop.permute.xlu2 %6246 }
 0x285   : > { %v3259_v1 = vadd.f32 %v3258_v36, %v3229_v62  ;;  %v6249_v48 = vunpack.i.h.bf16 %v6247_v26  ;;  %v6248_v37 = vunpack.i.l.bf16 %v6247_v26 }
 0x287   : > { %vm3269_vm2 = vcmp.gt.f32.partialorder %v3259_v1, 0.0  ;;  %v3277_v6 = vmul.f32 %v3259_v1, %v7712_v9  ;;  %v4717_v41 = vsel %vm1184_vm6, %v4709_v8, %v6249_v48  ;;  %v4716_v36 = vsel %vm1184_vm6, %v4708_v23, %v6248_v37 }
 0x288   : > { %v4352_v13 = vpop.f32.mrf.mxu0 }
 0x289   : > { %v4382_v27 = vadd.f32 %v4381_v39, %v4352_v13  ;;  %v3285_v46 = vsel %vm3269_vm2, %v3259_v1, %v3277_v6 }
 0x28a   : > { %3294 = vst.msk [vmem:[#allocation2 + $0x100] sm:$0xff] %vm452_vm4, %v3285_v46 }
 0x28b   : > { %vm4392_vm5 = vcmp.gt.f32.partialorder %v4382_v27, 0.0  ;;  %v4400_v17 = vmul.f32 %v4382_v27, %v7712_v9 }
 0x28c   : > { %v3231_v34 = vpop.f32.mrf.mxu1  ;;  %v6252_v6 = vpop.permute.xlu2 %6251 }
 0x28d   : > { %v4408_v57 = vsel %vm4392_vm5, %v4382_v27, %v4400_v17  ;;  %v3261_v18 = vadd.f32 %v3260_v38, %v3231_v34  ;;  %v6254_v27 = vunpack.i.h.bf16 %v6252_v6  ;;  %v6253_v46 = vunpack.i.l.bf16 %v6252_v6 }
 0x28e   : > { %4417 = vst.msk [vmem:[#allocation2 + $0x71] sm:$0xff] %vm452_vm4, %v4408_v57 }
 0x28f   : > { %vm3270_vm7 = vcmp.gt.f32.partialorder %v3261_v18, 0.0  ;;  %v3278_v22 = vmul.f32 %v3261_v18, %v7712_v9 }
 0x290   : > { %v4354_v11 = vpop.f32.mrf.mxu0 }
 0x291   : > { %v4384_v58 = vadd.f32 %v4383_v10, %v4354_v11  ;;  %v3286_v7 = vsel %vm3270_vm7, %v3261_v18, %v3278_v22  ;;  %v4435_v16 = vld [vmem:[#allocation2 + $0x100] sm:$0xff] }
 0x292   : > { %3295 = vst.msk [vmem:[#allocation2 + $0x110] sm:$0xff] %vm452_vm4, %v3286_v7  ;;  %v6335_v51 = vpack.i.bf16 %v4435_v16, %v8311_v14  ;;  %v4451_v14 = vld [vmem:[#allocation2 + $0x190] sm:$0xff] }
 0x293   : > { %vm4393_vm9 = vcmp.gt.f32.partialorder %v4384_v58, 0.0  ;;  %v4401_v52 = vmul.f32 %v4384_v58, %v7712_v9  ;;  %v6345_v28 = vpack.i.bf16 %v4451_v14, %v4450_v47  ;;  %v4454_v7 = vld [vmem:[#allocation2 + $0x1d0] sm:$0xff] }
 0x294   : > { %6336 = vrot.lane.b32.xlu1 %v6335_v51, %s8616_s26  ;;  %s6170_s26 = sshll.u32 %s6521_s25, 6  ;;  %s5227_s25 = scalar_lea.sflag [#allocation4], %s419_s2 }
 0x295   : > { %v4409_v55 = vsel %vm4393_vm9, %v4384_v58, %v4401_v52  ;;  %v4490_v29 = vld [vmem:[#allocation2 + $0x71] sm:$0xff]  ;;  %s5238_s16 = scalar_lea.hbm %s8592_s12, %s6170_s26  ;;  %s6380_s26 = scalar_lea.hbm %s8592_s12, 128 }
 0x296   : > { %4418 = vst.msk [vmem:[#allocation2 + $0x81] sm:$0xff] %vm452_vm4, %v4409_v55  ;;  %v8389_v3 = vld [vmem:[#allocation2 + $0x70] sm:$0xff]  ;;  %v6340_v20 = vpack.i.bf16 %v4490_v29, %v8320_v63  ;;  %v4419_v63 = vld [vmem:[#allocation2] sm:$0xff] }
 0x299   : > { %v4483_v32 = vld [vmem:[#allocation2 + $0x110] sm:$0xff] }
 0x29a   : > { %v6325_v33 = vpack.i.bf16 %v4483_v32, %v4435_v16  ;;  %v4455_v16 = vld [vmem:[#allocation2 + $0x1e0] sm:$0xff] }
 0x29c   : > { %6326 = vrot.lane.b32.xlu0 %v6325_v33, %s8622_s18 }
 0x29d   : > { %v4491_v24 = vld [vmem:[#allocation2 + $0x81] sm:$0xff] }
 0x29e   : > { %v4475_v30 = vld [vmem:[#allocation2 + $0x80] sm:$0xff]  ;;  %v4743_v50 = vpack.c.bf16 %v4491_v24, %v4490_v29 }
 0x29f   : > { %v6330_v9 = vpack.i.bf16 %v4475_v30, %v8389_v3  ;;  %v6237_v21 = vpop.permute.xlu1 %6236 }
 0x2a0   : > { %6043 = vmatmul.msk.bf16.gmra.mxu0 %vm452_vm4, %v4743_v50  ;;  %v6239_v39 = vunpack.i.h.bf16 %v6237_v21  ;;  %v6238_v62 = vunpack.i.l.bf16 %v6237_v21 }
 0x2a1   : > { %6331 = vrot.lane.b32.xlu2 %v6330_v9, %s8621_s29 }
 0x2a2   : > { %v4685_v13 = vsel %vm452_vm4, %v8259_v60, %v6239_v39  ;;  %v4684_v19 = vsel %vm452_vm4, %v4419_v63, %v6238_v62  ;;  %v4457_v39 = vld [vmem:[#allocation2 + $0x200] sm:$0xff] }
 0x2a3   : > { %v4692_v34 = vsel %vm1184_vm6, %v4684_v19, %v6253_v46  ;;  %v4693_v40 = vsel %vm1184_vm6, %v4685_v13, %v6254_v27 }
 0x2a4   : > { %6346 = vrot.lane.b32.xlu0 %v6345_v28, %s8622_s18 }
 0x2a7   : > { %v6242_v2 = vpop.permute.xlu0 %6241  ;;  %v6262_v10 = vpop.permute.xlu1 %6261 }
 0x2a8   : > { %v6244_v56 = vunpack.i.h.bf16 %v6242_v2  ;;  %v6243_v49 = vunpack.i.l.bf16 %v6242_v2  ;;  %v6277_v22 = vpop.permute.xlu2 %6276  ;;  %v6264_v60 = vunpack.i.h.bf16 %v6262_v10  ;;  %v6263_v11 = vunpack.i.l.bf16 %v6262_v10 }
 0x2a9   : > { %6341 = vrot.lane.b32.xlu2 %v6340_v20, %s8621_s29  ;;  %v6279_v59 = vunpack.i.h.bf16 %v6277_v22  ;;  %v6278_v58 = vunpack.i.l.bf16 %v6277_v22  ;;  %s6067_s29 = sshll.u32 %s6550_s15, 6  ;;  %s5241_s15 = sshll.u32 %s5238_s16, 4  ;;  %s5242_s15 = int_to_ptr.hbm [resolvable:$true] %s5241_s15 }
 0x2aa   : > { %v4725_v54 = vsel %vm1202_vm8, %v4717_v41, %v6244_v56  ;;  %v4724_v1 = vsel %vm1202_vm8, %v4716_v36, %v6243_v49  ;;  %v4711_v52 = vsel %vm452_vm4, %v4455_v16, %v6264_v60  ;;  %v4710_v55 = vsel %vm452_vm4, %v4454_v7, %v6263_v11  ;;  %v4456_v36 = vld [vmem:[#allocation2 + $0x1f0] sm:$0xff]  ;;  %s431_s0 = scalar_lea.vmem %s8581_s1, %s6067_s29  ;;  %s6374_s20 = sshra.s32 %s5242_s15, 4  ;;  %s6375_s20 = int_to_ptr.hbm [resolvable:$true] %s6374_s20 }
 0x2ab   : > { %v4733_v31 = vpack.c.bf16 %v4725_v54, %v4724_v1  ;;  %v4718_v29 = vsel %vm1184_vm6, %v4710_v55, %v6278_v58  ;;  %v4719_v24 = vsel %vm1184_vm6, %v4711_v52, %v6279_v59  ;;  %s6376_s19 = scalar_lea.hbm %s6375_s20, 64  ;;  %p6381_p0 = scmp.lt.s32.totalorder %s6375_s20, %s8592_s12 }
 0x2ac   : > { %p6377_p11 = scmp.ne.s32.totalorder %s6375_s20, %s6376_s19  ;;  %p6382_p1 = scmp.lt.s32.totalorder %s6380_s26, %s6376_s19 }
 0x2ad   : > { %4937 = vmatmul.bf16.vlgmr.msra.gmra.mxu3 %v4733_v31 }
 0x2ae   : > { %p6378_p12 = pnand %p6377_p11, %p6538_p5  ;;  %p6383_p2 = por %p6382_p1, %p6381_p0 }
 0x2af   : > { %v6257_v15 = vpop.permute.xlu0 %6256 }
 0x2b0   : > { %v6259_v17 = vunpack.i.h.bf16 %v6257_v15  ;;  %v6258_v38 = vunpack.i.l.bf16 %v6257_v15  ;;  %v6282_v26 = vpop.permute.xlu2 %6281  ;;  %p6379_p13 = pneg %p6378_p12 }
 0x2b1   : > { %v6284_v43 = vunpack.i.h.bf16 %v6282_v26  ;;  %v6283_v61 = vunpack.i.l.bf16 %v6282_v26 }
 0x2b2   : > { %v4701_v57 = vsel %vm1202_vm8, %v4693_v40, %v6259_v17  ;;  %v4700_v18 = vsel %vm1202_vm8, %v4692_v34, %v6258_v38  ;;  %p6384_p3 = pnand %p6383_p2, %p6379_p13 }
 0x2b3   : > { %v4732_v42 = vpack.c.bf16 %v4701_v57, %v4700_v18 }
 0x2b5   : > { %4908 = vmatmul.bf16.vlgmr.msrb.gmra.mxu1 %v4732_v42 }
 0x2be   : > { %v6272_v51 = vpop.permute.xlu1 %6271 }
 0x2bf   : > { %v6274_v30 = vunpack.i.h.bf16 %v6272_v51  ;;  %v6273_v45 = vunpack.i.l.bf16 %v6272_v51 }
 0x2c1   : > { %v4687_v47 = vsel %vm452_vm4, %v8285_v12, %v6274_v30  ;;  %v4686_v28 = vsel %vm452_vm4, %v8261_v25, %v6273_v45 }
 0x2c2   : > { %v4694_v4 = vsel %vm1184_vm6, %v4686_v28, %v6283_v61  ;;  %v4695_v21 = vsel %vm1184_vm6, %v4687_v47, %v6284_v43 }
 0x2c6   : > { %v6267_v0 = vpop.permute.xlu0 %6266  ;;  %v6292_v23 = vpop.permute.xlu1 %6291 }
 0x2c7   : > { %v6269_v32 = vunpack.i.h.bf16 %v6267_v0  ;;  %v6268_v33 = vunpack.i.l.bf16 %v6267_v0  ;;  %v6294_v56 = vunpack.i.h.bf16 %v6292_v23  ;;  %v6293_v49 = vunpack.i.l.bf16 %v6292_v23 }
 0x2c9   : > { %v4726_v50 = vsel %vm1202_vm8, %v4718_v29, %v6268_v33  ;;  %v4727_v9 = vsel %vm1202_vm8, %v4719_v24, %v6269_v32  ;;  %v4713_v1 = vsel %vm452_vm4, %v4457_v39, %v6294_v56  ;;  %v4712_v63 = vsel %vm452_vm4, %v4456_v36, %v6293_v49  ;;  %v4458_v32 = vld [vmem:[#allocation2 + $0x210] sm:$0xff]  ;;  %v4459_v33 = vld [vmem:[#allocation2 + $0x220] sm:$0xff]  ;;  %v4967_v36 = vpop.f32.mrf.mxu0 }
 0x2ca   : > { %v4736_v14 = vpack.c.bf16 %v4727_v9, %v4726_v50 }
 0x2cc   : > { %4942 = vmatmul.bf16.gmra.mxu3 %v4736_v14 }
 0x2ce   : > { %v6287_v48 = vpop.permute.xlu0 %6286  ;;  %v6307_v12 = vpop.permute.xlu2 %6306 }
 0x2cf   : > { %v6289_v37 = vunpack.i.h.bf16 %v6287_v48  ;;  %v6288_v53 = vunpack.i.l.bf16 %v6287_v48  ;;  %v6309_v25 = vunpack.i.h.bf16 %v6307_v12  ;;  %v6308_v41 = vunpack.i.l.bf16 %v6307_v12 }
 0x2d1   : > { %v4702_v20 = vsel %vm1202_vm8, %v4694_v4, %v6288_v53  ;;  %v4703_v2 = vsel %vm1202_vm8, %v4695_v21, %v6289_v37  ;;  %v4720_v13 = vsel %vm1184_vm6, %v4712_v63, %v6308_v41  ;;  %v4721_v19 = vsel %vm1184_vm6, %v4713_v1, %v6309_v25 }
 0x2d2   : > { %v4735_v8 = vpack.c.bf16 %v4703_v2, %v4702_v20 }
 0x2d4   : > { %4913 = vmatmul.bf16.gmra.mxu1 %v4735_v8 }
 0x2d6   : > { %v6312_v34 = vpop.permute.xlu2 %6311 }
 0x2d7   : > { %v6314_v18 = vunpack.i.h.bf16 %v6312_v34  ;;  %v6313_v42 = vunpack.i.l.bf16 %v6312_v34 }
 0x2db   : > { %v6302_v62 = vpop.permute.xlu1 %6301 }
 0x2dc   : > { %v6304_v27 = vunpack.i.h.bf16 %v6302_v62  ;;  %v6303_v46 = vunpack.i.l.bf16 %v6302_v62 }
 0x2de   : > { %v4688_v40 = vsel %vm452_vm4, %v8288_v35, %v6303_v46  ;;  %v4689_v57 = vsel %vm452_vm4, %v8314_v44, %v6304_v27  ;;  %v6167_v46 = vld [vmem:[%s8587_s7] sm:$0xff] }
 0x2df   : > { %v4696_v11 = vsel %vm1184_vm6, %v4688_v40, %v6313_v42  ;;  %v4697_v59 = vsel %vm1184_vm6, %v4689_v57, %v6314_v18 }
 0x2e3   : > { %v6297_v54 = vpop.permute.xlu0 %6296  ;;  %v6322_v51 = vpop.permute.xlu1 %6321 }
 0x2e4   : > { %v6299_v31 = vunpack.i.h.bf16 %v6297_v54  ;;  %v6298_v6 = vunpack.i.l.bf16 %v6297_v54  ;;  %v6324_v0 = vunpack.i.h.bf16 %v6322_v51  ;;  %v6323_v52 = vunpack.i.l.bf16 %v6322_v51  ;;  %v4969_v54 = vpop.f32.mrf.mxu0 }
 0x2e6   : > { %v4728_v15 = vsel %vm1202_vm8, %v4720_v13, %v6298_v6  ;;  %v4729_v17 = vsel %vm1202_vm8, %v4721_v19, %v6299_v31  ;;  %v4715_v30 = vsel %vm452_vm4, %v4459_v33, %v6324_v0  ;;  %v4714_v45 = vsel %vm452_vm4, %v4458_v32, %v6323_v52  ;;  %v6351_v52 = vld [vmem:[%s8586_s6] ss:$0 sm:$0xff] }
 0x2e7   : > { %v4739_v38 = vpack.c.bf16 %v4729_v17, %v4728_v15 }
 0x2e9   : > { %4947 = vmatmul.bf16.gmra.mxu3 %v4739_v38 }
 0x2eb   : > { %v6317_v10 = vpop.permute.xlu0 %6316 }
 0x2ec   : > { %v6319_v22 = vunpack.i.h.bf16 %v6317_v10  ;;  %v6318_v60 = vunpack.i.l.bf16 %v6317_v10  ;;  %v4972_v31 = vpop.f32.mrf.mxu0 }
 0x2ee   : > { %v4704_v58 = vsel %vm1202_vm8, %v4696_v11, %v6318_v60  ;;  %v4705_v7 = vsel %vm1202_vm8, %v4697_v59, %v6319_v22  ;;  %v6350_v11 = vld [vmem:[%s8585_s5] ss:$0 sm:$0xff] }
 0x2ef   : > { %v4738_v16 = vpack.c.bf16 %v4705_v7, %v4704_v58 }
 0x2f1   : > { %4918 = vmatmul.bf16.gmra.mxu1 %v4738_v16 }
 0x2f4   : > { %v4974_v19 = vpop.f32.mrf.mxu0 }
 0x2fb   : > { %v6332_v35 = vpop.permute.xlu2 %6331 }
 0x2fc   : > { %v6334_v44 = vunpack.i.h.bf16 %v6332_v35  ;;  %v6333_v55 = vunpack.i.l.bf16 %v6332_v35  ;;  %v4977_v17 = vpop.f32.mrf.mxu0 }
 0x2fe   : > { %v4722_v14 = vsel %vm1184_vm6, %v4714_v45, %v6333_v55  ;;  %v4723_v26 = vsel %vm1184_vm6, %v4715_v30, %v6334_v44 }
 0x303   : > { %v6342_v37 = vpop.permute.xlu2 %6341 }
 0x304   : > { %v6344_v21 = vunpack.i.h.bf16 %v6342_v37  ;;  %v6343_v20 = vunpack.i.l.bf16 %v6342_v37  ;;  %v4979_v22 = vpop.f32.mrf.mxu0  ;;  %v6432_v37 = vmov 64.0  }
 0x305   : > { %6354 = vrcp.f32 %v6432_v37 }
 0x306   : > { %v6337_v29 = vpop.permute.xlu1 %6336 }
 0x307   : > { %v6339_v47 = vunpack.i.h.bf16 %v6337_v29  ;;  %v6338_v28 = vunpack.i.l.bf16 %v6337_v29 }
 0x309   : > { %v4691_v53 = vsel %vm452_vm4, %v8389_v3, %v6339_v47  ;;  %v4690_v4 = vsel %vm452_vm4, %v8318_v5, %v6338_v28  ;;  %v6168_v3 = vld [vmem:[%s8587_s7 + $0x8] sm:$0xff] }
 0x30a   : > { %v4698_v12 = vsel %vm1184_vm6, %v4690_v4, %v6343_v20  ;;  %v4699_v56 = vsel %vm1184_vm6, %v4691_v53, %v6344_v21  ;;  %5066 = vmatpush.bf16.msra.mxu2 %v6168_v3  ;;  %v5075_v53 = vld [vmem:[%s8588_s8] sm:$0x1]  ;;  %vm5080_vm6 = vcmask 1040384  }
 0x30e   : > { %v6327_v24 = vpop.permute.xlu0 %6326  ;;  %5067 = vmatpush.bf16.msra.mxu2 %v6167_v46 }
 0x30f   : > { %v6329_v50 = vunpack.i.h.bf16 %v6327_v24  ;;  %v6328_v9 = vunpack.i.l.bf16 %v6327_v24 }
 0x311   : > { %v4730_v43 = vsel %vm1202_vm8, %v4722_v14, %v6328_v9  ;;  %v4731_v61 = vsel %vm1202_vm8, %v4723_v26, %v6329_v50 }
 0x312   : > { %v4742_v48 = vpack.c.bf16 %v4731_v61, %v4730_v43 }
 0x314   : > { %4952 = vmatmul.bf16.gmra.mxu3 %v4742_v48 }
 0x316   : > { %v6347_v2 = vpop.permute.xlu0 %6346 }
 0x317   : > { %v6349_v8 = vunpack.i.h.bf16 %v6347_v2  ;;  %v6348_v23 = vunpack.i.l.bf16 %v6347_v2  ;;  %v5082_v2 = vsel %vm5080_vm6, %v5075_v53, 0 }
 0x318   : > { %5091 = vmatpush.bf16.msrb.mxu2 %v5082_v2 }
 0x319   : > { %v4706_v49 = vsel %vm1202_vm8, %v4698_v12, %v6348_v23  ;;  %v4707_v25 = vsel %vm1202_vm8, %v4699_v56, %v6349_v8 }
 0x31a   : > { %v4741_v41 = vpack.c.bf16 %v4707_v25, %v4706_v49 }
 0x31c   : > { %4923 = vmatmul.bf16.gmra.mxu1 %v4741_v41 }
 0x31d   : > { %v4982_v30 = vpop.f32.mrf.mxu0 }
 0x330   : > { %v4938_v5 = vpop.f32.mrf.mxu3 }
 0x332   : > { %v4909_v39 = vpop.f32.mrf.mxu1 }
 0x333   : > { %v4939_v40 = vadd.f32 %v4938_v5, %v4909_v39  ;;  %v4984_v39 = vpop.f32.mrf.mxu0 }
 0x335   : > { %v4968_v60 = vadd.f32 %v4967_v36, %v4939_v40  ;;  %v6355_v36 = vpop.eup %6354 }
 0x336   : > { %vm5037_vm8 = vweird.f32 %v6355_v36 }
 0x337   : > { %v4991_v0 = vmul.f32 %v6350_v11, %v4968_v60 }
 0x338   : > { %v4940_v62 = vpop.f32.mrf.mxu3 }
 0x339   : > { %v8466_v45 = vadd.f32 %v6351_v52, %v4991_v0 }
 0x33a   : > { %v4911_v1 = vpop.f32.mrf.mxu1 }
 0x33b   : > { %v4941_v34 = vadd.f32 %v4940_v62, %v4911_v1  ;;  %v5011_v48 = vsel %vm452_vm4, %v8466_v45, 0.0 }
 0x33d   : > { %v4970_v42 = vadd.f32 %v4969_v54, %v4941_v34 }
 0x33f   : > { %v4992_v16 = vmul.f32 %v6350_v11, %v4970_v42 }
 0x341   : > { %v8464_v33 = vadd.f32 %v6351_v52, %v4992_v16 }
 0x343   : > { %v5012_v47 = vsel %vm452_vm4, %v8464_v33, 0.0 }
 0x344   : > { %v5013_v8 = vadd.f32 %v5012_v47, %v5011_v48  ;;  %v5132_v47 = vld [vmem:[%s431_s0 + $0x38] sm:$0xff] }
 0x34f   : > { %v4943_v63 = vpop.f32.mrf.mxu3 }
 0x351   : > { %v4914_v6 = vpop.f32.mrf.mxu1 }
 0x352   : > { %v4944_v57 = vadd.f32 %v4943_v63, %v4914_v6 }
 0x354   : > { %v4973_v58 = vadd.f32 %v4972_v31, %v4944_v57 }
 0x356   : > { %v4993_v44 = vmul.f32 %v6350_v11, %v4973_v58 }
 0x357   : > { %v4945_v13 = vpop.f32.mrf.mxu3 }
 0x358   : > { %v8468_v9 = vadd.f32 %v6351_v52, %v4993_v44  ;;  %v5126_v44 = vld [vmem:[%s431_s0 + $0x8] sm:$0xff] }
 0x359   : > { %v4916_v27 = vpop.f32.mrf.mxu1 }
 0x35a   : > { %v4946_v10 = vadd.f32 %v4945_v13, %v4916_v27  ;;  %v5014_v4 = vsel %vm452_vm4, %v8468_v9, 0.0  ;;  %v5033_v13 = vmul.f32 64.0, %v6355_v36 }
 0x35b   : > { %v5015_v56 = vadd.f32 %v5014_v4, %v5013_v8 }
 0x35c   : > { %v4975_v51 = vadd.f32 %v4974_v19, %v4946_v10 }
 0x35e   : > { %v4994_v29 = vmul.f32 %v6350_v11, %v4975_v51 }
 0x360   : > { %v8472_v28 = vadd.f32 %v6351_v52, %v4994_v29  ;;  %v5128_v29 = vld [vmem:[%s431_s0 + $0x18] sm:$0xff] }
 0x362   : > { %v5016_v23 = vsel %vm452_vm4, %v8472_v28, 0.0 }
 0x363   : > { %v5017_v62 = vadd.f32 %v5016_v23, %v5015_v56 }
 0x36c   : > { %v4948_v15 = vpop.f32.mrf.mxu3 }
 0x36e   : > { %v4919_v38 = vpop.f32.mrf.mxu1 }
 0x36f   : > { %v4949_v7 = vadd.f32 %v4948_v15, %v4919_v38 }
 0x371   : > { %v4978_v55 = vadd.f32 %v4977_v17, %v4949_v7  ;;  %v5034_v17 = vsub.f32 1.0, %v5033_v13  ;;  %v6169_v7 = vld [vmem:[%s8589_s9] sm:$0xff] }
 0x373   : > { %v4995_v14 = vmul.f32 %v6350_v11, %v4978_v55  ;;  %v5035_v40 = vmul.f32 %v6355_v36, %v5034_v17 }
 0x374   : > { %v4950_v18 = vpop.f32.mrf.mxu3 }
 0x375   : > { %v8481_v21 = vadd.f32 %v6351_v52, %v4995_v14  ;;  %v5036_v42 = vadd.f32 %v6355_v36, %v5035_v40 }
 0x376   : > { %v4921_v59 = vpop.f32.mrf.mxu1 }
 0x377   : > { %v4951_v35 = vadd.f32 %v4950_v18, %v4921_v59  ;;  %v5018_v41 = vsel %vm452_vm4, %v8481_v21, 0.0  ;;  %v5038_v60 = vsel %vm5037_vm8, %v6355_v36, %v5036_v42 }
 0x378   : > { %v5019_v63 = vadd.f32 %v5018_v41, %v5017_v62 }
 0x379   : > { %v4980_v24 = vadd.f32 %v4979_v22, %v4951_v35 }
 0x37b   : > { %v4996_v43 = vmul.f32 %v6350_v11, %v4980_v24 }
 0x37d   : > { %v8485_v12 = vadd.f32 %v6351_v52, %v4996_v43 }
 0x37f   : > { %v5020_v54 = vsel %vm452_vm4, %v8485_v12, 0.0 }
 0x380   : > { %v5021_v19 = vadd.f32 %v5020_v54, %v5019_v63 }
 0x397   : > { %v4953_v32 = vpop.f32.mrf.mxu3 }
 0x399   : > { %v4924_v50 = vpop.f32.mrf.mxu1 }
 0x39a   : > { %v4954_v26 = vadd.f32 %v4953_v32, %v4924_v50  ;;  %v5127_v32 = vld [vmem:[%s431_s0 + $0x10] sm:$0xff]  ;;  %v5130_v50 = vld [vmem:[%s431_s0 + $0x28] sm:$0xff] }
 0x39b   : > { %v5134_v24 = vpack.c.bf16 %v5128_v29, %v5127_v32 }
 0x39c   : > { %v4983_v61 = vadd.f32 %v4982_v30, %v4954_v26  ;;  %v5129_v30 = vld [vmem:[%s431_s0 + $0x20] sm:$0xff]  ;;  %v5131_v26 = vld [vmem:[%s431_s0 + $0x30] sm:$0xff] }
 0x39d   : > { %v5135_v14 = vpack.c.bf16 %v5130_v50, %v5129_v30  ;;  %v5136_v43 = vpack.c.bf16 %v5132_v47, %v5131_v26 }
 0x39e   : > { %v4997_v20 = vmul.f32 %v6350_v11, %v4983_v61 }
 0x39f   : > { %v4955_v49 = vpop.f32.mrf.mxu3 }
 0x3a0   : > { %v8489_v3 = vadd.f32 %v6351_v52, %v4997_v20 }
 0x3a1   : > { %v4926_v25 = vpop.f32.mrf.mxu1 }
 0x3a2   : > { %v4956_v5 = vadd.f32 %v4955_v49, %v4926_v25  ;;  %v5022_v31 = vsel %vm452_vm4, %v8489_v3, 0.0  ;;  %v6352_v25 = vld [vmem:[%s8590_s10] ss:$0 sm:$0xff] }
 0x3a3   : > { %v5023_v46 = vadd.f32 %v5022_v31, %v5021_v19 }
 0x3a4   : > { %v4985_v1 = vadd.f32 %v4984_v39, %v4956_v5 }
 0x3a6   : > { %v4998_v6 = vmul.f32 %v6350_v11, %v4985_v1  ;;  %v6353_v1 = vld [vmem:[%s8591_s11] ss:$0 sm:$0xff] }
 0x3a8   : > { %v8495_v27 = vadd.f32 %v6351_v52, %v4998_v6  ;;  %v5125_v52 = vld [vmem:[%s431_s0] sm:$0xff]  ;;  %s5239_s0 = sshll.u32 %s8523_s28, 4  ;;  %s5240_s0 = int_to_ptr.vmem [resolvable:$true] %s5239_s0 }
 0x3a9   : > { %v5133_v55 = vpack.c.bf16 %v5126_v44, %v5125_v52 }
 0x3aa   : > { %v5024_v15 = vsel %vm452_vm4, %v8495_v27, 0.0 }
 0x3ab   : > { %v5025_v38 = vadd.f32 %v5024_v15, %v5023_v46 }
 0x3ad   : > { %v5026_v34 = vrot.slane %v5025_v38, 4 }
 0x3af   : > { %v5027_v57 = vadd.f32 %v5026_v34, %v5025_v38 }
 0x3b1   : > { %v5028_v18 = vrot.slane %v5027_v57, 2 }
 0x3b3   : > { %v5029_v10 = vadd.f32 %v5028_v18, %v5027_v57 }
 0x3b5   : > { %v5030_v22 = vrot.slane %v5029_v10, 1 }
 0x3b7   : > { %v5031_v11 = vadd.f32 %v5030_v22, %v5029_v10 }
 0x3b9   : > { %v5039_v59 = vmul.f32 %v5038_v60, %v5031_v11 }
 0x3bb   : > { %v5040_v58 = vpack.c.bf16 %v5039_v59, %v5039_v59 }
 0x3bd   : > { %6052 = vmatmul.msk.bf16.vlgmr.msra.gmra.mxu2 %vm452_vm4, %v5040_v58 }
 0x3be   : > { %5164 = vmatpush.bf16.msra.mxu2 %v6169_v7 }
 0x440   : > { %v5069_v16 = vpop.f32.mrf.mxu2 }
 0x441   : > { %v5073_v51 = vmax.f32 %v5069_v16, 0.0 }
 0x443   : > { %v5074_v35 = vpack.c.bf16 %v5073_v51, %v5073_v51 }
 0x445   : > { %6053 = vmatmul.msk.bf16.vlgmr.msrb.gmra.mxu2 %vm5076_vm11, %v5074_v35 }
 0x448   : > { %v5071_v0 = vpop.f32.mrf.mxu2 }
 0x455   : > { %6058 = vmatmul.msk.bf16.vlgmr.msra.gmra.mxu2 %vm1154_vm3, %v5133_v55 }
 0x465   : > { %6059 = vmatmul.msk.bf16.gmra.mxu2 %vm1154_vm3, %v5134_v24 }
 0x475   : > { %6060 = vmatmul.msk.bf16.gmra.mxu2 %vm1154_vm3, %v5135_v14 }
 0x485   : > { %6061 = vmatmul.msk.bf16.gmra.mxu2 %vm1154_vm3, %v5136_v43 }
 0x4c8   : > { %v5093_v61 = vpop.f32.mrf.mxu2 }
 0x4c9   : > { %v5097_v48 = vsub.f32 0.0, %v5093_v61 }
 0x4cb   : > { %v5098_v37 = vmul.f32 1.442695, %v5097_v48 }
 0x4cd   : > { %6356 = vpow2.f32 %v5098_v37 }
 0x4d0   : > { %v5095_v53 = vpop.f32.mrf.mxu2 }
 0x4d3   : > { %v6357_v4 = vpop.eup %6356 }
 0x4d4   : > { %v5100_v20 = vadd.f32 1.0, %v6357_v4 }
 0x4d6   : > { %6358 = vrcp.f32 %v5100_v20  ;;  %v5112_v49 = vand.u32 2147483648, %v5100_v20  ;;  %v5110_v36 = vand.u32 2147483647, %v5100_v20  ;;  %vm5106_vm12 = vweird.f32 %v5100_v20 }
 0x4d8   : > { %v5166_v2 = vpop.f32.mrf.mxu2  ;;  %v5113_v62 = vor.u32 1.1754944e-38, %v5112_v49  ;;  %vm5111_vm14 = vcmp.eq.f32.partialorder %v5110_v36, 8.507059e+37 }
 0x4d9   : > { %v5190_v54 = vmul.f32 %v6352_v25, %v5166_v2 }
 0x4db   : > { %v5202_v19 = vadd.f32 %v6353_v1, %v5190_v54 }
 0x4dc   : > { %v6359_v8 = vpop.eup %6358 }
 0x4dd   : > { %v5102_v23 = vmul.f32 %v6359_v8, %v5100_v20  ;;  %vm5107_vm3 = vweird.f32 %v6359_v8 }
 0x4de   : > { %vm5108_vm13 = vmor %vm5106_vm12, %vm5107_vm3 }
 0x4df   : > { %v5103_v56 = vsub.f32 1.0, %v5102_v23 }
 0x4e0   : > { %v5168_v41 = vpop.f32.mrf.mxu2 }
 0x4e1   : > { %v5104_v5 = vmul.f32 %v6359_v8, %v5103_v56  ;;  %v5191_v31 = vmul.f32 %v6352_v25, %v5168_v41 }
 0x4e3   : > { %v5105_v39 = vadd.f32 %v6359_v8, %v5104_v5  ;;  %v5203_v38 = vadd.f32 %v6353_v1, %v5191_v31 }
 0x4e5   : > { %v5109_v63 = vsel %vm5108_vm13, %v6359_v8, %v5105_v39 }
 0x4e6   : > { %v5114_v6 = vsel %vm5111_vm14, %v5113_v62, %v5109_v63 }
 0x4e7   : > { %v5116_v13 = vperm.slane %v5114_v6, 0 }
 0x4e8   : > { %v5171_v46 = vpop.f32.mrf.mxu2 }
 0x4e9   : > { %v5117_v15 = vmul.f32 %v5116_v13, %v8466_v45  ;;  %v5118_v17 = vmul.f32 %v5116_v13, %v8464_v33  ;;  %v5192_v34 = vmul.f32 %v6352_v25, %v5171_v46  ;;  %v5119_v18 = vmul.f32 %v5116_v13, %v8468_v9 }
 0x4ea   : > { %v5120_v9 = vmul.f32 %v5116_v13, %v8472_v28  ;;  %v5121_v58 = vmul.f32 %v5116_v13, %v8481_v21  ;;  %v5122_v0 = vmul.f32 %v5116_v13, %v8485_v12  ;;  %v5123_v32 = vmul.f32 %v5116_v13, %v8489_v3 }
 0x4eb   : > { %v5210_v40 = vadd.f32 %v5202_v19, %v5117_v15  ;;  %v5211_v57 = vadd.f32 %v5203_v38, %v5118_v17  ;;  %v5204_v42 = vadd.f32 %v6353_v1, %v5192_v34  ;;  %v5124_v30 = vmul.f32 %v5116_v13, %v8495_v27 }
 0x4ed   : > { %5218 = vst.msk [vmem:[%s8523_s28] sm:$0xff] %vm452_vm4, %v5210_v40  ;;  %v5212_v10 = vadd.f32 %v5204_v42, %v5119_v18 }
 0x4ee   : > { %5219 = vst.msk [vmem:[%s8523_s28 + $0x8] sm:$0xff] %vm452_vm4, %v5211_v57 }
 0x4ef   : > { %5220 = vst.msk [vmem:[%s8523_s28 + $0x10] sm:$0xff] %vm452_vm4, %v5212_v10 }
 0x4f0   : > { %v5173_v33 = vpop.f32.mrf.mxu2 }
 0x4f1   : > { %v5193_v45 = vmul.f32 %v6352_v25, %v5173_v33 }
 0x4f3   : > { %v5205_v22 = vadd.f32 %v6353_v1, %v5193_v45 }
 0x4f5   : > { %v5213_v60 = vadd.f32 %v5205_v22, %v5120_v9 }
 0x4f7   : > { %5221 = vst.msk [vmem:[%s8523_s28 + $0x18] sm:$0xff] %vm452_vm4, %v5213_v60 }
 0x4f8   : > { %v5176_v11 = vpop.f32.mrf.mxu2 }
 0x4f9   : > { %v5194_v59 = vmul.f32 %v6352_v25, %v5176_v11 }
 0x4fb   : > { %v5206_v7 = vadd.f32 %v6353_v1, %v5194_v59 }
 0x4fd   : > { %v5214_v16 = vadd.f32 %v5206_v7, %v5121_v58 }
 0x4ff   : > { %5222 = vst.msk [vmem:[%s8523_s28 + $0x20] sm:$0xff] %vm452_vm4, %v5214_v16 }
 0x500   : > { %v5178_v51 = vpop.f32.mrf.mxu2 }
 0x501   : > { %v5195_v35 = vmul.f32 %v6352_v25, %v5178_v51 }
 0x503   : > { %v5207_v28 = vadd.f32 %v6353_v1, %v5195_v35 }
 0x505   : > { %v5215_v52 = vadd.f32 %v5207_v28, %v5122_v0 }
 0x507   : > { %5223 = vst.msk [vmem:[%s8523_s28 + $0x28] sm:$0xff] %vm452_vm4, %v5215_v52 }
 0x508   : > { %v5181_v44 = vpop.f32.mrf.mxu2 }
 0x509   : > { %v5196_v55 = vmul.f32 %v6352_v25, %v5181_v44 }
 0x50b   : > { %v5208_v21 = vadd.f32 %v6353_v1, %v5196_v55 }
 0x50d   : > { %v5216_v29 = vadd.f32 %v5208_v21, %v5123_v32 }
 0x50f   : > { %5224 = vst.msk [vmem:[%s8523_s28 + $0x30] sm:$0xff] %vm452_vm4, %v5216_v29 }
 0x510   : > { %v5183_v12 = vpop.f32.mrf.mxu2 }
 0x511   : > { %v5197_v24 = vmul.f32 %v6352_v25, %v5183_v12 }
 0x513   : > { %v5209_v50 = vadd.f32 %v6353_v1, %v5197_v24 }
 0x515   : > { %v5217_v3 = vadd.f32 %v5209_v50, %v5124_v30 }
 0x517   : > { %5225 = vst.msk [vmem:[%s8523_s28 + $0x38] sm:$0xff] %vm452_vm4, %v5217_v3 }
 0x518   : > { %6387 = shalt.err (!%p6384_p3)
}
 0x519   : > { %s6433_s2 = smov 128   ;;  %s6434_s28 = smov 8  }
 0x51a   : > { %6180 = dma.vmem_to_hbm [thread:$0]  (%p6538_p5), %s5240_s0, 1024, %s5242_s15, %s5227_s25, %s6433_s2, %s6433_s2, %s6434_s28  }
 0x51b PF: > { %p6186_p4 = scmp.ge.s32.totalorder %s6422_s24, 2  ;;  %s5256_s16 = sand.u32 1, %s6410_s21  }
 0x51c   : > { %s5257_s17 = scalar_lea.sflag [#allocation4], %s5256_s16 }
 0x51d   : > { %p6183_p7 = pnand %p6186_p4, %p6542_p6 }
 0x51f   : > { %p6184_p8 = pneg %p6183_p7 }
 0x521   : > { %6405 = dma.done.wait (%p6184_p8), %s5257_s17, 1024  }
 0x522   : > { %6407 = vsyncadd (%p6184_p8), %s5257_s17, 4294966272  ;;  %p22_p9 = scmp.ge.s32.totalorder %s6525_s27, 4   ;;  %s8624_s21 = smov %s6414_s22 }
 0x523   : > { %s8625_s22 = smov %s6418_s23  ;;  %s8626_s23 = smov %s6536_s30 }
 0x524   : > { %s8627_s24 = smov %s6525_s27  ;;  %24 = sbr.rel (!%p22_p9) target bundleno = 7 (0x7), region = 118 }
 0x529   :  { %5263 = vsyncpa [#allocation4], 1 }
 0x52a   :  { %5265 = vsyncpa [#allocation4 + $0x1], 1 }

</bundles_post_ra>
